<compile_context>
chip_gen: v7x
topology: tpu7x:2x2x1
jax: 0.10.0
libtpu: 0.0.40
codegen_flags: <defaults>
</compile_context>

<pallas_src>
import functools

import jax
import jax.numpy as jnp
from jax import lax
from jax.experimental import pallas as pl
from jax.experimental.pallas import tpu as pltpu

HIGHEST = jax.lax.Precision.HIGHEST


# ------------------------------ fused Pallas kernel ------------------------------

def _aa_fused_kernel(gam_ref, xp_ref, bb_ref, wph_ref, wpw_ref, o_ref, *, W, qk_w):
    """conv0(1x1)+conv1(3x3) + Hattn + Wattn for one batch element, fully in VMEM.

    Internal activation layout is W-major and lane-dense: x[w, h*C + c].

    gam_ref : (2,) SMEM                     -- [h_gamma, w_gamma]
    xp_ref  : (1, W+2, (H+2)*Cin) VMEM      -- zero-padded input, xp[w, h*Cin + ci]
    bb_ref  : (3, (H+2)*Cin, H*C) VMEM      -- banded conv weight, one slab per kx tap
    wph_ref : (H*C, 2*qk_w + H*C) VMEM      -- [blockdiag(wq) | blockdiag(wk) | blockdiag(wv)]
    wpw_ref : same shape, Wattn weights
    o_ref   : (1, W, H*C) VMEM
    """
    xp = xp_ref[0]                                               # (W+2, (H+2)*Cin)

    # conv0 folded into conv1: three banded matmuls (one per kx tap) accumulating
    # straight into the lane-dense W-major activation slab.  No im2col, no reshapes.
    x = jnp.dot(xp[0:W, :], bb_ref[0], preferred_element_type=jnp.float32)
    x = x + jnp.dot(xp[1:W + 1, :], bb_ref[1], preferred_element_type=jnp.float32)
    x = x + jnp.dot(xp[2:W + 2, :], bb_ref[2], preferred_element_type=jnp.float32)

    # Axial self-attention with torch's `.view(b,-1,axis)` semantics on a square
    # NCHW map: both blocks attend over the W axis, contracting over (C, H).
    def attend(x, wproj_ref, gamma):
        # fused q|k|v projection: one K=H*C matmul, 768-lane output.
        qkv = jnp.dot(x, wproj_ref[...], preferred_element_type=jnp.float32)
        q = qkv[:, :qk_w]                                        # (W, qk_w)
        k = qkv[:, qk_w:2 * qk_w]                                # (W, qk_w)
        v = qkv[:, 2 * qk_w:]                                    # (W, H*C)
        s = lax.dot_general(q, k, (((1,), (1,)), ((), ())),
                            preferred_element_type=jnp.float32)  # (W, W), K = H*Cq
        s = s - jnp.max(s, axis=-1, keepdims=True)
        e = jnp.exp(s)
        p = e * pl.reciprocal(jnp.sum(e, axis=-1, keepdims=True), approx=True)
        ctx = jnp.dot(p, v, preferred_element_type=jnp.float32)  # (W, H*C), lane-dense
        return gamma * ctx + x

    x = attend(x, wph_ref, gam_ref[0])                           # Hattn
    x = attend(x, wpw_ref, gam_ref[1])                           # Wattn
    o_ref[0] = x


# --------------------------------- JAX wrapper -----------------------------------

def _blockdiag(w, n, pad_to=None):
    """(C, D) -> (n*C, n*D) block-diagonal (one copy of w per spatial row h)."""
    c, d = w.shape
    m = jnp.einsum('hk,cd->hckd', jnp.eye(n, dtype=w.dtype), w,
                   precision=HIGHEST).reshape(n * c, n * d)
    if pad_to is not None and pad_to > n * d:
        m = jnp.pad(m, ((0, 0), (0, pad_to - n * d)))            # lane-align q/k slices
    return m


def aa_kernel_forward(x_nchw, params):
    """x_nchw: (B, Cin, H, W) float32 -> (B, C, H, W) float32."""
    B, Cin, H, W = x_nchw.shape
    C = params['w1'].shape[-1]
    Cq = params['h_q'].shape[1]
    # TODO(synk): torch's `.view(b,-1,axis)` in mode='h' only reduces to a clean axial
    # attention when H == W (square maps, the FDTNet use case); non-square literal
    # view semantics are not implemented.
    assert H == W, "literal torch view semantics implemented for square maps only"
    Hp = H + 2
    qk_w = ((H * Cq + 127) // 128) * 128        # lane-aligned q/k column width

    # ----- weight prep (tiny, pure JAX, outside the kernel) -----
    # conv0 (1x1, Cin->C) folded exactly into conv1 (3x3 'same', C->C); both bias-free.
    w_eff = jnp.einsum('im,yxmo->yxio', params['w0'], params['w1'],
                       precision=HIGHEST)                        # (3, 3, Cin, C)
    # Banded conv weight: bb[kx, ih*Cin+ci, h*C+o] = w_eff[ih-h, kx, ci, o] inside the
    # 3-tap band (0 outside), so the conv is 3 plain matmuls on shifted padded rows.
    eyes = jnp.stack([jnp.eye(Hp, H, k=-ky, dtype=jnp.float32) for ky in range(3)])
    bb = jnp.einsum('yih,yxco->xicho', eyes, w_eff,
                    precision=HIGHEST).reshape(3, Hp * Cin, H * C)

    # Fused q|k|v projection as block-diagonal (per-row h) matrices so projecting the
    # W-major activation slab is a single lane-dense matmul, no in-kernel reshapes.
    def wproj(wq, wk, wv):
        return jnp.concatenate([_blockdiag(wq, H, pad_to=qk_w),
                                _blockdiag(wk, H, pad_to=qk_w),
                                _blockdiag(wv, H)], axis=1)      # (H*C, 2*qk_w + H*C)

    wproj_h = wproj(params['h_q'], params['h_k'], params['h_v'])
    wproj_w = wproj(params['w_q'], params['w_k'], params['w_v'])
    gammas = jnp.concatenate([params['h_gamma'], params['w_gamma']])   # (2,)

    # ----- input prep: NCHW -> W-major, zero-padded, lane-flattened -----
    xw = jnp.transpose(x_nchw, (0, 3, 2, 1))                     # (B, W, H, Cin)
    xw = jnp.pad(xw, ((0, 0), (1, 1), (1, 1), (0, 0)))           # (B, W+2, H+2, Cin)
    xw = xw.reshape(B, W + 2, Hp * Cin)

    kern = functools.partial(_aa_fused_kernel, W=W, qk_w=qk_w)
    out = pl.pallas_call(
        kern,
        out_shape=jax.ShapeDtypeStruct((B, W, H * C), jnp.float32),
        grid=(B,),
        in_specs=[
            pl.BlockSpec(memory_space=pltpu.MemorySpace.SMEM),             # gammas
            pl.BlockSpec((1, W + 2, Hp * Cin), lambda b: (b, 0, 0)),       # padded input
            pl.BlockSpec((3, Hp * Cin, H * C), lambda b: (0, 0, 0)),       # conv weight
            pl.BlockSpec((H * C, 2 * qk_w + H * C), lambda b: (0, 0)),     # Hattn proj
            pl.BlockSpec((H * C, 2 * qk_w + H * C), lambda b: (0, 0)),     # Wattn proj
        ],
        out_specs=pl.BlockSpec((1, W, H * C), lambda b: (b, 0, 0)),
        compiler_params=pltpu.CompilerParams(dimension_semantics=("parallel",)),
    )(gammas, xw, bb, wproj_h, wproj_w)

    # W-major (B, W, H, C) -> NCHW (B, C, H, W); kept outside the kernel so every
    # kernel store stays fully lane-dense (512 lanes).
    return jnp.transpose(out.reshape(B, W, H, C), (0, 3, 2, 1))


# ------------------------ pure-JAX reference (literal torch) ----------------------

def ref_forward(x_nchw, p):
    def conv1x1(x, w):                                           # w: (Cin, Cout)
        return jnp.einsum('bchw,co->bohw', x, w, precision=HIGHEST)

    def conv3x3(x, w):                                           # w: (3,3,Ci,Co) HWIO
        return lax.conv_general_dilated(
            x, jnp.transpose(w, (3, 2, 0, 1)), (1, 1), [(1, 1), (1, 1)],
            dimension_numbers=('NCHW', 'OIHW', 'NCHW'), precision=HIGHEST)

    def attn(x, wq, wk, wv, gamma, mode):
        # Mirrors torch self_attn literally: .view(b, -1, axis) on NCHW, softmax, bmm.
        B, C, H, W = x.shape
        axis = 1
        if 'h' in mode:
            axis *= H
        if 'w' in mode:
            axis *= W
        view = (B, -1, axis)
        pq = conv1x1(x, wq).reshape(view).transpose(0, 2, 1)
        pk = conv1x1(x, wk).reshape(view)
        att = jax.nn.softmax(jnp.matmul(pq, pk, precision=HIGHEST), axis=-1)
        pv = conv1x1(x, wv).reshape(view)
        out = jnp.matmul(pv, att.transpose(0, 2, 1), precision=HIGHEST)
        return gamma[0] * out.reshape(B, C, H, W) + x

    x = conv1x1(x_nchw, p['w0'])
    x = conv3x3(x, p['w1'])
    x = attn(x, p['h_q'], p['h_k'], p['h_v'], p['h_gamma'], 'h')
    x = attn(x, p['w_q'], p['w_k'], p['w_v'], p['w_gamma'], 'w')
    return x


# -------------------------------- params / main -----------------------------------

def init_params(key, cin, cout):
    c8 = cout // 8
    ks = jax.random.split(key, 8)

    def norm(k, shape, scale):
        return scale * jax.random.normal(k, shape, jnp.float32)

    # NOTE: torch initializes gamma = 0 (attention contributes nothing at init);
    # a deterministic nonzero gamma is used so the attention path is exercised.
    return dict(
        w0=norm(ks[0], (cin, cout), 0.3),
        w1=norm(ks[1], (3, 3, cout, cout), 0.1),
        h_q=norm(ks[2], (cout, c8), 0.1),
        h_k=norm(ks[3], (cout, c8), 0.1),
        h_v=norm(ks[4], (cout, cout), 0.2),
        h_gamma=jnp.array([0.5], jnp.float32),
        w_q=norm(ks[5], (cout, c8), 0.1),
        w_k=norm(ks[6], (cout, c8), 0.1),
        w_v=norm(ks[7], (cout, cout), 0.2),
        w_gamma=jnp.array([0.5], jnp.float32),
    )


if __name__ == "__main__":
    B, Cin, Cout, H, W = 2, 4, 32, 16, 16

    key = jax.random.PRNGKey(0)
    k_x, k_p = jax.random.split(key)
    x = jax.random.normal(k_x, (B, Cin, H, W), jnp.float32)      # NCHW, like PyTorch
    params = init_params(k_p, Cin, Cout)

    fwd = jax.jit(aa_kernel_forward)
    out = jax.block_until_ready(fwd(x, params))
    assert out.shape == (B, Cout, H, W), out.shape

    ref = ref_forward(x, params)
    max_err = float(jnp.max(jnp.abs(out - ref)))
    # Error budget: approx-reciprocal softmax denominators (~2.4e-4 rel) plus headroom
    # for environments where the in-kernel f32 dots execute at the TPU *default*
    # matmul precision (bf16 MXU operands, e.g. interpret mode) against the
    # HIGHEST-precision reference (~1e-2 level accumulation differences).
    assert jnp.allclose(out, ref, atol=3e-2, rtol=3e-2), f"max err {max_err}"

    print("KERNEL_OK")
</pallas_src>

<mosaic_0001>
module attributes {stable_mosaic.version = 11 : i64} {
  func.func @_aa_fused_kernel(%arg0: i32, %arg1: memref<2xf32, #tpu.memory_space<smem>>, %arg2: memref<1x18x72xf32, #tpu.memory_space<vmem>>, %arg3: memref<3x72x512xf32, #tpu.memory_space<vmem>>, %arg4: memref<512x768xf32, #tpu.memory_space<vmem>>, %arg5: memref<512x768xf32, #tpu.memory_space<vmem>>, %arg6: memref<1x16x512xf32, #tpu.memory_space<vmem>>) attributes {dimension_semantics = [#tpu.dimension_semantics<parallel>], iteration_bounds = array<i64: 2>, scalar_prefetch = 0 : i64, scratch_operands = 0 : i64, tpu.core_type = #tpu.core_type<tc>, window_params = [{transform_indices = @transform_0, window_bounds = array<i64: 2>}, {transform_indices = @transform_1, window_bounds = array<i64: 1, 18, 72>}, {pipeline_mode = #tpu.pipeline_mode<synchronous>, transform_indices = @transform_2, window_bounds = array<i64: 3, 72, 512>}, {pipeline_mode = #tpu.pipeline_mode<synchronous>, transform_indices = @transform_3, window_bounds = array<i64: 512, 768>}, {pipeline_mode = #tpu.pipeline_mode<synchronous>, transform_indices = @transform_4, window_bounds = array<i64: 512, 768>}, {transform_indices = @transform_5, window_bounds = array<i64: 1, 16, 512>}]} {
    %c0 = arith.constant 0 : index
    %c0_0 = arith.constant 0 : index
    %c0_1 = arith.constant 0 : index
    %0 = vector.load %arg2[%c0, %c0_0, %c0_1] : memref<1x18x72xf32, #tpu.memory_space<vmem>>, vector<1x18x72xf32>
    %1 = vector.shape_cast %0 : vector<1x18x72xf32> to vector<18x72xf32>
    %2 = vector.extract_strided_slice %1 {offsets = [0, 0], sizes = [16, 72], strides = [1, 1]} : vector<18x72xf32> to vector<16x72xf32>
    %c0_2 = arith.constant 0 : index
    %c0_3 = arith.constant 0 : index
    %c0_4 = arith.constant 0 : index
    %3 = vector.load %arg3[%c0_2, %c0_3, %c0_4] : memref<3x72x512xf32, #tpu.memory_space<vmem>>, vector<1x72x512xf32>
    %4 = vector.shape_cast %3 : vector<1x72x512xf32> to vector<72x512xf32>
    %cst = arith.constant dense<0.000000e+00> : vector<16x512xf32>
    %5 = tpu.matmul %2, %4, %cst {dimension_numbers = #tpu.dot_dimension_numbers<[1], [0], [0], [1], [0, 0, 1, 1], [], []>} : vector<16x72xf32>, vector<72x512xf32>, vector<16x512xf32> -> vector<16x512xf32>
    %6 = vector.extract_strided_slice %1 {offsets = [1, 0], sizes = [16, 72], strides = [1, 1]} : vector<18x72xf32> to vector<16x72xf32>
    %c1 = arith.constant 1 : index
    %c0_5 = arith.constant 0 : index
    %c0_6 = arith.constant 0 : index
    %7 = vector.load %arg3[%c1, %c0_5, %c0_6] : memref<3x72x512xf32, #tpu.memory_space<vmem>>, vector<1x72x512xf32>
    %8 = vector.shape_cast %7 : vector<1x72x512xf32> to vector<72x512xf32>
    %cst_7 = arith.constant dense<0.000000e+00> : vector<16x512xf32>
    %9 = tpu.matmul %6, %8, %cst_7 {dimension_numbers = #tpu.dot_dimension_numbers<[1], [0], [0], [1], [0, 0, 1, 1], [], []>} : vector<16x72xf32>, vector<72x512xf32>, vector<16x512xf32> -> vector<16x512xf32>
    %10 = arith.addf %5, %9 : vector<16x512xf32>
    %11 = vector.extract_strided_slice %1 {offsets = [2, 0], sizes = [16, 72], strides = [1, 1]} : vector<18x72xf32> to vector<16x72xf32>
    %c2 = arith.constant 2 : index
    %c0_8 = arith.constant 0 : index
    %c0_9 = arith.constant 0 : index
    %12 = vector.load %arg3[%c2, %c0_8, %c0_9] : memref<3x72x512xf32, #tpu.memory_space<vmem>>, vector<1x72x512xf32>
    %13 = vector.shape_cast %12 : vector<1x72x512xf32> to vector<72x512xf32>
    %cst_10 = arith.constant dense<0.000000e+00> : vector<16x512xf32>
    %14 = tpu.matmul %11, %13, %cst_10 {dimension_numbers = #tpu.dot_dimension_numbers<[1], [0], [0], [1], [0, 0, 1, 1], [], []>} : vector<16x72xf32>, vector<72x512xf32>, vector<16x512xf32> -> vector<16x512xf32>
    %15 = arith.addf %10, %14 : vector<16x512xf32>
    %c0_11 = arith.constant 0 : index
    %16 = memref.load %arg1[%c0_11] : memref<2xf32, #tpu.memory_space<smem>>
    %c0_12 = arith.constant 0 : index
    %c0_13 = arith.constant 0 : index
    %17 = vector.load %arg4[%c0_12, %c0_13] : memref<512x768xf32, #tpu.memory_space<vmem>>, vector<512x768xf32>
    %cst_14 = arith.constant dense<0.000000e+00> : vector<16x768xf32>
    %18 = tpu.matmul %15, %17, %cst_14 {dimension_numbers = #tpu.dot_dimension_numbers<[1], [0], [0], [1], [0, 0, 1, 1], [], []>} : vector<16x512xf32>, vector<512x768xf32>, vector<16x768xf32> -> vector<16x768xf32>
    %19 = vector.extract_strided_slice %18 {offsets = [0, 0], sizes = [16, 128], strides = [1, 1]} : vector<16x768xf32> to vector<16x128xf32>
    %20 = vector.extract_strided_slice %18 {offsets = [0, 128], sizes = [16, 128], strides = [1, 1]} : vector<16x768xf32> to vector<16x128xf32>
    %21 = vector.extract_strided_slice %18 {offsets = [0, 256], sizes = [16, 512], strides = [1, 1]} : vector<16x768xf32> to vector<16x512xf32>
    %cst_15 = arith.constant dense<0.000000e+00> : vector<16x16xf32>
    %22 = tpu.matmul %19, %20, %cst_15 {dimension_numbers = #tpu.dot_dimension_numbers<[1], [1], [0], [0], [0, 0, 1, 0], [], []>} : vector<16x128xf32>, vector<16x128xf32>, vector<16x16xf32> -> vector<16x16xf32>
    %cst_16 = arith.constant dense<0xFF800000> : vector<16xf32>
    %23 = vector.multi_reduction <maximumf>, %22, %cst_16 [1] : vector<16x16xf32> to vector<16xf32>
    %24 = vector.shape_cast %23 : vector<16xf32> to vector<16x1xf32>
    %25 = vector.broadcast %24 : vector<16x1xf32> to vector<16x16xf32>
    %26 = arith.subf %22, %25 : vector<16x16xf32>
    %27 = math.exp %26 : vector<16x16xf32>
    %cst_17 = arith.constant dense<0.000000e+00> : vector<16xf32>
    %28 = vector.multi_reduction <add>, %27, %cst_17 [1] : vector<16x16xf32> to vector<16xf32>
    %29 = vector.shape_cast %28 : vector<16xf32> to vector<16x1xf32>
    %30 = tpu.reciprocal %29 {approx = true} : vector<16x1xf32> -> vector<16x1xf32>
    %31 = vector.broadcast %30 : vector<16x1xf32> to vector<16x16xf32>
    %32 = arith.mulf %27, %31 : vector<16x16xf32>
    %cst_18 = arith.constant dense<0.000000e+00> : vector<16x512xf32>
    %33 = tpu.matmul %32, %21, %cst_18 {dimension_numbers = #tpu.dot_dimension_numbers<[1], [0], [0], [1], [0, 0, 1, 1], [], []>} : vector<16x16xf32>, vector<16x512xf32>, vector<16x512xf32> -> vector<16x512xf32>
    %34 = vector.broadcast %16 : f32 to vector<16x512xf32>
    %35 = arith.mulf %34, %33 : vector<16x512xf32>
    %36 = arith.addf %35, %15 : vector<16x512xf32>
    %c1_19 = arith.constant 1 : index
    %37 = memref.load %arg1[%c1_19] : memref<2xf32, #tpu.memory_space<smem>>
    %c0_20 = arith.constant 0 : index
    %c0_21 = arith.constant 0 : index
    %38 = vector.load %arg5[%c0_20, %c0_21] : memref<512x768xf32, #tpu.memory_space<vmem>>, vector<512x768xf32>
    %cst_22 = arith.constant dense<0.000000e+00> : vector<16x768xf32>
    %39 = tpu.matmul %36, %38, %cst_22 {dimension_numbers = #tpu.dot_dimension_numbers<[1], [0], [0], [1], [0, 0, 1, 1], [], []>} : vector<16x512xf32>, vector<512x768xf32>, vector<16x768xf32> -> vector<16x768xf32>
    %40 = vector.extract_strided_slice %39 {offsets = [0, 0], sizes = [16, 128], strides = [1, 1]} : vector<16x768xf32> to vector<16x128xf32>
    %41 = vector.extract_strided_slice %39 {offsets = [0, 128], sizes = [16, 128], strides = [1, 1]} : vector<16x768xf32> to vector<16x128xf32>
    %42 = vector.extract_strided_slice %39 {offsets = [0, 256], sizes = [16, 512], strides = [1, 1]} : vector<16x768xf32> to vector<16x512xf32>
    %cst_23 = arith.constant dense<0.000000e+00> : vector<16x16xf32>
    %43 = tpu.matmul %40, %41, %cst_23 {dimension_numbers = #tpu.dot_dimension_numbers<[1], [1], [0], [0], [0, 0, 1, 0], [], []>} : vector<16x128xf32>, vector<16x128xf32>, vector<16x16xf32> -> vector<16x16xf32>
    %cst_24 = arith.constant dense<0xFF800000> : vector<16xf32>
    %44 = vector.multi_reduction <maximumf>, %43, %cst_24 [1] : vector<16x16xf32> to vector<16xf32>
    %45 = vector.shape_cast %44 : vector<16xf32> to vector<16x1xf32>
    %46 = vector.broadcast %45 : vector<16x1xf32> to vector<16x16xf32>
    %47 = arith.subf %43, %46 : vector<16x16xf32>
    %48 = math.exp %47 : vector<16x16xf32>
    %cst_25 = arith.constant dense<0.000000e+00> : vector<16xf32>
    %49 = vector.multi_reduction <add>, %48, %cst_25 [1] : vector<16x16xf32> to vector<16xf32>
    %50 = vector.shape_cast %49 : vector<16xf32> to vector<16x1xf32>
    %51 = tpu.reciprocal %50 {approx = true} : vector<16x1xf32> -> vector<16x1xf32>
    %52 = vector.broadcast %51 : vector<16x1xf32> to vector<16x16xf32>
    %53 = arith.mulf %48, %52 : vector<16x16xf32>
    %cst_26 = arith.constant dense<0.000000e+00> : vector<16x512xf32>
    %54 = tpu.matmul %53, %42, %cst_26 {dimension_numbers = #tpu.dot_dimension_numbers<[1], [0], [0], [1], [0, 0, 1, 1], [], []>} : vector<16x16xf32>, vector<16x512xf32>, vector<16x512xf32> -> vector<16x512xf32>
    %55 = vector.broadcast %37 : f32 to vector<16x512xf32>
    %56 = arith.mulf %55, %54 : vector<16x512xf32>
    %57 = arith.addf %56, %36 : vector<16x512xf32>
    %c0_27 = arith.constant 0 : index
    %c0_28 = arith.constant 0 : index
    %c0_29 = arith.constant 0 : index
    %58 = vector.load %arg6[%c0_27, %c0_28, %c0_29] : memref<1x16x512xf32, #tpu.memory_space<vmem>>, vector<1x16x512xf32>
    %59 = vector.shape_cast %58 : vector<1x16x512xf32> to vector<16x512xf32>
    %60 = vector.shape_cast %57 : vector<16x512xf32> to vector<1x16x512xf32>
    tpu.vector_store %arg6[%c0_27, %c0_28, %c0_29], %60 {strides = array<i32>} : memref<1x16x512xf32, #tpu.memory_space<vmem>>, vector<1x16x512xf32>,
    return
  }
  func.func @transform_0(%arg0: i32) -> i32 {
    %c0_i32 = arith.constant 0 : i32
    %c0_i32_0 = arith.constant 0 : i32
    return %c0_i32 : i32
  }
  func.func @transform_1(%arg0: i32) -> (i32, i32, i32) {
    %c0_i32 = arith.constant 0 : i32
    %c0_i32_0 = arith.constant 0 : i32
    %c0_i32_1 = arith.constant 0 : i32
    return %arg0, %c0_i32, %c0_i32_0 : i32, i32, i32
  }
  func.func @transform_2(%arg0: i32) -> (i32, i32, i32) {
    %c0_i32 = arith.constant 0 : i32
    %c0_i32_0 = arith.constant 0 : i32
    %c0_i32_1 = arith.constant 0 : i32
    %c0_i32_2 = arith.constant 0 : i32
    return %c0_i32, %c0_i32_0, %c0_i32_1 : i32, i32, i32
  }
  func.func @transform_3(%arg0: i32) -> (i32, i32) {
    %c0_i32 = arith.constant 0 : i32
    %c0_i32_0 = arith.constant 0 : i32
    %c0_i32_1 = arith.constant 0 : i32
    return %c0_i32, %c0_i32_0 : i32, i32
  }
  func.func @transform_4(%arg0: i32) -> (i32, i32) {
    %c0_i32 = arith.constant 0 : i32
    %c0_i32_0 = arith.constant 0 : i32
    %c0_i32_1 = arith.constant 0 : i32
    return %c0_i32, %c0_i32_0 : i32, i32
  }
  func.func @transform_5(%arg0: i32) -> (i32, i32, i32) {
    %c0_i32 = arith.constant 0 : i32
    %c0_i32_0 = arith.constant 0 : i32
    %c0_i32_1 = arith.constant 0 : i32
    return %arg0, %c0_i32, %c0_i32_0 : i32, i32, i32
  }
}

</mosaic_0001>

<bundles_post_ra>
// kernel: aa_kernel_forward.1
= control target key start
LH: loop header
LB: loop body
LE: loop exit
PB: predicated region body
PF: predicated region fallthrough
CT: control target
= control target key end

     0   :  { %10 = vsyncpa [#allocation3], 0  ;;  %s4320_s18 = smov 0   ;;  %s7199_s0 = inlined_call_operand.vmem [shape: f32[2], index: 0, kind: input, shape index: {}]   ;;  %s7200_s1 = inlined_call_operand.vmem [shape: f32[2,18,72], index: 1, kind: input, shape index: {}]   ;;  %s7201_s2 = inlined_call_operand.vmem [shape: f32[3,72,512], index: 2, kind: input, shape index: {}]   ;;  %s7202_s3 = inlined_call_operand.vmem [shape: f32[512,768], index: 3, kind: input, shape index: {}]   ;;  %s7203_s4 = inlined_call_operand.vmem [shape: f32[512,768], index: 4, kind: input, shape index: {}]   ;;  %s7204_s5 = inlined_call_operand.vmem [shape: f32[2,16,512], index: 5, kind: output, shape index: {}]  }
   0x1 LB: > { %s4326_s19 = sadd.s32 4294967295, %s4286_s18   ;;  %p3170_p0 = scmp.ge.s32.totalorder %s4286_s18, 1  ;;  %s4286_s18 = sphi %s4320_s18, %s16_s18  }
   0x2   : > { %p157_p1 = scmp.lt.s32.totalorder %s4286_s18, 3  ;;  %s170_s22 = sshll.u32 %s7199_s0, 4  ;;  %s171_s22 = int_to_ptr.vmem [resolvable:$true] %s170_s22 }
   0x3   : > { %p4233_p3 = scmp.eq.s32.totalorder %s4326_s19, 0  ;;  %s4261_s24 = scalar_lea.vmem %s171_s22, 16 }
   0x4   : > { %p4333_p2 = pnand %p3170_p0, %p157_p1  ;;  %p4262_p6 = scmp.ne.s32.totalorder %s171_s22, %s4261_s24 }
   0x5   : > { %p4269_p10 = scmp.lt.s32.totalorder %s171_s22, %s171_s22  ;;  %p4270_p11 = scmp.lt.s32.totalorder %s4261_s24, %s4261_s24 }
   0x6   : > { %p4229_p4 = pneg %p4333_p2 }
   0x7   : > { %p4271_p12 = por %p4270_p11, %p4269_p10 }
   0x8   : > { %p4230_p5 = pnand %p4233_p3, %p4229_p4 }
   0xa   : > { %p4263_p7 = pneg %p4230_p5 }
   0xc   : > { %p4264_p8 = pnand %p4263_p7, %p4262_p6 }
   0xe   : > { %p4265_p9 = pneg %p4264_p8 }
  0x10   : > { %p4272_p13 = pnand %p4271_p12, %p4265_p9 }
  0x12   : > { %4275 = shalt.err (!%p4272_p13)
}
  0x13   : > { %s4288_s25 = smov [#allocation2]   ;;  %200 = sbr.rel (%p4333_p2) target bundleno = 2385 (0x951), region = 40 }
  0x14   : > { %4232 = dma.vmem_to_smem (!%p4230_p5), %s171_s22, 16, %s4288_s25, [#allocation3]  }
  0x1a   : > { %4281 = dma.done.wait (%p4233_p3), [#allocation3], 16  }
  0x1b   : > { %4283 = vsyncadd (%p4233_p3), [#allocation3], 4294967280 }
  0x1c   : > { %206 = sfence }
  0x1d   : > { %v3179_v0 = vld [vmem:[%s7201_s2 + $0x128] sm:$0xff]  ;;  %v3178_v2 = vld [vmem:[%s7201_s2 + $0x120] sm:$0xff]  ;;  %p229_p0 = scmp.lt.s32.totalorder %s4326_s19, 1  ;;  %v4289_v7 = vmov 0.0   ;;  %v3181_v25 = vld [vmem:[%s7201_s2 + $0x138] sm:$0xff]  ;;  %vm318_vm0 = vcmask 1046528  }
  0x1e   : > { %v3183_v1 = vld [vmem:[%s7201_s2 + $0x148] sm:$0xff]  ;;  %v3182_v4 = vld [vmem:[%s7201_s2 + $0x140] sm:$0xff]  ;;  %393 = vmatprep.mubr.f32.mxu0 %v4289_v7  ;;  %470 = vmatprep.mubr.f32.mxu1 %v4289_v7  ;;  %v3185_v26 = vld [vmem:[%s7201_s2 + $0x158] sm:$0xff]  ;;  %vm324_vm1 = vcmask 588800   ;;  %vm678_vm2 = vcmask 1045504   ;;  %vm1772_vm3 = vcmask 130048  }
  0x1f   : > { %v3296_v3 = vpack.c.bf16 %v3183_v1, %v3179_v0  ;;  %v3187_v5 = vld [vmem:[%s7201_s2 + $0x168] sm:$0xff]  ;;  %v3298_v8 = vpack.c.bf16 %v3182_v4, %v3178_v2  ;;  %v3186_v10 = vld [vmem:[%s7201_s2 + $0x160] sm:$0xff]  ;;  %s7207_s19 = smov (!%p229_p0, %s4326_s19), 1  ;;  %v3312_v28 = vpack.c.bf16 %v3185_v26, %v3181_v25  ;;  %v3180_v29 = vld [vmem:[%s7201_s2 + $0x130] sm:$0xff]  ;;  %s850_s12 = sld [smem:[#allocation2]] }
  0x20   : > { %v3191_v6 = vld [vmem:[%s7201_s2 + $0x188] sm:$0xff]  ;;  %v3190_v11 = vld [vmem:[%s7201_s2 + $0x180] sm:$0xff]  ;;  %s4224_s23 = smul.u32 24, %s7207_s19  ;;  %v3184_v30 = vld [vmem:[%s7201_s2 + $0x150] sm:$0xff]  ;;  %s3266_s11 = sld [smem:[#allocation2 + $0x1]] }
  0x21   : > { %v3300_v9 = vpack.c.bf16 %v3191_v6, %v3187_v5  ;;  %v3195_v12 = vld [vmem:[%s7201_s2 + $0x1a8] sm:$0xff]  ;;  %3297 = vmatprep.subr.bf16.mxu0 %v3296_v3  ;;  %v3302_v14 = vpack.c.bf16 %v3190_v11, %v3186_v10  ;;  %v3194_v16 = vld [vmem:[%s7201_s2 + $0x1a0] sm:$0xff]  ;;  %v3314_v35 = vpack.c.bf16 %v3184_v30, %v3180_v29  ;;  %v3189_v36 = vld [vmem:[%s7201_s2 + $0x178] sm:$0xff]  ;;  %3313 = vmatprep.subr.bf16.mxu1 %v3312_v28 }
  0x22   : > { %v3199_v13 = vld [vmem:[%s7201_s2 + $0x1c8] sm:$0xff]  ;;  %3299 = vmatpush1.bf16.msra.mxu0 %v3298_v8  ;;  %v3198_v17 = vld [vmem:[%s7201_s2 + $0x1c0] sm:$0xff]  ;;  %s4400_s9 = scalar_lea.vmem %s7200_s1, %s4224_s23  ;;  %v3193_v39 = vld [vmem:[%s7201_s2 + $0x198] sm:$0xff] }
  0x23   : > { %3301 = vmatprep.subr.bf16.mxu0 %v3300_v9  ;;  %v3304_v15 = vpack.c.bf16 %v3199_v13, %v3195_v12  ;;  %v3203_v18 = vld [vmem:[%s7201_s2 + $0x1e8] sm:$0xff]  ;;  %v3306_v20 = vpack.c.bf16 %v3198_v17, %v3194_v16  ;;  %v3202_v22 = vld [vmem:[%s7201_s2 + $0x1e0] sm:$0xff]  ;;  %3315 = vmatpush1.bf16.msra.mxu1 %v3314_v35  ;;  %v3316_v43 = vpack.c.bf16 %v3193_v39, %v3189_v36  ;;  %v3188_v44 = vld [vmem:[%s7201_s2 + $0x170] sm:$0xff] }
  0x24   : > { %v3207_v19 = vld [vmem:[%s7201_s2 + $0x208] sm:$0xff]  ;;  %v3206_v23 = vld [vmem:[%s7201_s2 + $0x200] sm:$0xff]  ;;  %v3192_v45 = vld [vmem:[%s7201_s2 + $0x190] sm:$0xff] }
  0x25   : > { %v3308_v21 = vpack.c.bf16 %v3207_v19, %v3203_v18  ;;  %v4409_v24 = vld [vmem:[%s4400_s9] sm:$0xff]  ;;  %v4418_v27 = vld [vmem:[%s4400_s9 + $0x8] sm:$0xff]  ;;  %v3310_v31 = vpack.c.bf16 %v3206_v23, %v3202_v22  ;;  %v3318_v46 = vpack.c.bf16 %v3192_v45, %v3188_v44  ;;  %v4459_v47 = vld [vmem:[%s4400_s9 + $0x10] sm:$0x3]  ;;  %3317 = vmatprep.subr.bf16.mxu1 %v3316_v43 }
  0x26   : > { %3303 = vmatpush1.bf16.msra.mxu0 %v3302_v14  ;;  %v3211_v32 = vld [vmem:[%s7201_s2 + $0x228] sm:$0xff]  ;;  %v242_v37 = vld [vmem:[%s7201_s2] sm:$0xff]  ;;  %v319_v40 = vrot.slane %v4409_v24, 1  ;;  %v320_v41 = vrot.slane %v4418_v27, 1  ;;  %v3197_v48 = vld [vmem:[%s7201_s2 + $0x1b8] sm:$0xff]  ;;  %v322_v58 = vrot.slane %v4459_v47, 1 }
  0x27   : > { %3305 = vmatprep.subr.bf16.mxu0 %v3304_v15  ;;  %v243_v33 = vld [vmem:[%s7201_s2 + $0x8] sm:$0xff]  ;;  %v246_v38 = vld [vmem:[%s7201_s2 + $0x20] sm:$0xff]  ;;  %v3201_v49 = vld [vmem:[%s7201_s2 + $0x1d8] sm:$0xff]  ;;  %3319 = vmatpush1.bf16.msra.mxu1 %v3318_v46 }
  0x28   : > { %v247_v34 = vld [vmem:[%s7201_s2 + $0x28] sm:$0xff]  ;;  %v3320_v51 = vpack.c.bf16 %v3201_v49, %v3197_v48  ;;  %v3196_v52 = vld [vmem:[%s7201_s2 + $0x1b0] sm:$0xff]  ;;  %v3210_v54 = vld [vmem:[%s7201_s2 + $0x220] sm:$0xff]  ;;  %v4480_v56 = vsel %vm318_vm0, %v319_v40, %v320_v41  ;;  %v3330_v57 = vpack.c.bf16 %v246_v38, %v242_v37  ;;  %v323_v8 = vsel %vm318_vm0, %v320_v41, %v322_v58 }
  0x29   : > { %v251_v42 = vld [vmem:[%s7201_s2 + $0x48] sm:$0xff]  ;;  %v3200_v53 = vld [vmem:[%s7201_s2 + $0x1d0] sm:$0xff]  ;;  %v3328_v55 = vpack.c.bf16 %v247_v34, %v243_v33  ;;  %v3205_v59 = vld [vmem:[%s7201_s2 + $0x1f8] sm:$0xff] }
  0x2a   : > { %3307 = vmatpush1.bf16.msra.mxu0 %v3306_v20  ;;  %v255_v50 = vld [vmem:[%s7201_s2 + $0x68] sm:$0xff]  ;;  %v3209_v60 = vld [vmem:[%s7201_s2 + $0x218] sm:$0xff]  ;;  %v250_v62 = vld [vmem:[%s7201_s2 + $0x40] sm:$0xff]  ;;  %3321 = vmatprep.subr.bf16.mxu1 %v3320_v51  ;;  %v3322_v1 = vpack.c.bf16 %v3200_v53, %v3196_v52 }
  0x2b   : > { %3309 = vmatprep.subr.bf16.mxu0 %v3308_v21  ;;  %v3332_v61 = vpack.c.bf16 %v255_v50, %v251_v42  ;;  %v254_v63 = vld [vmem:[%s7201_s2 + $0x60] sm:$0xff]  ;;  %v259_v0 = vld [vmem:[%s7201_s2 + $0x88] sm:$0xff]  ;;  %v3324_v3 = vpack.c.bf16 %v3209_v60, %v3205_v59  ;;  %v3204_v4 = vld [vmem:[%s7201_s2 + $0x1f0] sm:$0xff] }
  0x2c   : > { %v263_v2 = vld [vmem:[%s7201_s2 + $0xa8] sm:$0xff]  ;;  %v3208_v5 = vld [vmem:[%s7201_s2 + $0x210] sm:$0xff]  ;;  %v3334_v6 = vpack.c.bf16 %v254_v63, %v250_v62  ;;  %v258_v10 = vld [vmem:[%s7201_s2 + $0x80] sm:$0xff]  ;;  %3323 = vmatpush1.bf16.msra.mxu1 %v3322_v1 }
  0x2d   : > { %v3336_v9 = vpack.c.bf16 %v263_v2, %v259_v0  ;;  %v262_v11 = vld [vmem:[%s7201_s2 + $0xa0] sm:$0xff]  ;;  %v3326_v12 = vpack.c.bf16 %v3208_v5, %v3204_v4  ;;  %v267_v13 = vld [vmem:[%s7201_s2 + $0xc8] sm:$0xff]  ;;  %3325 = vmatprep.subr.bf16.mxu1 %v3324_v3  ;;  %v3213_v15 = vld [vmem:[%s7201_s2 + $0x238] sm:$0xff] }
  0x2e   : > { %3311 = vmatpush1.bf16.msra.mxu0 %v3310_v31  ;;  %v271_v14 = vld [vmem:[%s7201_s2 + $0xe8] sm:$0xff]  ;;  %v245_v16 = vld [vmem:[%s7201_s2 + $0x18] sm:$0xff]  ;;  %v3338_v18 = vpack.c.bf16 %v262_v11, %v258_v10  ;;  %v266_v19 = vld [vmem:[%s7201_s2 + $0xc0] sm:$0xff] }
  0x2f   : > { %345 = vmatprep.subr.mxu0 %v3211_v32  ;;  %v249_v17 = vld [vmem:[%s7201_s2 + $0x38] sm:$0xff]  ;;  %v244_v20 = vld [vmem:[%s7201_s2 + $0x10] sm:$0xff]  ;;  %v3340_v22 = vpack.c.bf16 %v271_v14, %v267_v13  ;;  %v270_v23 = vld [vmem:[%s7201_s2 + $0xe0] sm:$0xff] }
  0x30   : > { %v248_v21 = vld [vmem:[%s7201_s2 + $0x30] sm:$0xff]  ;;  %3327 = vmatpush1.bf16.msra.mxu1 %v3326_v12  ;;  %v253_v25 = vld [vmem:[%s7201_s2 + $0x58] sm:$0xff]  ;;  %v3344_v29 = vpack.c.bf16 %v249_v17, %v245_v16  ;;  %v3342_v31 = vpack.c.bf16 %v270_v23, %v266_v19  ;;  %v275_v37 = vld [vmem:[%s7201_s2 + $0x108] sm:$0xff] }
  0x31   : > { %v257_v26 = vld [vmem:[%s7201_s2 + $0x78] sm:$0xff]  ;;  %422 = vmatprep.subr.mxu1 %v3213_v15  ;;  %v3212_v28 = vld [vmem:[%s7201_s2 + $0x230] sm:$0xff]  ;;  %v3346_v30 = vpack.c.bf16 %v248_v21, %v244_v20  ;;  %v3223_v38 = vld [vmem:[%s7201_s2 + $0x248] sm:$0xff] }
  0x32   : > { %346 = vmatpush1.msra.mxu0 %v3210_v54  ;;  %v3348_v32 = vpack.c.bf16 %v257_v26, %v253_v25  ;;  %v252_v33 = vld [vmem:[%s7201_s2 + $0x50] sm:$0xff]  ;;  %v261_v35 = vld [vmem:[%s7201_s2 + $0x98] sm:$0xff]  ;;  %v3227_v39 = vld [vmem:[%s7201_s2 + $0x268] sm:$0xff] }
  0x33   : > { %3329 = vmatprep.subr.bf16.mxu0 %v3328_v55  ;;  %3214 = vmatmul.mubr.msk.f32.vlgmr.msra.gmra.mrb[0].mxu0 %vm324_vm1, %v4480_v56  ;;  %v256_v34 = vld [vmem:[%s7201_s2 + $0x70] sm:$0xff]  ;;  %v265_v36 = vld [vmem:[%s7201_s2 + $0xb8] sm:$0xff]  ;;  %v3222_v40 = vld [vmem:[%s7201_s2 + $0x240] sm:$0xff]  ;;  %v3360_v50 = vpack.c.bf16 %v3227_v39, %v3223_v38 }
  0x34   : > { %3331 = vmatpush1.bf16.msra.mxu0 %v3330_v57  ;;  %399 = vmatprep.mubr.f32.mxu0 %v4289_v7  ;;  %v3226_v41 = vld [vmem:[%s7201_s2 + $0x260] sm:$0xff]  ;;  %v3231_v42 = vld [vmem:[%s7201_s2 + $0x288] sm:$0xff]  ;;  %v3350_v43 = vpack.c.bf16 %v256_v34, %v252_v33  ;;  %v3352_v45 = vpack.c.bf16 %v265_v36, %v261_v35  ;;  %v260_v46 = vld [vmem:[%s7201_s2 + $0x90] sm:$0xff] }
  0x35   : > { %3333 = vmatprep.subr.bf16.mxu0 %v3332_v61  ;;  %423 = vmatpush1.msra.mxu1 %v3212_v28  ;;  %v3235_v44 = vld [vmem:[%s7201_s2 + $0x2a8] sm:$0xff]  ;;  %v264_v48 = vld [vmem:[%s7201_s2 + $0xb0] sm:$0xff]  ;;  %v274_v49 = vld [vmem:[%s7201_s2 + $0x100] sm:$0xff]  ;;  %v3362_v53 = vpack.c.bf16 %v3226_v41, %v3222_v40 }
  0x36   : > { %3345 = vmatprep.subr.bf16.mxu1 %v3344_v29  ;;  %3216 = vmatmul.mubr.msk.f32.vlgmr.msra.gmra.mrb[0].mxu1 %vm324_vm1, %v4480_v56  ;;  %v269_v51 = vld [vmem:[%s7201_s2 + $0xd8] sm:$0xff]  ;;  %v3364_v54 = vpack.c.bf16 %v3235_v44, %v3231_v42  ;;  %v3230_v55 = vld [vmem:[%s7201_s2 + $0x280] sm:$0xff]  ;;  %v3239_v57 = vld [vmem:[%s7201_s2 + $0x2c8] sm:$0xff]  ;;  %v3354_v58 = vpack.c.bf16 %v264_v48, %v260_v46  ;;  %v682_v46 = vrot.slane %v4459_v47, 2 }
  0x37   : > { %3215 = vmatmul.mubr.msk.f32.gmra.mrb[2].mxu0 %vm324_vm1, %v323_v8  ;;  %3347 = vmatpush1.bf16.msra.mxu1 %v3346_v30  ;;  %v273_v52 = vld [vmem:[%s7201_s2 + $0xf8] sm:$0xff]  ;;  %v3234_v56 = vld [vmem:[%s7201_s2 + $0x2a0] sm:$0xff]  ;;  %v3243_v59 = vld [vmem:[%s7201_s2 + $0x2e8] sm:$0xff]  ;;  %v679_v30 = vrot.slane %v4409_v24, 2 }
  0x38   : > { %3335 = vmatpush1.bf16.msra.mxu0 %v3334_v6  ;;  %551 = vmatprep.mubr.f32.mxu0 %v4289_v7  ;;  %v3356_v60 = vpack.c.bf16 %v273_v52, %v269_v51  ;;  %v268_v61 = vld [vmem:[%s7201_s2 + $0xd0] sm:$0xff]  ;;  %v3366_v63 = vpack.c.bf16 %v3234_v56, %v3230_v55  ;;  %v3368_v0 = vpack.c.bf16 %v3243_v59, %v3239_v57  ;;  %v3238_v1 = vld [vmem:[%s7201_s2 + $0x2c0] sm:$0xff]  ;;  %v3247_v4 = vld [vmem:[%s7201_s2 + $0x308] sm:$0xff] }
  0x39   : > { %3337 = vmatprep.subr.bf16.mxu0 %v3336_v9  ;;  %476 = vmatprep.mubr.f32.mxu1 %v4289_v7  ;;  %v272_v62 = vld [vmem:[%s7201_s2 + $0xf0] sm:$0xff]  ;;  %v3242_v2 = vld [vmem:[%s7201_s2 + $0x2e0] sm:$0xff]  ;;  %v3251_v5 = vld [vmem:[%s7201_s2 + $0x328] sm:$0xff] }
  0x3a   : > { %3349 = vmatprep.subr.bf16.mxu1 %v3348_v32  ;;  %3217 = vmatmul.mubr.msk.f32.gmra.mrb[2].mxu1 %vm324_vm1, %v323_v8  ;;  %v3358_v3 = vpack.c.bf16 %v272_v62, %v268_v61  ;;  %v277_v6 = vld [vmem:[%s7201_s2 + $0x118] sm:$0xff]  ;;  %v3370_v10 = vpack.c.bf16 %v3242_v2, %v3238_v1  ;;  %v3246_v11 = vld [vmem:[%s7201_s2 + $0x300] sm:$0xff]  ;;  %v3224_v12 = vld [vmem:[%s7201_s2 + $0x250] sm:$0xff]  ;;  %v3372_v14 = vpack.c.bf16 %v3251_v5, %v3247_v4 }
  0x3b   : > { %3351 = vmatpush1.bf16.msra.mxu1 %v3350_v43  ;;  %628 = vmatprep.mubr.f32.mxu1 %v4289_v7  ;;  %v3225_v8 = vld [vmem:[%s7201_s2 + $0x258] sm:$0xff]  ;;  %v3228_v13 = vld [vmem:[%s7201_s2 + $0x270] sm:$0xff]  ;;  %v3250_v15 = vld [vmem:[%s7201_s2 + $0x320] sm:$0xff] }
  0x3c   : > { %3339 = vmatpush1.bf16.msra.mxu0 %v3338_v18  ;;  %3353 = vmatprep.subr.bf16.mxu1 %v3352_v45  ;;  %v3229_v9 = vld [vmem:[%s7201_s2 + $0x278] sm:$0xff]  ;;  %v276_v18 = vld [vmem:[%s7201_s2 + $0x110] sm:$0xff]  ;;  %v3378_v20 = vpack.c.bf16 %v3228_v13, %v3224_v12  ;;  %v3374_v21 = vpack.c.bf16 %v3250_v15, %v3246_v11  ;;  %v3255_v29 = vld [vmem:[%s7201_s2 + $0x348] sm:$0xff] }
  0x3d   : > { %3341 = vmatprep.subr.bf16.mxu0 %v3340_v22  ;;  %v3233_v16 = vld [vmem:[%s7201_s2 + $0x298] sm:$0xff]  ;;  %v3376_v19 = vpack.c.bf16 %v3229_v9, %v3225_v8  ;;  %v3232_v23 = vld [vmem:[%s7201_s2 + $0x290] sm:$0xff]  ;;  %v852_v32 = vld [vmem:[%s7202_s3 + $0x8] sm:$0xff] }
  0x3e   : > { %v3237_v17 = vld [vmem:[%s7201_s2 + $0x2b8] sm:$0xff]  ;;  %v3236_v25 = vld [vmem:[%s7201_s2 + $0x2b0] sm:$0xff]  ;;  %v864_v39 = vld [vmem:[%s7202_s3 + $0x68] sm:$0xff] }
  0x3f   : > { %3355 = vmatpush1.bf16.msra.mxu1 %v3354_v58  ;;  %v3380_v22 = vpack.c.bf16 %v3237_v17, %v3233_v16  ;;  %v3241_v26 = vld [vmem:[%s7201_s2 + $0x2d8] sm:$0xff]  ;;  %v3382_v34 = vpack.c.bf16 %v3236_v25, %v3232_v23  ;;  %v3240_v35 = vld [vmem:[%s7201_s2 + $0x2d0] sm:$0xff]  ;;  %v3254_v41 = vld [vmem:[%s7201_s2 + $0x340] sm:$0xff] }
  0x40   : > { %3343 = vmatpush1.bf16.msra.mxu0 %v3342_v31  ;;  %3357 = vmatprep.subr.bf16.mxu1 %v3356_v60  ;;  %v3245_v28 = vld [vmem:[%s7201_s2 + $0x2f8] sm:$0xff]  ;;  %v680_v31 = vrot.slane %v4418_v27, 2  ;;  %v857_v36 = vld [vmem:[%s7202_s3 + $0x30] sm:$0xff]  ;;  %v863_v52 = vld [vmem:[%s7202_s3 + $0x60] sm:$0xff] }
  0x41   : > { %503 = vmatprep.subr.mxu0 %v275_v37  ;;  %v858_v33 = vld [vmem:[%s7202_s3 + $0x38] sm:$0xff]  ;;  %v3384_v37 = vpack.c.bf16 %v3245_v28, %v3241_v26  ;;  %v3244_v38 = vld [vmem:[%s7201_s2 + $0x2f0] sm:$0xff]  ;;  %v875_v60 = vld [vmem:[%s7202_s3 + $0xc0] sm:$0xff] }
  0x42   : > { %v870_v40 = vld [vmem:[%s7202_s3 + $0x98] sm:$0xff]  ;;  %v3392_v44 = vpack.c.bf16 %v858_v33, %v852_v32  ;;  %v4728_v45 = vsel %vm678_vm2, %v679_v30, %v680_v31  ;;  %v869_v47 = vld [vmem:[%s7202_s3 + $0x90] sm:$0xff]  ;;  %v4756_v56 = vsel %vm678_vm2, %v680_v31, %v682_v46  ;;  %v888_v62 = vld [vmem:[%s7202_s3 + $0x128] sm:$0xff] }
  0x43   : > { %3359 = vmatpush1.bf16.msra.mxu1 %v3358_v3  ;;  %v3249_v42 = vld [vmem:[%s7201_s2 + $0x318] sm:$0xff]  ;;  %v3396_v51 = vpack.c.bf16 %v870_v40, %v864_v39  ;;  %v3398_v57 = vpack.c.bf16 %v869_v47, %v863_v52  ;;  %v881_v61 = vld [vmem:[%s7202_s3 + $0xf0] sm:$0xff]  ;;  %v860_v2 = vld [vmem:[%s7202_s3 + $0x48] sm:$0xff] }
  0x44   : > { %504 = vmatpush1.msra.mxu0 %v274_v49  ;;  %580 = vmatprep.subr.mxu1 %v277_v6  ;;  %v3253_v43 = vld [vmem:[%s7201_s2 + $0x338] sm:$0xff]  ;;  %v3386_v49 = vpack.c.bf16 %v3244_v38, %v3240_v35  ;;  %v853_v3 = vld [vmem:[%s7202_s3 + $0x10] sm:$0xff]  ;;  %v859_v4 = vld [vmem:[%s7202_s3 + $0x40] sm:$0xff]  ;;  %v3402_v6 = vpack.c.bf16 %v881_v61, %v875_v60 }
  0x45   : > { %3361 = vmatprep.subr.bf16.mxu0 %v3360_v50  ;;  %3218 = vmatmul.mubr.msk.f32.vlgmr.msra.gmra.mrb[0].mxu0 %vm324_vm1, %v4409_v24  ;;  %v3248_v50 = vld [vmem:[%s7201_s2 + $0x310] sm:$0xff]  ;;  %v882_v55 = vld [vmem:[%s7202_s3 + $0xf8] sm:$0xff]  ;;  %v872_v8 = vld [vmem:[%s7202_s3 + $0xa8] sm:$0xff]  ;;  %v3522_v16 = vpack.c.bf16 %v859_v4, %v853_v3 }
  0x46   : > { %3363 = vmatpush1.bf16.msra.mxu0 %v3362_v53  ;;  %557 = vmatprep.mubr.f32.mxu0 %v4289_v7  ;;  %v3252_v53 = vld [vmem:[%s7201_s2 + $0x330] sm:$0xff]  ;;  %v854_v1 = vld [vmem:[%s7202_s3 + $0x18] sm:$0xff]  ;;  %v899_v25 = vld [vmem:[%s7202_s3 + $0x180] sm:$0xff] }
  0x47   : > { %3365 = vmatprep.subr.bf16.mxu0 %v3364_v54  ;;  %581 = vmatpush1.msra.mxu1 %v276_v18  ;;  %v876_v54 = vld [vmem:[%s7202_s3 + $0xc8] sm:$0xff]  ;;  %v3390_v58 = vpack.c.bf16 %v3252_v53, %v3248_v50  ;;  %v866_v5 = vld [vmem:[%s7202_s3 + $0x78] sm:$0xff]  ;;  %v893_v11 = vld [vmem:[%s7202_s3 + $0x150] sm:$0xff]  ;;  %v3520_v13 = vpack.c.bf16 %v860_v2, %v854_v1 }
  0x48   : > { %3377 = vmatprep.subr.bf16.mxu1 %v3376_v19  ;;  %3220 = vmatmul.mubr.msk.f32.vlgmr.msra.gmra.mrb[0].mxu1 %vm324_vm1, %v4409_v24  ;;  %v851_v24 = vld [vmem:[%s7202_s3] sm:$0xff]  ;;  %v3400_v59 = vpack.c.bf16 %v882_v55, %v876_v54  ;;  %v3256_v12 = vld [vmem:[%s7201_s2 + $0x350] sm:$0xff]  ;;  %v906_v15 = vld [vmem:[%s7202_s3 + $0x1b8] sm:$0xff]  ;;  %v3524_v17 = vpack.c.bf16 %v872_v8, %v866_v5 }
  0x49   : > { %3219 = vmatmul.mubr.msk.f32.gmra.mrb[2].mxu0 %vm324_vm1, %v4418_v27  ;;  %3379 = vmatpush1.bf16.msra.mxu1 %v3378_v20  ;;  %v3394_v48 = vpack.c.bf16 %v857_v36, %v851_v24  ;;  %v865_v18 = vld [vmem:[%s7202_s3 + $0x70] sm:$0xff]  ;;  %v871_v19 = vld [vmem:[%s7202_s3 + $0xa0] sm:$0xff]  ;;  %v878_v20 = vld [vmem:[%s7202_s3 + $0xd8] sm:$0xff] }
  0x4a   : > { %3367 = vmatpush1.bf16.msra.mxu0 %v3366_v63  ;;  %752 = vmatprep.mubr.f32.mxu0 %v4289_v7  ;;  %v894_v63 = vld [vmem:[%s7202_s3 + $0x158] sm:$0xff]  ;;  %v905_v26 = vld [vmem:[%s7202_s3 + $0x1b0] sm:$0xff]  ;;  %v912_v28 = vld [vmem:[%s7202_s3 + $0x1e8] sm:$0xff]  ;;  %v3526_v30 = vpack.c.bf16 %v871_v19, %v865_v18 }
  0x4b   : > { %3369 = vmatprep.subr.bf16.mxu0 %v3368_v0  ;;  %634 = vmatprep.mubr.f32.mxu1 %v4289_v7  ;;  %v3257_v0 = vld [vmem:[%s7201_s2 + $0x358] sm:$0xff]  ;;  %v3404_v9 = vpack.c.bf16 %v894_v63, %v888_v62  ;;  %v877_v32 = vld [vmem:[%s7202_s3 + $0xd0] sm:$0xff]  ;;  %v883_v33 = vld [vmem:[%s7202_s3 + $0x100] sm:$0xff]  ;;  %v3410_v35 = vpack.c.bf16 %v905_v26, %v899_v25 }
  0x4c   : > { %3381 = vmatprep.subr.bf16.mxu1 %v3380_v22  ;;  %3221 = vmatmul.mubr.msk.f32.gmra.mrb[2].mxu1 %vm324_vm1, %v4418_v27  ;;  %v3388_v27 = vpack.c.bf16 %v3253_v43, %v3249_v42  ;;  %v884_v22 = vld [vmem:[%s7202_s3 + $0x108] sm:$0xff]  ;;  %v917_v38 = vld [vmem:[%s7202_s3 + $0x210] sm:$0xff]  ;;  %v930_v40 = vld [vmem:[%s7202_s3 + $0x278] sm:$0xff] }
  0x4d   : > { %3383 = vmatpush1.bf16.msra.mxu1 %v3382_v34  ;;  %829 = vmatprep.mubr.f32.mxu1 %v4289_v7  ;;  %v3528_v31 = vpack.c.bf16 %v884_v22, %v878_v20  ;;  %v890_v34 = vld [vmem:[%s7202_s3 + $0x138] sm:$0xff]  ;;  %v896_v24 = vld [vmem:[%s7202_s3 + $0x168] sm:$0xff]  ;;  %v889_v43 = vld [vmem:[%s7202_s3 + $0x130] sm:$0xff] }
  0x4e   : > { %3371 = vmatpush1.bf16.msra.mxu0 %v3370_v10  ;;  %3385 = vmatprep.subr.bf16.mxu1 %v3384_v37  ;;  %v887_v10 = vld [vmem:[%s7202_s3 + $0x120] sm:$0xff]  ;;  %v924_v39 = vld [vmem:[%s7202_s3 + $0x248] sm:$0xff]  ;;  %v3532_v42 = vpack.c.bf16 %v896_v24, %v890_v34  ;;  %v942_v47 = vld [vmem:[%s7202_s3 + $0x2d8] sm:$0xff] }
  0x4f   : > { %3373 = vmatprep.subr.bf16.mxu0 %v3372_v14  ;;  %v900_v14 = vld [vmem:[%s7202_s3 + $0x188] sm:$0xff]  ;;  %v911_v37 = vld [vmem:[%s7202_s3 + $0x1e0] sm:$0xff]  ;;  %v901_v54 = vld [vmem:[%s7202_s3 + $0x190] sm:$0xff] }
  0x50   : > { %v3408_v23 = vpack.c.bf16 %v906_v15, %v900_v14  ;;  %v3414_v46 = vpack.c.bf16 %v917_v38, %v911_v37  ;;  %v923_v50 = vld [vmem:[%s7202_s3 + $0x240] sm:$0xff]  ;;  %v936_v52 = vld [vmem:[%s7202_s3 + $0x2a8] sm:$0xff]  ;;  %v941_v61 = vld [vmem:[%s7202_s3 + $0x2d0] sm:$0xff] }
  0x51   : > { %3387 = vmatpush1.bf16.msra.mxu1 %v3386_v49  ;;  %v3416_v49 = vpack.c.bf16 %v930_v40, %v924_v39  ;;  %v907_v55 = vld [vmem:[%s7202_s3 + $0x1c0] sm:$0xff]  ;;  %v948_v62 = vld [vmem:[%s7202_s3 + $0x308] sm:$0xff]  ;;  %v954_v63 = vld [vmem:[%s7202_s3 + $0x338] sm:$0xff] }
  0x52   : > { %3375 = vmatpush1.bf16.msra.mxu0 %v3374_v21  ;;  %3389 = vmatprep.subr.bf16.mxu1 %v3388_v27  ;;  %v3406_v21 = vpack.c.bf16 %v893_v11, %v887_v10  ;;  %v935_v60 = vld [vmem:[%s7202_s3 + $0x2a0] sm:$0xff]  ;;  %v913_v2 = vld [vmem:[%s7202_s3 + $0x1f0] sm:$0xff]  ;;  %v926_v4 = vld [vmem:[%s7202_s3 + $0x258] sm:$0xff]  ;;  %v3424_v8 = vpack.c.bf16 %v954_v63, %v948_v62 }
  0x53   : > { %704 = vmatprep.subr.mxu0 %v3255_v29  ;;  %v918_v29 = vld [vmem:[%s7202_s3 + $0x218] sm:$0xff]  ;;  %v919_v3 = vld [vmem:[%s7202_s3 + $0x220] sm:$0xff]  ;;  %v3422_v5 = vpack.c.bf16 %v941_v61, %v935_v60  ;;  %v953_v10 = vld [vmem:[%s7202_s3 + $0x330] sm:$0xff] }
  0x54   : > { %v3412_v36 = vpack.c.bf16 %v918_v29, %v912_v28  ;;  %v960_v11 = vld [vmem:[%s7202_s3 + $0x368] sm:$0xff]  ;;  %v925_v15 = vld [vmem:[%s7202_s3 + $0x250] sm:$0xff]  ;;  %v978_v25 = vld [vmem:[%s7202_s3 + $0x3f8] sm:$0xff] }
  0x55   : > { %3391 = vmatpush1.bf16.msra.mxu1 %v3390_v58  ;;  %v920_v58 = vld [vmem:[%s7202_s3 + $0x228] sm:$0xff]  ;;  %v965_v22 = vld [vmem:[%s7202_s3 + $0x390] sm:$0xff]  ;;  %v990_v37 = vld [vmem:[%s7202_s3 + $0x458] sm:$0xff] }
  0x56   : > { %705 = vmatpush1.msra.mxu0 %v3254_v41  ;;  %781 = vmatprep.subr.mxu1 %v3257_v0  ;;  %v3530_v41 = vpack.c.bf16 %v883_v33, %v877_v32  ;;  %v3538_v0 = vpack.c.bf16 %v907_v55, %v901_v54  ;;  %v944_v19 = vld [vmem:[%s7202_s3 + $0x2e8] sm:$0xff]  ;;  %v937_v29 = vld [vmem:[%s7202_s3 + $0x2b0] sm:$0xff]  ;;  %v1014_v60 = vld [vmem:[%s7202_s3 + $0x518] sm:$0xff] }
  0x57   : > { %3258 = vmatmul.mubr.msk.f32.vlgmr.msra.gmra.mrb[0].mxu0 %vm324_vm1, %v4728_v45  ;;  %3393 = vmatprep.subr.bf16.mxu0 %v3392_v44  ;;  %v895_v44 = vld [vmem:[%s7202_s3 + $0x160] sm:$0xff]  ;;  %v956_v33 = vld [vmem:[%s7202_s3 + $0x348] sm:$0xff]  ;;  %v977_v24 = vld [vmem:[%s7202_s3 + $0x3f0] sm:$0xff] }
  0x58   : > { %758 = vmatprep.mubr.f32.mxu0 %v4289_v7  ;;  %3395 = vmatpush1.bf16.msra.mxu0 %v3394_v48  ;;  %v908_v48 = vld [vmem:[%s7202_s3 + $0x1c8] sm:$0xff]  ;;  %v3534_v27 = vpack.c.bf16 %v895_v44, %v889_v43  ;;  %v949_v40 = vld [vmem:[%s7202_s3 + $0x310] sm:$0xff] }
  0x59   : > { %3397 = vmatprep.subr.bf16.mxu0 %v3396_v51  ;;  %782 = vmatpush1.msra.mxu1 %v3256_v12  ;;  %v929_v51 = vld [vmem:[%s7202_s3 + $0x270] sm:$0xff]  ;;  %v966_v12 = vld [vmem:[%s7202_s3 + $0x398] sm:$0xff]  ;;  %v968_v44 = vld [vmem:[%s7202_s3 + $0x3a8] sm:$0xff] }
  0x5a   : > { %3260 = vmatmul.mubr.msk.f32.vlgmr.msra.gmra.mrb[0].mxu1 %vm324_vm1, %v4728_v45  ;;  %3521 = vmatprep.subr.bf16.mxu1 %v3520_v13  ;;  %v902_v45 = vld [vmem:[%s7202_s3 + $0x198] sm:$0xff]  ;;  %v3542_v13 = vpack.c.bf16 %v919_v3, %v913_v2  ;;  %v3428_v20 = vpack.c.bf16 %v966_v12, %v960_v11  ;;  %v980_v55 = vld [vmem:[%s7202_s3 + $0x408] sm:$0xff]  ;;  %v973_v63 = vld [vmem:[%s7202_s3 + $0x3d0] sm:$0xff] }
  0x5b   : > { %3259 = vmatmul.mubr.msk.f32.gmra.mrb[2].mxu0 %vm324_vm1, %v4756_v56  ;;  %835 = vmatprep.mubr.f32.mxu1 %v4289_v7  ;;  %v3536_v53 = vpack.c.bf16 %v908_v48, %v902_v45  ;;  %v989_v48 = vld [vmem:[%s7202_s3 + $0x450] sm:$0xff]  ;;  %v992_v3 = vld [vmem:[%s7202_s3 + $0x468] sm:$0xff] }
  0x5c   : > { %3399 = vmatpush1.bf16.msra.mxu0 %v3398_v57  ;;  %3523 = vmatpush1.bf16.msra.mxu1 %v3522_v16  ;;  %v3418_v57 = vpack.c.bf16 %v929_v51, %v923_v50  ;;  %v931_v16 = vld [vmem:[%s7202_s3 + $0x280] sm:$0xff]  ;;  %v1002_v50 = vld [vmem:[%s7202_s3 + $0x4b8] sm:$0xff]  ;;  %v985_v12 = vld [vmem:[%s7202_s3 + $0x430] sm:$0xff] }
  0x5d   : > { %3401 = vmatprep.subr.bf16.mxu0 %v3400_v59  ;;  %3525 = vmatprep.subr.bf16.mxu1 %v3524_v17  ;;  %v3420_v59 = vpack.c.bf16 %v942_v47, %v936_v52  ;;  %v938_v17 = vld [vmem:[%s7202_s3 + $0x2b8] sm:$0xff]  ;;  %v3546_v26 = vpack.c.bf16 %v931_v16, %v925_v15  ;;  %v961_v47 = vld [vmem:[%s7202_s3 + $0x370] sm:$0xff]  ;;  %v1004_v16 = vld [vmem:[%s7202_s3 + $0x4c8] sm:$0xff] }
  0x5e   : > { %3261 = vmatmul.mubr.msk.f32.gmra.mrb[2].mxu1 %vm324_vm1, %v4756_v56  ;;  %v914_v56 = vld [vmem:[%s7202_s3 + $0x1f8] sm:$0xff]  ;;  %v3548_v28 = vpack.c.bf16 %v944_v19, %v938_v17  ;;  %v1025_v19 = vld [vmem:[%s7202_s3 + $0x570] sm:$0xff] }
  0x5f   : > { %v3540_v1 = vpack.c.bf16 %v920_v58, %v914_v56  ;;  %v1001_v58 = vld [vmem:[%s7202_s3 + $0x4b0] sm:$0xff] }
  0x60   : > { %3403 = vmatpush1.bf16.msra.mxu0 %v3402_v6  ;;  %3527 = vmatpush1.bf16.msra.mxu1 %v3526_v30  ;;  %v932_v6 = vld [vmem:[%s7202_s3 + $0x288] sm:$0xff]  ;;  %v943_v30 = vld [vmem:[%s7202_s3 + $0x2e0] sm:$0xff] }
  0x61   : > { %3405 = vmatprep.subr.bf16.mxu0 %v3404_v9  ;;  %3529 = vmatprep.subr.bf16.mxu1 %v3528_v31  ;;  %v947_v9 = vld [vmem:[%s7202_s3 + $0x300] sm:$0xff]  ;;  %v3544_v14 = vpack.c.bf16 %v932_v6, %v926_v4  ;;  %v950_v31 = vld [vmem:[%s7202_s3 + $0x318] sm:$0xff]  ;;  %v3550_v38 = vpack.c.bf16 %v943_v30, %v937_v29  ;;  %v1013_v6 = vld [vmem:[%s7202_s3 + $0x510] sm:$0xff] }
  0x62   : > { %v3426_v18 = vpack.c.bf16 %v953_v10, %v947_v9  ;;  %v3552_v39 = vpack.c.bf16 %v956_v33, %v950_v31  ;;  %v1026_v9 = vld [vmem:[%s7202_s3 + $0x578] sm:$0xff]  ;;  %v1016_v30 = vld [vmem:[%s7202_s3 + $0x528] sm:$0xff]  ;;  %v1037_v33 = vld [vmem:[%s7202_s3 + $0x5d0] sm:$0xff] }
  0x64   : > { %3407 = vmatpush1.bf16.msra.mxu0 %v3406_v21  ;;  %3531 = vmatpush1.bf16.msra.mxu1 %v3530_v41  ;;  %v959_v21 = vld [vmem:[%s7202_s3 + $0x360] sm:$0xff] }
  0x65   : > { %3409 = vmatprep.subr.bf16.mxu0 %v3408_v23  ;;  %3533 = vmatprep.subr.bf16.mxu1 %v3532_v42  ;;  %v972_v23 = vld [vmem:[%s7202_s3 + $0x3c8] sm:$0xff]  ;;  %v3430_v32 = vpack.c.bf16 %v965_v22, %v959_v21  ;;  %v955_v41 = vld [vmem:[%s7202_s3 + $0x340] sm:$0xff]  ;;  %v962_v42 = vld [vmem:[%s7202_s3 + $0x378] sm:$0xff] }
  0x66   : > { %v3432_v34 = vpack.c.bf16 %v978_v25, %v972_v23  ;;  %v3554_v51 = vpack.c.bf16 %v955_v41, %v949_v40  ;;  %v3556_v52 = vpack.c.bf16 %v968_v44, %v962_v42  ;;  %v1038_v21 = vld [vmem:[%s7202_s3 + $0x5d8] sm:$0xff]  ;;  %v997_v25 = vld [vmem:[%s7202_s3 + $0x490] sm:$0xff] }
  0x67   : > { %v1021_v42 = vld [vmem:[%s7202_s3 + $0x550] sm:$0xff]  ;;  %v1034_v44 = vld [vmem:[%s7202_s3 + $0x5b8] sm:$0xff] }
  0x68   : > { %3411 = vmatpush1.bf16.msra.mxu0 %v3410_v35  ;;  %3535 = vmatpush1.bf16.msra.mxu1 %v3534_v27  ;;  %v971_v35 = vld [vmem:[%s7202_s3 + $0x3c0] sm:$0xff] }
  0x69   : > { %3413 = vmatprep.subr.bf16.mxu0 %v3412_v36  ;;  %3537 = vmatprep.subr.bf16.mxu1 %v3536_v53  ;;  %v984_v36 = vld [vmem:[%s7202_s3 + $0x428] sm:$0xff]  ;;  %v3434_v43 = vpack.c.bf16 %v977_v24, %v971_v35  ;;  %v967_v27 = vld [vmem:[%s7202_s3 + $0x3a0] sm:$0xff]  ;;  %v974_v53 = vld [vmem:[%s7202_s3 + $0x3d8] sm:$0xff] }
  0x6a   : > { %v3436_v45 = vpack.c.bf16 %v990_v37, %v984_v36  ;;  %v3558_v61 = vpack.c.bf16 %v967_v27, %v961_v47  ;;  %v3560_v62 = vpack.c.bf16 %v980_v55, %v974_v53  ;;  %v1009_v24 = vld [vmem:[%s7202_s3 + $0x4f0] sm:$0xff]  ;;  %v1015_v36 = vld [vmem:[%s7202_s3 + $0x520] sm:$0xff]  ;;  %v1050_v47 = vld [vmem:[%s7202_s3 + $0x638] sm:$0xff] }
  0x6b   : > { %v3574_v40 = vpack.c.bf16 %v1015_v36, %v1009_v24  ;;  %v1046_v27 = vld [vmem:[%s7202_s3 + $0x618] sm:$0xff]  ;;  %v1081_v36 = vld [vmem:[%s7202_s3 + $0x730] sm:$0xff] }
  0x6c   : > { %3415 = vmatpush1.bf16.msra.mxu0 %v3414_v46  ;;  %3539 = vmatpush1.bf16.msra.mxu1 %v3538_v0  ;;  %v983_v46 = vld [vmem:[%s7202_s3 + $0x420] sm:$0xff] }
  0x6d   : > { %3417 = vmatprep.subr.bf16.mxu0 %v3416_v49  ;;  %3541 = vmatprep.subr.bf16.mxu1 %v3540_v1  ;;  %v996_v49 = vld [vmem:[%s7202_s3 + $0x488] sm:$0xff]  ;;  %v3438_v54 = vpack.c.bf16 %v989_v48, %v983_v46  ;;  %v979_v0 = vld [vmem:[%s7202_s3 + $0x400] sm:$0xff]  ;;  %v986_v1 = vld [vmem:[%s7202_s3 + $0x438] sm:$0xff] }
  0x6e   : > { %v3440_v56 = vpack.c.bf16 %v1002_v50, %v996_v49  ;;  %v3562_v10 = vpack.c.bf16 %v979_v0, %v973_v63  ;;  %v3564_v11 = vpack.c.bf16 %v992_v3, %v986_v1  ;;  %v1033_v49 = vld [vmem:[%s7202_s3 + $0x5b0] sm:$0xff]  ;;  %v1039_v50 = vld [vmem:[%s7202_s3 + $0x5e0] sm:$0xff]  ;;  %v1064_v63 = vld [vmem:[%s7202_s3 + $0x6a8] sm:$0xff] }
  0x6f   : > { %v1055_v3 = vld [vmem:[%s7202_s3 + $0x660] sm:$0xff] }
  0x70   : > { %3419 = vmatpush1.bf16.msra.mxu0 %v3418_v57  ;;  %3543 = vmatpush1.bf16.msra.mxu1 %v3542_v13  ;;  %v995_v57 = vld [vmem:[%s7202_s3 + $0x480] sm:$0xff] }
  0x71   : > { %3421 = vmatprep.subr.bf16.mxu0 %v3420_v59  ;;  %3545 = vmatprep.subr.bf16.mxu1 %v3544_v14  ;;  %v1008_v59 = vld [vmem:[%s7202_s3 + $0x4e8] sm:$0xff]  ;;  %v3442_v2 = vpack.c.bf16 %v1001_v58, %v995_v57  ;;  %v991_v13 = vld [vmem:[%s7202_s3 + $0x460] sm:$0xff]  ;;  %v998_v14 = vld [vmem:[%s7202_s3 + $0x498] sm:$0xff] }
  0x72   : > { %v3444_v4 = vpack.c.bf16 %v1014_v60, %v1008_v59  ;;  %v3566_v22 = vpack.c.bf16 %v991_v13, %v985_v12  ;;  %v3568_v23 = vpack.c.bf16 %v1004_v16, %v998_v14  ;;  %v1049_v57 = vld [vmem:[%s7202_s3 + $0x630] sm:$0xff]  ;;  %v1051_v59 = vld [vmem:[%s7202_s3 + $0x640] sm:$0xff]  ;;  %v1056_v60 = vld [vmem:[%s7202_s3 + $0x668] sm:$0xff] }
  0x73   : > { %v1045_v58 = vld [vmem:[%s7202_s3 + $0x610] sm:$0xff]  ;;  %v1074_v12 = vld [vmem:[%s7202_s3 + $0x6f8] sm:$0xff]  ;;  %v1076_v14 = vld [vmem:[%s7202_s3 + $0x708] sm:$0xff] }
  0x74   : > { %3423 = vmatpush1.bf16.msra.mxu0 %v3422_v5  ;;  %3547 = vmatpush1.bf16.msra.mxu1 %v3546_v26  ;;  %v1007_v5 = vld [vmem:[%s7202_s3 + $0x4e0] sm:$0xff]  ;;  %v1070_v13 = vld [vmem:[%s7202_s3 + $0x6d8] sm:$0xff] }
  0x75   : > { %3425 = vmatprep.subr.bf16.mxu0 %v3424_v8  ;;  %3549 = vmatprep.subr.bf16.mxu1 %v3548_v28  ;;  %v1020_v8 = vld [vmem:[%s7202_s3 + $0x548] sm:$0xff]  ;;  %v3446_v15 = vpack.c.bf16 %v1013_v6, %v1007_v5  ;;  %v1003_v26 = vld [vmem:[%s7202_s3 + $0x4c0] sm:$0xff]  ;;  %v1010_v28 = vld [vmem:[%s7202_s3 + $0x4f8] sm:$0xff] }
  0x76   : > { %v3448_v17 = vpack.c.bf16 %v1026_v9, %v1020_v8  ;;  %v3572_v35 = vpack.c.bf16 %v1016_v30, %v1010_v28  ;;  %v1057_v9 = vld [vmem:[%s7202_s3 + $0x670] sm:$0xff]  ;;  %v1086_v28 = vld [vmem:[%s7202_s3 + $0x758] sm:$0xff]  ;;  %v1088_v30 = vld [vmem:[%s7202_s3 + $0x768] sm:$0xff] }
  0x78   : > { %3427 = vmatpush1.bf16.msra.mxu0 %v3426_v18  ;;  %3551 = vmatpush1.bf16.msra.mxu1 %v3550_v38  ;;  %v1019_v18 = vld [vmem:[%s7202_s3 + $0x540] sm:$0xff]  ;;  %v1022_v38 = vld [vmem:[%s7202_s3 + $0x558] sm:$0xff] }
  0x79   : > { %3429 = vmatprep.subr.bf16.mxu0 %v3428_v20  ;;  %3553 = vmatprep.subr.bf16.mxu1 %v3552_v39  ;;  %v1032_v20 = vld [vmem:[%s7202_s3 + $0x5a8] sm:$0xff]  ;;  %v3450_v29 = vpack.c.bf16 %v1025_v19, %v1019_v18  ;;  %v1067_v18 = vld [vmem:[%s7202_s3 + $0x6c0] sm:$0xff]  ;;  %v1073_v19 = vld [vmem:[%s7202_s3 + $0x6f0] sm:$0xff] }
  0x7a   : > { %v3452_v31 = vpack.c.bf16 %v1038_v21, %v1032_v20  ;;  %v1028_v39 = vld [vmem:[%s7202_s3 + $0x588] sm:$0xff] }
  0x7b   : > { %v3576_v41 = vpack.c.bf16 %v1028_v39, %v1022_v38  ;;  %v1092_v38 = vld [vmem:[%s7202_s3 + $0x788] sm:$0xff]  ;;  %v1098_v39 = vld [vmem:[%s7202_s3 + $0x7b8] sm:$0xff] }
  0x7c   : > { %3431 = vmatpush1.bf16.msra.mxu0 %v3430_v32  ;;  %3555 = vmatpush1.bf16.msra.mxu1 %v3554_v51  ;;  %v1031_v32 = vld [vmem:[%s7202_s3 + $0x5a0] sm:$0xff]  ;;  %v3582_v51 = vpack.c.bf16 %v1039_v50, %v1033_v49  ;;  %v3472_v49 = vpack.c.bf16 %v1098_v39, %v1092_v38  ;;  %v1145_v38 = vld [vmem:[%s7202_s3 + $0x930] sm:$0xff] }
  0x7d   : > { %3433 = vmatprep.subr.bf16.mxu0 %v3432_v34  ;;  %3557 = vmatprep.subr.bf16.mxu1 %v3556_v52  ;;  %v3570_v34 = vpack.c.bf16 %v1003_v26, %v997_v25  ;;  %v3454_v37 = vpack.c.bf16 %v1037_v33, %v1031_v32  ;;  %v1044_v52 = vld [vmem:[%s7202_s3 + $0x608] sm:$0xff]  ;;  %v1075_v25 = vld [vmem:[%s7202_s3 + $0x700] sm:$0xff] }
  0x7e   : > { %v3456_v53 = vpack.c.bf16 %v1050_v47, %v1044_v52  ;;  %v1080_v26 = vld [vmem:[%s7202_s3 + $0x728] sm:$0xff]  ;;  %v1079_v33 = vld [vmem:[%s7202_s3 + $0x720] sm:$0xff] }
  0x7f   : > { %v1099_v52 = vld [vmem:[%s7202_s3 + $0x7c0] sm:$0xff]  ;;  %v1104_v47 = vld [vmem:[%s7202_s3 + $0x7e8] sm:$0xff] }
  0x80   : > { %3435 = vmatpush1.bf16.msra.mxu0 %v3434_v43  ;;  %3559 = vmatpush1.bf16.msra.mxu1 %v3558_v61  ;;  %v1027_v43 = vld [vmem:[%s7202_s3 + $0x580] sm:$0xff]  ;;  %v1062_v61 = vld [vmem:[%s7202_s3 + $0x698] sm:$0xff] }
  0x81   : > { %3437 = vmatprep.subr.bf16.mxu0 %v3436_v45  ;;  %3561 = vmatprep.subr.bf16.mxu1 %v3560_v62  ;;  %v1040_v45 = vld [vmem:[%s7202_s3 + $0x5e8] sm:$0xff]  ;;  %v3578_v46 = vpack.c.bf16 %v1027_v43, %v1021_v42  ;;  %v1058_v62 = vld [vmem:[%s7202_s3 + $0x678] sm:$0xff]  ;;  %v3460_v6 = vpack.c.bf16 %v1062_v61, %v1056_v60 }
  0x82   : > { %v3580_v48 = vpack.c.bf16 %v1040_v45, %v1034_v44  ;;  %v3588_v8 = vpack.c.bf16 %v1064_v63, %v1058_v62  ;;  %v1091_v45 = vld [vmem:[%s7202_s3 + $0x780] sm:$0xff]  ;;  %v1105_v63 = vld [vmem:[%s7202_s3 + $0x7f0] sm:$0xff] }
  0x84   : > { %3439 = vmatpush1.bf16.msra.mxu0 %v3438_v54  ;;  %3563 = vmatpush1.bf16.msra.mxu1 %v3562_v10  ;;  %v1052_v54 = vld [vmem:[%s7202_s3 + $0x648] sm:$0xff]  ;;  %v1063_v10 = vld [vmem:[%s7202_s3 + $0x6a0] sm:$0xff] }
  0x85   : > { %3441 = vmatprep.subr.bf16.mxu0 %v3440_v56  ;;  %3565 = vmatprep.subr.bf16.mxu1 %v3564_v11  ;;  %v3584_v55 = vpack.c.bf16 %v1052_v54, %v1046_v27  ;;  %v1043_v56 = vld [vmem:[%s7202_s3 + $0x600] sm:$0xff]  ;;  %v1068_v11 = vld [vmem:[%s7202_s3 + $0x6c8] sm:$0xff]  ;;  %v1110_v27 = vld [vmem:[%s7202_s3 + $0x818] sm:$0xff] }
  0x86   : > { %v3458_v1 = vpack.c.bf16 %v1049_v57, %v1043_v56  ;;  %v3464_v21 = vpack.c.bf16 %v1074_v12, %v1068_v11  ;;  %v1112_v54 = vld [vmem:[%s7202_s3 + $0x828] sm:$0xff]  ;;  %v3476_v61 = vpack.c.bf16 %v1110_v27, %v1104_v47  ;;  %v1121_v11 = vld [vmem:[%s7202_s3 + $0x870] sm:$0xff] }
  0x87   : > { %v1157_v47 = vld [vmem:[%s7202_s3 + $0x990] sm:$0xff] }
  0x88   : > { %3443 = vmatpush1.bf16.msra.mxu0 %v3442_v2  ;;  %3567 = vmatpush1.bf16.msra.mxu1 %v3566_v22  ;;  %v3586_v2 = vpack.c.bf16 %v1051_v59, %v1045_v58  ;;  %v3592_v22 = vpack.c.bf16 %v1076_v14, %v1070_v13  ;;  %v1103_v58 = vld [vmem:[%s7202_s3 + $0x7e0] sm:$0xff]  ;;  %v1109_v59 = vld [vmem:[%s7202_s3 + $0x810] sm:$0xff] }
  0x89   : > { %3445 = vmatprep.subr.bf16.mxu0 %v3444_v4  ;;  %3569 = vmatprep.subr.bf16.mxu1 %v3568_v23  ;;  %v1061_v4 = vld [vmem:[%s7202_s3 + $0x690] sm:$0xff] }
  0x8a   : > { %v3462_v16 = vpack.c.bf16 %v1061_v4, %v1055_v3  ;;  %v1069_v23 = vld [vmem:[%s7202_s3 + $0x6d0] sm:$0xff]  ;;  %v1122_v3 = vld [vmem:[%s7202_s3 + $0x878] sm:$0xff] }
  0x8b   : > { %v3594_v32 = vpack.c.bf16 %v1075_v25, %v1069_v23  ;;  %v1118_v4 = vld [vmem:[%s7202_s3 + $0x858] sm:$0xff]  ;;  %v1117_v14 = vld [vmem:[%s7202_s3 + $0x850] sm:$0xff]  ;;  %v1127_v25 = vld [vmem:[%s7202_s3 + $0x8a0] sm:$0xff] }
  0x8c   : > { %3447 = vmatpush1.bf16.msra.mxu0 %v3446_v15  ;;  %3571 = vmatpush1.bf16.msra.mxu1 %v3570_v34  ;;  %v1085_v34 = vld [vmem:[%s7202_s3 + $0x750] sm:$0xff] }
  0x8d   : > { %3449 = vmatprep.subr.bf16.mxu0 %v3448_v17  ;;  %3573 = vmatprep.subr.bf16.mxu1 %v3572_v35  ;;  %v3590_v17 = vpack.c.bf16 %v1063_v10, %v1057_v9  ;;  %v3468_v35 = vpack.c.bf16 %v1086_v28, %v1080_v26  ;;  %v3470_v43 = vpack.c.bf16 %v1085_v34, %v1079_v33  ;;  %v1115_v10 = vld [vmem:[%s7202_s3 + $0x840] sm:$0xff]  ;;  %v1133_v26 = vld [vmem:[%s7202_s3 + $0x8d0] sm:$0xff]  ;;  %v1146_v33 = vld [vmem:[%s7202_s3 + $0x938] sm:$0xff] }
  0x8e   : > { %v1142_v34 = vld [vmem:[%s7202_s3 + $0x918] sm:$0xff] }
  0x90   : > { %3451 = vmatpush1.bf16.msra.mxu0 %v3450_v29  ;;  %3575 = vmatpush1.bf16.msra.mxu1 %v3574_v40  ;;  %v1082_v29 = vld [vmem:[%s7202_s3 + $0x738] sm:$0xff] }
  0x91   : > { %3453 = vmatprep.subr.bf16.mxu0 %v3452_v31  ;;  %3577 = vmatprep.subr.bf16.mxu1 %v3576_v41  ;;  %v3466_v31 = vpack.c.bf16 %v1073_v19, %v1067_v18  ;;  %v3596_v24 = vpack.c.bf16 %v1088_v30, %v1082_v29  ;;  %v1094_v40 = vld [vmem:[%s7202_s3 + $0x798] sm:$0xff]  ;;  %v1100_v41 = vld [vmem:[%s7202_s3 + $0x7c8] sm:$0xff]  ;;  %v1129_v30 = vld [vmem:[%s7202_s3 + $0x8b0] sm:$0xff] }
  0x92   : > { %v3600_v50 = vpack.c.bf16 %v1100_v41, %v1094_v40  ;;  %v1134_v18 = vld [vmem:[%s7202_s3 + $0x8d8] sm:$0xff]  ;;  %v1141_v41 = vld [vmem:[%s7202_s3 + $0x910] sm:$0xff] }
  0x93   : > { %v1130_v19 = vld [vmem:[%s7202_s3 + $0x8b8] sm:$0xff] }
  0x94   : > { %3455 = vmatpush1.bf16.msra.mxu0 %v3454_v37  ;;  %3579 = vmatpush1.bf16.msra.mxu1 %v3578_v46  ;;  %v1087_v37 = vld [vmem:[%s7202_s3 + $0x760] sm:$0xff]  ;;  %v1097_v46 = vld [vmem:[%s7202_s3 + $0x7b0] sm:$0xff] }
  0x95   : > { %3581 = vmatprep.subr.bf16.mxu1 %v3580_v48  ;;  %3457 = vmatprep.subr.bf16.mxu0 %v3456_v53  ;;  %v3598_v44 = vpack.c.bf16 %v1087_v37, %v1081_v36  ;;  %v1106_v53 = vld [vmem:[%s7202_s3 + $0x7f8] sm:$0xff]  ;;  %v3474_v56 = vpack.c.bf16 %v1097_v46, %v1091_v45  ;;  %v1139_v37 = vld [vmem:[%s7202_s3 + $0x900] sm:$0xff] }
  0x96   : > { %v3604_v62 = vpack.c.bf16 %v1112_v54, %v1106_v53  ;;  %v1158_v45 = vld [vmem:[%s7202_s3 + $0x998] sm:$0xff]  ;;  %v1153_v54 = vld [vmem:[%s7202_s3 + $0x970] sm:$0xff] }
  0x97   : > { %v1154_v46 = vld [vmem:[%s7202_s3 + $0x978] sm:$0xff] }
  0x98   : > { %3583 = vmatpush1.bf16.msra.mxu1 %v3582_v51  ;;  %v1093_v51 = vld [vmem:[%s7202_s3 + $0x790] sm:$0xff] }
  0x99   : > { %3585 = vmatprep.subr.bf16.mxu1 %v3584_v55  ;;  %v3602_v57 = vpack.c.bf16 %v1099_v52, %v1093_v51  ;;  %v1151_v52 = vld [vmem:[%s7202_s3 + $0x960] sm:$0xff] }
 0x12a   : > { %v5161_v0 = vpop.f32.mrb[0].mxu0 }
 0x12b   : > { %v5169_v5 = vpop.f32.mrb[1].mxu0 }
 0x12c   : > { %1299 = vmatprep.mubr.f32.mxu0 %v5169_v5  ;;  %1453 = vmatprep.mubr.f32.mxu1 %v5169_v5 }
 0x12d   : > { %1300 = vmatmul.mubr.f32.vlgmr.msra.gmra.mrb[4].mxu0 %v5161_v0  ;;  %1454 = vmatmul.mubr.f32.vlgmr.msra.gmra.mrb[4].mxu1 %v5161_v0  ;;  %v5249_v42 = vpop.f32.mrb[0].mxu1 }
 0x12e   : > { %3459 = vmatpush1.bf16.msra.mxu0 %v3458_v1  ;;  %3587 = vmatpush1.bf16.msra.mxu1 %v3586_v2  ;;  %v5193_v15 = vpop.f32.mrb[2].mxu0  ;;  %v5257_v48 = vpop.f32.mrb[1].mxu1  ;;  %v1111_v1 = vld [vmem:[%s7202_s3 + $0x820] sm:$0xff]  ;;  %v1116_v2 = vld [vmem:[%s7202_s3 + $0x848] sm:$0xff] }
 0x12f   : > { %v5201_v20 = vpop.f32.mrb[3].mxu0  ;;  %3461 = vmatprep.subr.bf16.mxu0 %v3460_v6  ;;  %3589 = vmatprep.subr.bf16.mxu1 %v3588_v8  ;;  %v1124_v6 = vld [vmem:[%s7202_s3 + $0x888] sm:$0xff]  ;;  %v3478_v8 = vpack.c.bf16 %v1109_v59, %v1103_v58  ;;  %v3606_v9 = vpack.c.bf16 %v1111_v1, %v1105_v63  ;;  %v3480_v12 = vpack.c.bf16 %v1122_v3, %v1116_v2  ;;  %v1170_v58 = vld [vmem:[%s7202_s3 + $0x9f8] sm:$0xff]  ;;  %v1163_v1 = vld [vmem:[%s7202_s3 + $0x9c0] sm:$0xff] }
 0x130   : > { %1305 = vmatprep.mubr.f32.mxu0 %v5201_v20  ;;  %1459 = vmatprep.mubr.f32.mxu1 %v5201_v20  ;;  %v3608_v13 = vpack.c.bf16 %v1124_v6, %v1118_v4  ;;  %v1166_v59 = vld [vmem:[%s7202_s3 + $0x9d8] sm:$0xff]  ;;  %v1169_v2 = vld [vmem:[%s7202_s3 + $0x9f0] sm:$0xff] }
 0x131   : > { %1306 = vmatmul.mubr.f32.gmra.mrb[6].mxu0 %v5193_v15  ;;  %1460 = vmatmul.mubr.f32.gmra.mrb[6].mxu1 %v5193_v15  ;;  %v5279_v55 = vpop.f32.mrb[2].mxu1  ;;  %v1165_v6 = vld [vmem:[%s7202_s3 + $0x9d0] sm:$0xff] }
 0x132   : > { %3463 = vmatpush1.bf16.msra.mxu0 %v3462_v16  ;;  %3591 = vmatpush1.bf16.msra.mxu1 %v3590_v17  ;;  %v5287_v60 = vpop.f32.mrb[3].mxu1  ;;  %v1123_v16 = vld [vmem:[%s7202_s3 + $0x880] sm:$0xff]  ;;  %v1128_v17 = vld [vmem:[%s7202_s3 + $0x8a8] sm:$0xff] }
 0x133   : > { %3465 = vmatprep.subr.bf16.mxu0 %v3464_v21  ;;  %3593 = vmatprep.subr.bf16.mxu1 %v3592_v22  ;;  %v1136_v21 = vld [vmem:[%s7202_s3 + $0x8e8] sm:$0xff]  ;;  %v3482_v22 = vpack.c.bf16 %v1121_v11, %v1115_v10  ;;  %v3610_v23 = vpack.c.bf16 %v1123_v16, %v1117_v14  ;;  %v3484_v28 = vpack.c.bf16 %v1134_v18, %v1128_v17  ;;  %v1182_v10 = vld [vmem:[%s7202_s3 + $0xa58] sm:$0xff]  ;;  %v1175_v16 = vld [vmem:[%s7202_s3 + $0xa20] sm:$0xff] }
 0x134   : > { %1376 = vmatprep.mubr.f32.mxu0 %v5257_v48  ;;  %1530 = vmatprep.mubr.f32.mxu1 %v5257_v48  ;;  %v3612_v29 = vpack.c.bf16 %v1136_v21, %v1130_v19  ;;  %v1178_v11 = vld [vmem:[%s7202_s3 + $0xa38] sm:$0xff]  ;;  %v1181_v17 = vld [vmem:[%s7202_s3 + $0xa50] sm:$0xff] }
 0x135   : > { %v1177_v21 = vld [vmem:[%s7202_s3 + $0xa30] sm:$0xff] }
 0x136   : > { %3467 = vmatpush1.bf16.msra.mxu0 %v3466_v31  ;;  %3595 = vmatpush1.bf16.msra.mxu1 %v3594_v32  ;;  %v1135_v31 = vld [vmem:[%s7202_s3 + $0x8e0] sm:$0xff]  ;;  %v1140_v32 = vld [vmem:[%s7202_s3 + $0x908] sm:$0xff] }
 0x137   : > { %3469 = vmatprep.subr.bf16.mxu0 %v3468_v35  ;;  %3597 = vmatprep.subr.bf16.mxu1 %v3596_v24  ;;  %v1148_v35 = vld [vmem:[%s7202_s3 + $0x948] sm:$0xff]  ;;  %v3486_v24 = vpack.c.bf16 %v1133_v26, %v1127_v25  ;;  %v3614_v36 = vpack.c.bf16 %v1135_v31, %v1129_v30  ;;  %v3488_v39 = vpack.c.bf16 %v1146_v33, %v1140_v32  ;;  %v1194_v25 = vld [vmem:[%s7202_s3 + $0xab8] sm:$0xff]  ;;  %v1187_v31 = vld [vmem:[%s7202_s3 + $0xa80] sm:$0xff] }
 0x138   : > { %v3616_v40 = vpack.c.bf16 %v1148_v35, %v1142_v34  ;;  %v1190_v26 = vld [vmem:[%s7202_s3 + $0xa98] sm:$0xff]  ;;  %v1193_v32 = vld [vmem:[%s7202_s3 + $0xab0] sm:$0xff] }
 0x139   : > { %v1189_v35 = vld [vmem:[%s7202_s3 + $0xa90] sm:$0xff] }
 0x13a   : > { %3471 = vmatpush1.bf16.msra.mxu0 %v3470_v43  ;;  %3599 = vmatpush1.bf16.msra.mxu1 %v3598_v44  ;;  %v1147_v43 = vld [vmem:[%s7202_s3 + $0x940] sm:$0xff]  ;;  %v1152_v44 = vld [vmem:[%s7202_s3 + $0x968] sm:$0xff] }
 0x13b   : > { %3473 = vmatprep.subr.bf16.mxu0 %v3472_v49  ;;  %3601 = vmatprep.subr.bf16.mxu1 %v3600_v50  ;;  %v1160_v49 = vld [vmem:[%s7202_s3 + $0x9a8] sm:$0xff]  ;;  %v3490_v50 = vpack.c.bf16 %v1145_v38, %v1139_v37  ;;  %v3618_v51 = vpack.c.bf16 %v1147_v43, %v1141_v41  ;;  %v3492_v27 = vpack.c.bf16 %v1158_v45, %v1152_v44  ;;  %v1206_v37 = vld [vmem:[%s7202_s3 + $0xb18] sm:$0xff]  ;;  %v1199_v43 = vld [vmem:[%s7202_s3 + $0xae0] sm:$0xff] }
 0x13c   : > { %v3620_v53 = vpack.c.bf16 %v1160_v49, %v1154_v46  ;;  %v1202_v38 = vld [vmem:[%s7202_s3 + $0xaf8] sm:$0xff]  ;;  %v1205_v44 = vld [vmem:[%s7202_s3 + $0xb10] sm:$0xff] }
 0x13d   : > { %v1201_v49 = vld [vmem:[%s7202_s3 + $0xaf0] sm:$0xff] }
 0x13e   : > { %3475 = vmatpush1.bf16.msra.mxu0 %v3474_v56  ;;  %3603 = vmatpush1.bf16.msra.mxu1 %v3602_v57  ;;  %v1159_v56 = vld [vmem:[%s7202_s3 + $0x9a0] sm:$0xff]  ;;  %v1164_v57 = vld [vmem:[%s7202_s3 + $0x9c8] sm:$0xff] }
 0x13f   : > { %3477 = vmatprep.subr.bf16.mxu0 %v3476_v61  ;;  %3605 = vmatprep.subr.bf16.mxu1 %v3604_v62  ;;  %v1172_v61 = vld [vmem:[%s7202_s3 + $0xa08] sm:$0xff]  ;;  %v3494_v62 = vpack.c.bf16 %v1157_v47, %v1151_v52  ;;  %v3622_v63 = vpack.c.bf16 %v1159_v56, %v1153_v54  ;;  %v3496_v3 = vpack.c.bf16 %v1170_v58, %v1164_v57  ;;  %v1218_v52 = vld [vmem:[%s7202_s3 + $0xb78] sm:$0xff]  ;;  %v1211_v56 = vld [vmem:[%s7202_s3 + $0xb40] sm:$0xff] }
 0x140   : > { %v3624_v4 = vpack.c.bf16 %v1172_v61, %v1166_v59  ;;  %v1214_v47 = vld [vmem:[%s7202_s3 + $0xb58] sm:$0xff]  ;;  %v1217_v57 = vld [vmem:[%s7202_s3 + $0xb70] sm:$0xff] }
 0x141   : > { %v1213_v61 = vld [vmem:[%s7202_s3 + $0xb50] sm:$0xff] }
 0x142   : > { %3479 = vmatpush1.bf16.msra.mxu0 %v3478_v8  ;;  %3607 = vmatpush1.bf16.msra.mxu1 %v3606_v9  ;;  %v1171_v8 = vld [vmem:[%s7202_s3 + $0xa00] sm:$0xff]  ;;  %v1176_v9 = vld [vmem:[%s7202_s3 + $0xa28] sm:$0xff] }
 0x143   : > { %3481 = vmatprep.subr.bf16.mxu0 %v3480_v12  ;;  %3609 = vmatprep.subr.bf16.mxu1 %v3608_v13  ;;  %v1184_v12 = vld [vmem:[%s7202_s3 + $0xa68] sm:$0xff]  ;;  %v3498_v13 = vpack.c.bf16 %v1169_v2, %v1163_v1  ;;  %v3626_v14 = vpack.c.bf16 %v1171_v8, %v1165_v6  ;;  %v3500_v18 = vpack.c.bf16 %v1182_v10, %v1176_v9  ;;  %v1230_v1 = vld [vmem:[%s7202_s3 + $0xbd8] sm:$0xff]  ;;  %v1223_v8 = vld [vmem:[%s7202_s3 + $0xba0] sm:$0xff] }
 0x144   : > { %v3628_v19 = vpack.c.bf16 %v1184_v12, %v1178_v11  ;;  %v1226_v2 = vld [vmem:[%s7202_s3 + $0xbb8] sm:$0xff]  ;;  %v1229_v11 = vld [vmem:[%s7202_s3 + $0xbd0] sm:$0xff] }
 0x145   : > { %v1225_v12 = vld [vmem:[%s7202_s3 + $0xbb0] sm:$0xff] }
 0x146   : > { %3483 = vmatpush1.bf16.msra.mxu0 %v3482_v22  ;;  %3611 = vmatpush1.bf16.msra.mxu1 %v3610_v23  ;;  %v1183_v22 = vld [vmem:[%s7202_s3 + $0xa60] sm:$0xff]  ;;  %v1188_v23 = vld [vmem:[%s7202_s3 + $0xa88] sm:$0xff] }
 0x147   : > { %3485 = vmatprep.subr.bf16.mxu0 %v3484_v28  ;;  %3613 = vmatprep.subr.bf16.mxu1 %v3612_v29  ;;  %v1196_v28 = vld [vmem:[%s7202_s3 + $0xac8] sm:$0xff]  ;;  %v3502_v29 = vpack.c.bf16 %v1181_v17, %v1175_v16  ;;  %v3630_v30 = vpack.c.bf16 %v1183_v22, %v1177_v21  ;;  %v3504_v33 = vpack.c.bf16 %v1194_v25, %v1188_v23  ;;  %v862_v16 = vld [vmem:[%s7202_s3 + $0x58] sm:$0xff]  ;;  %v855_v21 = vld [vmem:[%s7202_s3 + $0x20] sm:$0xff] }
 0x148   : > { %v3632_v34 = vpack.c.bf16 %v1196_v28, %v1190_v26  ;;  %v3518_v17 = vpack.c.bf16 %v1229_v11, %v1223_v8  ;;  %v861_v22 = vld [vmem:[%s7202_s3 + $0x50] sm:$0xff]  ;;  %v868_v23 = vld [vmem:[%s7202_s3 + $0x88] sm:$0xff]  ;;  %v874_v25 = vld [vmem:[%s7202_s3 + $0xb8] sm:$0xff] }
 0x149   : > { %v3650_v26 = vpack.c.bf16 %v861_v22, %v855_v21  ;;  %v3652_v28 = vpack.c.bf16 %v874_v25, %v868_v23  ;;  %v952_v8 = vld [vmem:[%s7202_s3 + $0x328] sm:$0xff]  ;;  %v969_v21 = vld [vmem:[%s7202_s3 + $0x3b0] sm:$0xff]  ;;  %v982_v23 = vld [vmem:[%s7202_s3 + $0x418] sm:$0xff] }
 0x14a   : > { %3487 = vmatpush1.bf16.msra.mxu0 %v3486_v24  ;;  %3615 = vmatpush1.bf16.msra.mxu1 %v3614_v36  ;;  %v1195_v24 = vld [vmem:[%s7202_s3 + $0xac0] sm:$0xff]  ;;  %v1200_v36 = vld [vmem:[%s7202_s3 + $0xae8] sm:$0xff] }
 0x14b   : > { %3489 = vmatprep.subr.bf16.mxu0 %v3488_v39  ;;  %3617 = vmatprep.subr.bf16.mxu1 %v3616_v40  ;;  %v1208_v39 = vld [vmem:[%s7202_s3 + $0xb28] sm:$0xff]  ;;  %v3506_v40 = vpack.c.bf16 %v1193_v32, %v1187_v31  ;;  %v3634_v41 = vpack.c.bf16 %v1195_v24, %v1189_v35  ;;  %v3508_v45 = vpack.c.bf16 %v1206_v37, %v1200_v36  ;;  %v886_v32 = vld [vmem:[%s7202_s3 + $0x118] sm:$0xff]  ;;  %v879_v35 = vld [vmem:[%s7202_s3 + $0xe0] sm:$0xff] }
 0x14c   : > { %v3636_v46 = vpack.c.bf16 %v1208_v39, %v1202_v38  ;;  %v880_v31 = vld [vmem:[%s7202_s3 + $0xe8] sm:$0xff]  ;;  %v885_v24 = vld [vmem:[%s7202_s3 + $0x110] sm:$0xff]  ;;  %v898_v37 = vld [vmem:[%s7202_s3 + $0x178] sm:$0xff] }
 0x14d   : > { %v892_v36 = vld [vmem:[%s7202_s3 + $0x148] sm:$0xff]  ;;  %v3658_v38 = vpack.c.bf16 %v885_v24, %v879_v35  ;;  %v993_v35 = vld [vmem:[%s7202_s3 + $0x470] sm:$0xff] }
 0x14e   : > { %3491 = vmatpush1.bf16.msra.mxu0 %v3490_v50  ;;  %3619 = vmatpush1.bf16.msra.mxu1 %v3618_v51  ;;  %v1207_v50 = vld [vmem:[%s7202_s3 + $0xb20] sm:$0xff]  ;;  %v1212_v51 = vld [vmem:[%s7202_s3 + $0xb48] sm:$0xff]  ;;  %v3660_v39 = vpack.c.bf16 %v898_v37, %v892_v36  ;;  %v1006_v36 = vld [vmem:[%s7202_s3 + $0x4d8] sm:$0xff] }
 0x14f   : > { %3493 = vmatprep.subr.bf16.mxu0 %v3492_v27  ;;  %3621 = vmatprep.subr.bf16.mxu1 %v3620_v53  ;;  %v1220_v27 = vld [vmem:[%s7202_s3 + $0xb88] sm:$0xff]  ;;  %v3510_v53 = vpack.c.bf16 %v1205_v44, %v1199_v43  ;;  %v3638_v54 = vpack.c.bf16 %v1207_v50, %v1201_v49  ;;  %v3512_v58 = vpack.c.bf16 %v1218_v52, %v1212_v51  ;;  %v910_v44 = vld [vmem:[%s7202_s3 + $0x1d8] sm:$0xff]  ;;  %v903_v49 = vld [vmem:[%s7202_s3 + $0x1a0] sm:$0xff] }
 0x150   : > { %v3640_v59 = vpack.c.bf16 %v1220_v27, %v1214_v47  ;;  %v904_v43 = vld [vmem:[%s7202_s3 + $0x1a8] sm:$0xff]  ;;  %v909_v50 = vld [vmem:[%s7202_s3 + $0x1d0] sm:$0xff]  ;;  %v922_v52 = vld [vmem:[%s7202_s3 + $0x238] sm:$0xff] }
 0x151   : > { %v916_v51 = vld [vmem:[%s7202_s3 + $0x208] sm:$0xff]  ;;  %v3666_v47 = vpack.c.bf16 %v909_v50, %v903_v49  ;;  %v1017_v49 = vld [vmem:[%s7202_s3 + $0x530] sm:$0xff] }
 0x152   : > { %3495 = vmatpush1.bf16.msra.mxu0 %v3494_v62  ;;  %3623 = vmatpush1.bf16.msra.mxu1 %v3622_v63  ;;  %v1219_v62 = vld [vmem:[%s7202_s3 + $0xb80] sm:$0xff]  ;;  %v1224_v63 = vld [vmem:[%s7202_s3 + $0xba8] sm:$0xff]  ;;  %v3668_v27 = vpack.c.bf16 %v922_v52, %v916_v51  ;;  %v1030_v51 = vld [vmem:[%s7202_s3 + $0x598] sm:$0xff] }
 0x153   : > { %3497 = vmatprep.subr.bf16.mxu0 %v3496_v3  ;;  %3625 = vmatprep.subr.bf16.mxu1 %v3624_v4  ;;  %v1232_v3 = vld [vmem:[%s7202_s3 + $0xbe8] sm:$0xff]  ;;  %v3514_v4 = vpack.c.bf16 %v1217_v57, %v1211_v56  ;;  %v3642_v6 = vpack.c.bf16 %v1219_v62, %v1213_v61  ;;  %v3516_v9 = vpack.c.bf16 %v1230_v1, %v1224_v63  ;;  %v934_v57 = vld [vmem:[%s7202_s3 + $0x298] sm:$0xff]  ;;  %v927_v61 = vld [vmem:[%s7202_s3 + $0x260] sm:$0xff] }
 0x154   : > { %v3644_v10 = vpack.c.bf16 %v1232_v3, %v1226_v2  ;;  %v928_v56 = vld [vmem:[%s7202_s3 + $0x268] sm:$0xff]  ;;  %v933_v62 = vld [vmem:[%s7202_s3 + $0x290] sm:$0xff]  ;;  %v946_v1 = vld [vmem:[%s7202_s3 + $0x2f8] sm:$0xff] }
 0x155   : > { %v940_v63 = vld [vmem:[%s7202_s3 + $0x2c8] sm:$0xff]  ;;  %v3674_v2 = vpack.c.bf16 %v933_v62, %v927_v61  ;;  %v1041_v61 = vld [vmem:[%s7202_s3 + $0x5f0] sm:$0xff] }
 0x156   : > { %3499 = vmatpush1.bf16.msra.mxu0 %v3498_v13  ;;  %3627 = vmatpush1.bf16.msra.mxu1 %v3626_v14  ;;  %v1231_v13 = vld [vmem:[%s7202_s3 + $0xbe0] sm:$0xff]  ;;  %v856_v14 = vld [vmem:[%s7202_s3 + $0x28] sm:$0xff]  ;;  %v3676_v3 = vpack.c.bf16 %v946_v1, %v940_v63  ;;  %v1054_v63 = vld [vmem:[%s7202_s3 + $0x658] sm:$0xff] }
 0x157   : > { %3501 = vmatprep.subr.bf16.mxu0 %v3500_v18  ;;  %3629 = vmatprep.subr.bf16.mxu1 %v3628_v19  ;;  %v3646_v18 = vpack.c.bf16 %v1231_v13, %v1225_v12  ;;  %v3648_v19 = vpack.c.bf16 %v862_v16, %v856_v14  ;;  %v951_v12 = vld [vmem:[%s7202_s3 + $0x320] sm:$0xff]  ;;  %v957_v13 = vld [vmem:[%s7202_s3 + $0x350] sm:$0xff]  ;;  %v964_v14 = vld [vmem:[%s7202_s3 + $0x388] sm:$0xff] }
 0x158   : > { %v970_v16 = vld [vmem:[%s7202_s3 + $0x3b8] sm:$0xff]  ;;  %v976_v22 = vld [vmem:[%s7202_s3 + $0x3e8] sm:$0xff] }
 0x159   : > { %v1000_v24 = vld [vmem:[%s7202_s3 + $0x4a8] sm:$0xff] }
 0x15a   : > { %3503 = vmatpush1.bf16.msra.mxu0 %v3502_v29  ;;  %3631 = vmatpush1.bf16.msra.mxu1 %v3630_v30  ;;  %v867_v29 = vld [vmem:[%s7202_s3 + $0x80] sm:$0xff]  ;;  %v873_v30 = vld [vmem:[%s7202_s3 + $0xb0] sm:$0xff]  ;;  %v1024_v50 = vld [vmem:[%s7202_s3 + $0x568] sm:$0xff] }
 0x15b   : > { %3505 = vmatprep.subr.bf16.mxu0 %v3504_v33  ;;  %3633 = vmatprep.subr.bf16.mxu1 %v3632_v34  ;;  %v3654_v33 = vpack.c.bf16 %v873_v30, %v867_v29  ;;  %v3656_v34 = vpack.c.bf16 %v886_v32, %v880_v31  ;;  %v981_v29 = vld [vmem:[%s7202_s3 + $0x410] sm:$0xff]  ;;  %v988_v30 = vld [vmem:[%s7202_s3 + $0x448] sm:$0xff]  ;;  %v994_v31 = vld [vmem:[%s7202_s3 + $0x478] sm:$0xff] }
 0x15c   : > { %v1048_v62 = vld [vmem:[%s7202_s3 + $0x628] sm:$0xff] }
 0x15e   : > { %3507 = vmatpush1.bf16.msra.mxu0 %v3506_v40  ;;  %3635 = vmatpush1.bf16.msra.mxu1 %v3634_v41  ;;  %v891_v40 = vld [vmem:[%s7202_s3 + $0x140] sm:$0xff]  ;;  %v897_v41 = vld [vmem:[%s7202_s3 + $0x170] sm:$0xff] }
 0x15f   : > { %3509 = vmatprep.subr.bf16.mxu0 %v3508_v45  ;;  %3637 = vmatprep.subr.bf16.mxu1 %v3636_v46  ;;  %v3662_v45 = vpack.c.bf16 %v897_v41, %v891_v40  ;;  %v3664_v46 = vpack.c.bf16 %v910_v44, %v904_v43  ;;  %v1005_v40 = vld [vmem:[%s7202_s3 + $0x4d0] sm:$0xff]  ;;  %v1012_v41 = vld [vmem:[%s7202_s3 + $0x508] sm:$0xff]  ;;  %v1018_v43 = vld [vmem:[%s7202_s3 + $0x538] sm:$0xff] }
 0x162   : > { %3511 = vmatpush1.bf16.msra.mxu0 %v3510_v53  ;;  %3639 = vmatpush1.bf16.msra.mxu1 %v3638_v54  ;;  %v915_v53 = vld [vmem:[%s7202_s3 + $0x200] sm:$0xff]  ;;  %v921_v54 = vld [vmem:[%s7202_s3 + $0x230] sm:$0xff] }
 0x163   : > { %3513 = vmatprep.subr.bf16.mxu0 %v3512_v58  ;;  %3641 = vmatprep.subr.bf16.mxu1 %v3640_v59  ;;  %v3670_v58 = vpack.c.bf16 %v921_v54, %v915_v53  ;;  %v3672_v59 = vpack.c.bf16 %v934_v57, %v928_v56  ;;  %v1029_v53 = vld [vmem:[%s7202_s3 + $0x590] sm:$0xff]  ;;  %v1036_v54 = vld [vmem:[%s7202_s3 + $0x5c8] sm:$0xff]  ;;  %v1042_v56 = vld [vmem:[%s7202_s3 + $0x5f8] sm:$0xff] }
 0x166   : > { %3515 = vmatpush1.bf16.msra.mxu0 %v3514_v4  ;;  %3643 = vmatpush1.bf16.msra.mxu1 %v3642_v6  ;;  %v939_v4 = vld [vmem:[%s7202_s3 + $0x2c0] sm:$0xff]  ;;  %v945_v6 = vld [vmem:[%s7202_s3 + $0x2f0] sm:$0xff] }
 0x167   : > { %3517 = vmatprep.subr.bf16.mxu0 %v3516_v9  ;;  %3645 = vmatprep.subr.bf16.mxu1 %v3644_v10  ;;  %v958_v9 = vld [vmem:[%s7202_s3 + $0x358] sm:$0xff]  ;;  %v3678_v10 = vpack.c.bf16 %v945_v6, %v939_v4  ;;  %v1053_v4 = vld [vmem:[%s7202_s3 + $0x650] sm:$0xff]  ;;  %v1060_v6 = vld [vmem:[%s7202_s3 + $0x688] sm:$0xff] }
 0x168   : > { %v3680_v11 = vpack.c.bf16 %v958_v9, %v952_v8  ;;  %v1066_v8 = vld [vmem:[%s7202_s3 + $0x6b8] sm:$0xff] }
 0x16a   : > { %3519 = vmatpush1.bf16.msra.mxu0 %v3518_v17  ;;  %3647 = vmatpush1.bf16.msra.mxu1 %v3646_v18  ;;  %v3682_v17 = vpack.c.bf16 %v957_v13, %v951_v12  ;;  %v3684_v18 = vpack.c.bf16 %v970_v16, %v964_v14  ;;  %v1065_v12 = vld [vmem:[%s7202_s3 + $0x6b0] sm:$0xff]  ;;  %v1072_v13 = vld [vmem:[%s7202_s3 + $0x6e8] sm:$0xff]  ;;  %v1078_v14 = vld [vmem:[%s7202_s3 + $0x718] sm:$0xff] }
 0x16b   : > { %3649 = vmatprep.subr.bf16.mxu0 %v3648_v19  ;;  %v963_v19 = vld [vmem:[%s7202_s3 + $0x380] sm:$0xff] }
 0x16c   : > { %v3686_v25 = vpack.c.bf16 %v969_v21, %v963_v19  ;;  %v1077_v19 = vld [vmem:[%s7202_s3 + $0x710] sm:$0xff]  ;;  %v1084_v21 = vld [vmem:[%s7202_s3 + $0x748] sm:$0xff] }
 0x16d   : > { %1377 = vmatmul.mubr.f32.vlgmr.msra.gmra.mrb[4].mxu0 %v5249_v42  ;;  %1531 = vmatmul.mubr.f32.vlgmr.msra.gmra.mrb[4].mxu1 %v5249_v42 }
 0x16e   : > { %1382 = vmatprep.mubr.f32.mxu0 %v5287_v60  ;;  %1536 = vmatprep.mubr.f32.mxu1 %v5287_v60 }
 0x16f   : > { %3651 = vmatpush1.bf16.msra.mxu0 %v3650_v26  ;;  %v3688_v26 = vpack.c.bf16 %v982_v23, %v976_v22  ;;  %v1090_v22 = vld [vmem:[%s7202_s3 + $0x778] sm:$0xff] }
 0x170   : > { %3653 = vmatprep.subr.bf16.mxu0 %v3652_v28  ;;  %v975_v28 = vld [vmem:[%s7202_s3 + $0x3e0] sm:$0xff] }
 0x171   : > { %1383 = vmatmul.mubr.f32.gmra.mrb[6].mxu0 %v5279_v55  ;;  %1537 = vmatmul.mubr.f32.gmra.mrb[6].mxu1 %v5279_v55  ;;  %v3690_v32 = vpack.c.bf16 %v981_v29, %v975_v28  ;;  %v1089_v28 = vld [vmem:[%s7202_s3 + $0x770] sm:$0xff]  ;;  %v1096_v29 = vld [vmem:[%s7202_s3 + $0x7a8] sm:$0xff] }
 0x172   : > { %1607 = vmatprep.mubr.f32.mxu0 %v5169_v5 }
 0x173   : > { %3655 = vmatpush1.bf16.msra.mxu0 %v3654_v33  ;;  %v3692_v33 = vpack.c.bf16 %v994_v31, %v988_v30  ;;  %v1102_v30 = vld [vmem:[%s7202_s3 + $0x7d8] sm:$0xff] }
 0x174   : > { %3657 = vmatprep.subr.bf16.mxu0 %v3656_v34  ;;  %v987_v34 = vld [vmem:[%s7202_s3 + $0x440] sm:$0xff] }
 0x175   : > { %v3694_v37 = vpack.c.bf16 %v993_v35, %v987_v34  ;;  %v1101_v34 = vld [vmem:[%s7202_s3 + $0x7d0] sm:$0xff]  ;;  %v1108_v35 = vld [vmem:[%s7202_s3 + $0x808] sm:$0xff] }
 0x177   : > { %3659 = vmatpush1.bf16.msra.mxu0 %v3658_v38  ;;  %v3696_v38 = vpack.c.bf16 %v1006_v36, %v1000_v24  ;;  %v1114_v24 = vld [vmem:[%s7202_s3 + $0x838] sm:$0xff] }
 0x178   : > { %3661 = vmatprep.subr.bf16.mxu0 %v3660_v39  ;;  %v999_v39 = vld [vmem:[%s7202_s3 + $0x4a0] sm:$0xff] }
 0x179   : > { %v3698_v44 = vpack.c.bf16 %v1005_v40, %v999_v39  ;;  %v1113_v39 = vld [vmem:[%s7202_s3 + $0x830] sm:$0xff]  ;;  %v1120_v40 = vld [vmem:[%s7202_s3 + $0x868] sm:$0xff] }
 0x17b   : > { %3663 = vmatpush1.bf16.msra.mxu0 %v3662_v45  ;;  %v3700_v45 = vpack.c.bf16 %v1018_v43, %v1012_v41  ;;  %v1126_v41 = vld [vmem:[%s7202_s3 + $0x898] sm:$0xff] }
 0x17c   : > { %3665 = vmatprep.subr.bf16.mxu0 %v3664_v46  ;;  %v1011_v46 = vld [vmem:[%s7202_s3 + $0x500] sm:$0xff] }
 0x17d   : > { %v3702_v52 = vpack.c.bf16 %v1017_v49, %v1011_v46  ;;  %v1125_v46 = vld [vmem:[%s7202_s3 + $0x890] sm:$0xff]  ;;  %v1132_v49 = vld [vmem:[%s7202_s3 + $0x8c8] sm:$0xff] }
 0x17f   : > { %3667 = vmatpush1.bf16.msra.mxu0 %v3666_v47  ;;  %v3704_v47 = vpack.c.bf16 %v1030_v51, %v1024_v50  ;;  %v1138_v50 = vld [vmem:[%s7202_s3 + $0x8f8] sm:$0xff] }
 0x180   : > { %3669 = vmatprep.subr.bf16.mxu0 %v3668_v27  ;;  %v1023_v27 = vld [vmem:[%s7202_s3 + $0x560] sm:$0xff] }
 0x181   : > { %v3706_v57 = vpack.c.bf16 %v1029_v53, %v1023_v27  ;;  %v1137_v27 = vld [vmem:[%s7202_s3 + $0x8f0] sm:$0xff]  ;;  %v1144_v53 = vld [vmem:[%s7202_s3 + $0x928] sm:$0xff] }
 0x183   : > { %3671 = vmatpush1.bf16.msra.mxu0 %v3670_v58  ;;  %v3708_v58 = vpack.c.bf16 %v1042_v56, %v1036_v54  ;;  %v1150_v54 = vld [vmem:[%s7202_s3 + $0x958] sm:$0xff] }
 0x184   : > { %3673 = vmatprep.subr.bf16.mxu0 %v3672_v59  ;;  %v1035_v59 = vld [vmem:[%s7202_s3 + $0x5c0] sm:$0xff] }
 0x185   : > { %v3710_v1 = vpack.c.bf16 %v1041_v61, %v1035_v59  ;;  %v1149_v59 = vld [vmem:[%s7202_s3 + $0x950] sm:$0xff]  ;;  %v1156_v61 = vld [vmem:[%s7202_s3 + $0x988] sm:$0xff] }
 0x187   : > { %3675 = vmatpush1.bf16.msra.mxu0 %v3674_v2  ;;  %v3712_v2 = vpack.c.bf16 %v1054_v63, %v1048_v62  ;;  %v1162_v62 = vld [vmem:[%s7202_s3 + $0x9b8] sm:$0xff] }
 0x188   : > { %3677 = vmatprep.subr.bf16.mxu0 %v3676_v3  ;;  %v1047_v3 = vld [vmem:[%s7202_s3 + $0x620] sm:$0xff] }
 0x189   : > { %v3714_v9 = vpack.c.bf16 %v1053_v4, %v1047_v3  ;;  %v1161_v3 = vld [vmem:[%s7202_s3 + $0x9b0] sm:$0xff]  ;;  %v1168_v4 = vld [vmem:[%s7202_s3 + $0x9e8] sm:$0xff] }
 0x18b   : > { %3679 = vmatpush1.bf16.msra.mxu0 %v3678_v10  ;;  %v3716_v10 = vpack.c.bf16 %v1066_v8, %v1060_v6  ;;  %v1174_v6 = vld [vmem:[%s7202_s3 + $0xa18] sm:$0xff] }
 0x18c   : > { %3681 = vmatprep.subr.bf16.mxu0 %v3680_v11  ;;  %v1059_v11 = vld [vmem:[%s7202_s3 + $0x680] sm:$0xff] }
 0x18d   : > { %v3718_v16 = vpack.c.bf16 %v1065_v12, %v1059_v11  ;;  %v1173_v11 = vld [vmem:[%s7202_s3 + $0xa10] sm:$0xff]  ;;  %v1180_v12 = vld [vmem:[%s7202_s3 + $0xa48] sm:$0xff] }
 0x18f   : > { %3683 = vmatpush1.bf16.msra.mxu0 %v3682_v17  ;;  %v3720_v17 = vpack.c.bf16 %v1078_v14, %v1072_v13  ;;  %v1186_v13 = vld [vmem:[%s7202_s3 + $0xa78] sm:$0xff] }
 0x190   : > { %3685 = vmatprep.subr.bf16.mxu0 %v3684_v18  ;;  %v1071_v18 = vld [vmem:[%s7202_s3 + $0x6e0] sm:$0xff] }
 0x191   : > { %v3722_v23 = vpack.c.bf16 %v1077_v19, %v1071_v18  ;;  %v1185_v18 = vld [vmem:[%s7202_s3 + $0xa70] sm:$0xff]  ;;  %v1192_v19 = vld [vmem:[%s7202_s3 + $0xaa8] sm:$0xff] }
 0x193   : > { %3687 = vmatpush1.bf16.msra.mxu0 %v3686_v25  ;;  %v3724_v25 = vpack.c.bf16 %v1090_v22, %v1084_v21  ;;  %v1198_v21 = vld [vmem:[%s7202_s3 + $0xad8] sm:$0xff] }
 0x194   : > { %3689 = vmatprep.subr.bf16.mxu0 %v3688_v26  ;;  %v1083_v26 = vld [vmem:[%s7202_s3 + $0x740] sm:$0xff] }
 0x195   : > { %v3726_v31 = vpack.c.bf16 %v1089_v28, %v1083_v26  ;;  %v1197_v26 = vld [vmem:[%s7202_s3 + $0xad0] sm:$0xff]  ;;  %v1204_v28 = vld [vmem:[%s7202_s3 + $0xb08] sm:$0xff] }
 0x197   : > { %3691 = vmatpush1.bf16.msra.mxu0 %v3690_v32  ;;  %v3728_v32 = vpack.c.bf16 %v1102_v30, %v1096_v29  ;;  %v1210_v29 = vld [vmem:[%s7202_s3 + $0xb38] sm:$0xff] }
 0x198   : > { %3693 = vmatprep.subr.bf16.mxu0 %v3692_v33  ;;  %v1095_v33 = vld [vmem:[%s7202_s3 + $0x7a0] sm:$0xff] }
 0x199   : > { %v3730_v36 = vpack.c.bf16 %v1101_v34, %v1095_v33  ;;  %v1209_v33 = vld [vmem:[%s7202_s3 + $0xb30] sm:$0xff]  ;;  %v1216_v34 = vld [vmem:[%s7202_s3 + $0xb68] sm:$0xff] }
 0x19b   : > { %3695 = vmatpush1.bf16.msra.mxu0 %v3694_v37  ;;  %v3732_v37 = vpack.c.bf16 %v1114_v24, %v1108_v35  ;;  %v1222_v35 = vld [vmem:[%s7202_s3 + $0xb98] sm:$0xff] }
 0x19c   : > { %3697 = vmatprep.subr.bf16.mxu0 %v3696_v38  ;;  %v1107_v38 = vld [vmem:[%s7202_s3 + $0x800] sm:$0xff] }
 0x19d   : > { %v3734_v43 = vpack.c.bf16 %v1113_v39, %v1107_v38  ;;  %v1221_v38 = vld [vmem:[%s7202_s3 + $0xb90] sm:$0xff]  ;;  %v1228_v39 = vld [vmem:[%s7202_s3 + $0xbc8] sm:$0xff] }
 0x19f   : > { %3699 = vmatpush1.bf16.msra.mxu0 %v3698_v44  ;;  %v3736_v44 = vpack.c.bf16 %v1126_v41, %v1120_v40  ;;  %v1234_v40 = vld [vmem:[%s7202_s3 + $0xbf8] sm:$0xff] }
 0x1a0   : > { %3701 = vmatprep.subr.bf16.mxu0 %v3700_v45  ;;  %v1119_v45 = vld [vmem:[%s7202_s3 + $0x860] sm:$0xff] }
 0x1a1   : > { %v3738_v51 = vpack.c.bf16 %v1125_v46, %v1119_v45  ;;  %v1233_v45 = vld [vmem:[%s7202_s3 + $0xbf0] sm:$0xff] }
 0x1a3   : > { %3703 = vmatpush1.bf16.msra.mxu0 %v3702_v52  ;;  %v3740_v52 = vpack.c.bf16 %v1138_v50, %v1132_v49 }
 0x1a4   : > { %3705 = vmatprep.subr.bf16.mxu0 %v3704_v47  ;;  %v1131_v47 = vld [vmem:[%s7202_s3 + $0x8c0] sm:$0xff] }
 0x1a5   : > { %v3742_v56 = vpack.c.bf16 %v1137_v27, %v1131_v47 }
 0x1a7   : > { %3707 = vmatpush1.bf16.msra.mxu0 %v3706_v57  ;;  %v3744_v57 = vpack.c.bf16 %v1150_v54, %v1144_v53 }
 0x1a8   : > { %3709 = vmatprep.subr.bf16.mxu0 %v3708_v58  ;;  %v1143_v58 = vld [vmem:[%s7202_s3 + $0x920] sm:$0xff] }
 0x1a9   : > { %v3746_v63 = vpack.c.bf16 %v1149_v59, %v1143_v58 }
 0x1ab   : > { %3711 = vmatpush1.bf16.msra.mxu0 %v3710_v1  ;;  %v3748_v1 = vpack.c.bf16 %v1162_v62, %v1156_v61 }
 0x1ac   : > { %3713 = vmatprep.subr.bf16.mxu0 %v3712_v2  ;;  %v1155_v2 = vld [vmem:[%s7202_s3 + $0x980] sm:$0xff] }
 0x1ad   : > { %v3750_v8 = vpack.c.bf16 %v1161_v3, %v1155_v2 }
 0x1ae   : > { %1608 = vmatmul.mubr.f32.vlgmr.msra.gmra.mrb[8].mxu0 %v5161_v0 }
 0x1af   : > { %1613 = vmatprep.mubr.f32.mxu0 %v5201_v20  ;;  %3715 = vmatpush1.bf16.msra.mxu0 %v3714_v9  ;;  %v3752_v9 = vpack.c.bf16 %v1174_v6, %v1168_v4 }
 0x1b0   : > { %3717 = vmatprep.subr.bf16.mxu0 %v3716_v10  ;;  %v1167_v10 = vld [vmem:[%s7202_s3 + $0x9e0] sm:$0xff] }
 0x1b1   : > { %v3754_v14 = vpack.c.bf16 %v1173_v11, %v1167_v10 }
 0x1b2   : > { %1614 = vmatmul.mubr.f32.gmra.mrb[10].mxu0 %v5193_v15 }
 0x1b3   : > { %3719 = vmatpush1.bf16.msra.mxu0 %v3718_v16  ;;  %1684 = vmatprep.mubr.f32.mxu0 %v5257_v48  ;;  %v3756_v16 = vpack.c.bf16 %v1186_v13, %v1180_v12 }
 0x1b4   : > { %3721 = vmatprep.subr.bf16.mxu0 %v3720_v17  ;;  %v1179_v17 = vld [vmem:[%s7202_s3 + $0xa40] sm:$0xff] }
 0x1b5   : > { %v3758_v22 = vpack.c.bf16 %v1185_v18, %v1179_v17 }
 0x1b7   : > { %3723 = vmatpush1.bf16.msra.mxu0 %v3722_v23  ;;  %v3760_v23 = vpack.c.bf16 %v1198_v21, %v1192_v19  ;;  %v1976_v21 = vld [vmem:[%s7203_s4 + $0x18] sm:$0xff] }
 0x1b8   : > { %3725 = vmatprep.subr.bf16.mxu0 %v3724_v25  ;;  %v1191_v25 = vld [vmem:[%s7202_s3 + $0xaa0] sm:$0xff] }
 0x1b9   : > { %v3762_v30 = vpack.c.bf16 %v1197_v26, %v1191_v25  ;;  %v1975_v25 = vld [vmem:[%s7203_s4 + $0x10] sm:$0xff]  ;;  %v1981_v26 = vld [vmem:[%s7203_s4 + $0x40] sm:$0xff] }
 0x1bb   : > { %3727 = vmatpush1.bf16.msra.mxu0 %v3726_v31  ;;  %v3764_v31 = vpack.c.bf16 %v1210_v29, %v1204_v28  ;;  %v3918_v28 = vpack.c.bf16 %v1981_v26, %v1975_v25  ;;  %v1988_v29 = vld [vmem:[%s7203_s4 + $0x78] sm:$0xff]  ;;  %v2090_v26 = vld [vmem:[%s7203_s4 + $0x3a8] sm:$0xff] }
 0x1bc   : > { %3729 = vmatprep.subr.bf16.mxu0 %v3728_v32  ;;  %v1203_v32 = vld [vmem:[%s7202_s3 + $0xb00] sm:$0xff]  ;;  %v2084_v25 = vld [vmem:[%s7203_s4 + $0x378] sm:$0xff] }
 0x1bd   : > { %v3766_v24 = vpack.c.bf16 %v1209_v33, %v1203_v32  ;;  %v1987_v32 = vld [vmem:[%s7203_s4 + $0x70] sm:$0xff]  ;;  %v1993_v33 = vld [vmem:[%s7203_s4 + $0xa0] sm:$0xff] }
 0x1bf   : > { %3731 = vmatpush1.bf16.msra.mxu0 %v3730_v36  ;;  %v3768_v36 = vpack.c.bf16 %v1222_v35, %v1216_v34  ;;  %v3922_v34 = vpack.c.bf16 %v1993_v33, %v1987_v32  ;;  %v2000_v35 = vld [vmem:[%s7203_s4 + $0xd8] sm:$0xff]  ;;  %v2102_v33 = vld [vmem:[%s7203_s4 + $0x408] sm:$0xff] }
 0x1c0   : > { %3733 = vmatprep.subr.bf16.mxu0 %v3732_v37  ;;  %v1215_v37 = vld [vmem:[%s7202_s3 + $0xb60] sm:$0xff]  ;;  %v2096_v32 = vld [vmem:[%s7203_s4 + $0x3d8] sm:$0xff] }
 0x1c1   : > { %v3770_v41 = vpack.c.bf16 %v1221_v38, %v1215_v37  ;;  %v1999_v37 = vld [vmem:[%s7203_s4 + $0xd0] sm:$0xff]  ;;  %v2005_v38 = vld [vmem:[%s7203_s4 + $0x100] sm:$0xff] }
 0x1c3   : > { %3735 = vmatpush1.bf16.msra.mxu0 %v3734_v43  ;;  %v3772_v43 = vpack.c.bf16 %v1234_v40, %v1228_v39  ;;  %v2012_v39 = vld [vmem:[%s7203_s4 + $0x138] sm:$0xff]  ;;  %v3926_v40 = vpack.c.bf16 %v2005_v38, %v1999_v37  ;;  %v2114_v38 = vld [vmem:[%s7203_s4 + $0x468] sm:$0xff] }
 0x1c4   : > { %3737 = vmatprep.subr.bf16.mxu0 %v3736_v44  ;;  %v1227_v44 = vld [vmem:[%s7202_s3 + $0xbc0] sm:$0xff]  ;;  %v2108_v37 = vld [vmem:[%s7203_s4 + $0x438] sm:$0xff] }
 0x1c5   : > { %v3774_v46 = vpack.c.bf16 %v1233_v45, %v1227_v44  ;;  %v2011_v44 = vld [vmem:[%s7203_s4 + $0x130] sm:$0xff]  ;;  %v2017_v45 = vld [vmem:[%s7203_s4 + $0x160] sm:$0xff] }
 0x1c7   : > { %3739 = vmatpush1.bf16.msra.mxu0 %v3738_v51 }
 0x1c8   : > { %3741 = vmatprep.subr.bf16.mxu0 %v3740_v52 }
 0x1cb   : > { %3743 = vmatpush1.bf16.msra.mxu0 %v3742_v56 }
 0x1cc   : > { %3745 = vmatprep.subr.bf16.mxu0 %v3744_v57 }
 0x1cf   : > { %3747 = vmatpush1.bf16.msra.mxu0 %v3746_v63 }
 0x1d0   : > { %3749 = vmatprep.subr.bf16.mxu0 %v3748_v1 }
 0x1d3   : > { %3751 = vmatpush1.bf16.msra.mxu0 %v3750_v8 }
 0x1d4   : > { %3753 = vmatprep.subr.bf16.mxu0 %v3752_v9 }
 0x1d7   : > { %3755 = vmatpush1.bf16.msra.mxu0 %v3754_v14 }
 0x1d8   : > { %3757 = vmatprep.subr.bf16.mxu0 %v3756_v16 }
 0x1db   : > { %3759 = vmatpush1.bf16.msra.mxu0 %v3758_v22  ;;  %v1982_v22 = vld [vmem:[%s7203_s4 + $0x48] sm:$0xff] }
 0x1dc   : > { %3761 = vmatprep.subr.bf16.mxu0 %v3760_v23  ;;  %v3916_v23 = vpack.c.bf16 %v1982_v22, %v1976_v21  ;;  %v2071_v22 = vld [vmem:[%s7203_s4 + $0x310] sm:$0xff] }
 0x1df   : > { %3763 = vmatpush1.bf16.msra.mxu0 %v3762_v30  ;;  %v1994_v30 = vld [vmem:[%s7203_s4 + $0xa8] sm:$0xff] }
 0x1e0   : > { %3765 = vmatprep.subr.bf16.mxu0 %v3764_v31  ;;  %v3920_v31 = vpack.c.bf16 %v1994_v30, %v1988_v29  ;;  %v3952_v29 = vpack.c.bf16 %v2090_v26, %v2084_v25  ;;  %v2083_v30 = vld [vmem:[%s7203_s4 + $0x370] sm:$0xff]  ;;  %v2004_v25 = vld [vmem:[%s7203_s4 + $0xf8] sm:$0xff] }
 0x1e3   : > { %3767 = vmatpush1.bf16.msra.mxu0 %v3766_v24  ;;  %v2006_v24 = vld [vmem:[%s7203_s4 + $0x108] sm:$0xff] }
 0x1e4   : > { %3769 = vmatprep.subr.bf16.mxu0 %v3768_v36  ;;  %v3924_v36 = vpack.c.bf16 %v2006_v24, %v2000_v35  ;;  %v3956_v35 = vpack.c.bf16 %v2102_v33, %v2096_v32  ;;  %v2095_v24 = vld [vmem:[%s7203_s4 + $0x3d0] sm:$0xff]  ;;  %v2016_v32 = vld [vmem:[%s7203_s4 + $0x158] sm:$0xff] }
 0x1e7   : > { %3771 = vmatpush1.bf16.msra.mxu0 %v3770_v41  ;;  %v2018_v41 = vld [vmem:[%s7203_s4 + $0x168] sm:$0xff] }
 0x1e8   : > { %3773 = vmatprep.subr.bf16.mxu0 %v3772_v43  ;;  %v3928_v43 = vpack.c.bf16 %v2018_v41, %v2012_v39  ;;  %v2107_v41 = vld [vmem:[%s7203_s4 + $0x430] sm:$0xff] }
 0x1eb   : > { %3775 = vmatpush1.bf16.msra.mxu0 %v3774_v46  ;;  %v2024_v46 = vld [vmem:[%s7203_s4 + $0x198] sm:$0xff] }
 0x1ec   : > { %3917 = vmatprep.subr.bf16.mxu0 %v3916_v23  ;;  %v2077_v23 = vld [vmem:[%s7203_s4 + $0x340] sm:$0xff] }
 0x1ee   : > { %1685 = vmatmul.mubr.f32.vlgmr.msra.gmra.mrb[8].mxu0 %v5249_v42 }
 0x1ef   : > { %1690 = vmatprep.mubr.f32.mxu0 %v5287_v60  ;;  %3919 = vmatpush1.bf16.msra.mxu0 %v3918_v28  ;;  %v3950_v28 = vpack.c.bf16 %v2077_v23, %v2071_v22  ;;  %v1991_v22 = vld [vmem:[%s7203_s4 + $0x90] sm:$0xff]  ;;  %v1998_v23 = vld [vmem:[%s7203_s4 + $0xc8] sm:$0xff] }
 0x1f0   : > { %3921 = vmatprep.subr.bf16.mxu0 %v3920_v31  ;;  %v2089_v31 = vld [vmem:[%s7203_s4 + $0x3a0] sm:$0xff] }
 0x1f2   : > { %1691 = vmatmul.mubr.f32.gmra.mrb[10].mxu0 %v5279_v55 }
 0x1f3   : > { %3923 = vmatpush1.bf16.msra.mxu0 %v3922_v34  ;;  %v3954_v34 = vpack.c.bf16 %v2089_v31, %v2083_v30  ;;  %v2003_v30 = vld [vmem:[%s7203_s4 + $0xf0] sm:$0xff]  ;;  %v2010_v31 = vld [vmem:[%s7203_s4 + $0x128] sm:$0xff] }
 0x1f4   : > { %3925 = vmatprep.subr.bf16.mxu0 %v3924_v36  ;;  %v2101_v36 = vld [vmem:[%s7203_s4 + $0x400] sm:$0xff] }
 0x1f5   : > { %v3958_v39 = vpack.c.bf16 %v2101_v36, %v2095_v24  ;;  %v2015_v24 = vld [vmem:[%s7203_s4 + $0x150] sm:$0xff]  ;;  %v2022_v36 = vld [vmem:[%s7203_s4 + $0x188] sm:$0xff] }
 0x1f7   : > { %3927 = vmatpush1.bf16.msra.mxu0 %v3926_v40  ;;  %v3960_v40 = vpack.c.bf16 %v2114_v38, %v2108_v37  ;;  %v2028_v37 = vld [vmem:[%s7203_s4 + $0x1b8] sm:$0xff] }
 0x1f8   : > { %3929 = vmatprep.subr.bf16.mxu0 %v3928_v43  ;;  %v2113_v43 = vld [vmem:[%s7203_s4 + $0x460] sm:$0xff] }
 0x240   : > { %v1378_v49 = vpop.f32.mrb[4].mxu0  ;;  %v1532_v50 = vpop.f32.mrb[4].mxu1 }
 0x241   : > { %v1380_v51 = vpop.f32.mrb[5].mxu0  ;;  %v1534_v52 = vpop.f32.mrb[5].mxu1  ;;  %3286 = vmatprep.mubr.f32.mxu1 %v1378_v49  ;;  %v2030_v49 = vld [vmem:[%s7203_s4 + $0x1c8] sm:$0xff] }
 0x244   : > { %v1384_v47 = vpop.f32.mrb[6].mxu0  ;;  %v1538_v27 = vpop.f32.mrb[6].mxu1 }
 0x245   : > { %v3782_v53 = vpack.c.bf16 %v1538_v27, %v1532_v50  ;;  %v1386_v54 = vpop.f32.mrb[7].mxu0  ;;  %v1540_v56 = vpop.f32.mrb[7].mxu1  ;;  %v3930_v50 = vpack.c.bf16 %v2017_v45, %v2011_v44  ;;  %v2036_v27 = vld [vmem:[%s7203_s4 + $0x1f8] sm:$0xff]  ;;  %v2126_v45 = vld [vmem:[%s7203_s4 + $0x4c8] sm:$0xff] }
 0x246   : > { %v3776_v57 = vpack.c.bf16 %v1386_v54, %v1380_v51  ;;  %v3780_v58 = vpack.c.bf16 %v1540_v56, %v1534_v52  ;;  %v3932_v51 = vpack.c.bf16 %v2030_v49, %v2024_v46  ;;  %v2023_v52 = vld [vmem:[%s7203_s4 + $0x190] sm:$0xff]  ;;  %v2120_v44 = vld [vmem:[%s7203_s4 + $0x498] sm:$0xff]  ;;  %v3962_v46 = vpack.c.bf16 %v2113_v43, %v2107_v41  ;;  %v2034_v43 = vld [vmem:[%s7203_s4 + $0x1e8] sm:$0xff] }
 0x247   : > { %3931 = vmatpush1.bf16.msra.mxu0 %v3930_v50  ;;  %v3964_v49 = vpack.c.bf16 %v2126_v45, %v2120_v44  ;;  %v2119_v50 = vld [vmem:[%s7203_s4 + $0x490] sm:$0xff]  ;;  %v2040_v44 = vld [vmem:[%s7203_s4 + $0x218] sm:$0xff] }
 0x248   : > { %3777 = vmatprep.subr.bf16.mxu1 %v3776_v57  ;;  %3933 = vmatprep.subr.bf16.mxu0 %v3932_v51  ;;  %v2125_v51 = vld [vmem:[%s7203_s4 + $0x4c0] sm:$0xff]  ;;  %v2027_v41 = vld [vmem:[%s7203_s4 + $0x1b0] sm:$0xff] }
 0x249   : > { %3779 = vmatpush3.bf16.xpose.msra.mxu1 %v3776_v57  ;;  %v2035_v57 = vld [vmem:[%s7203_s4 + $0x1f0] sm:$0xff] }
 0x24a   : > { %3781 = vmatprep.subr.bf16.mxu1 %v3780_v58  ;;  %v2041_v58 = vld [vmem:[%s7203_s4 + $0x220] sm:$0xff] }
 0x250   : > { %3287 = vmatmul.mubr.f32.vlgmr.msra.gmra.mrb[8].mxu1 %v1384_v47  ;;  %v2029_v47 = vld [vmem:[%s7203_s4 + $0x1c0] sm:$0xff] }
 0x251   : > { %3783 = vmatpush1.bf16.msra.mxu1 %v3782_v53  ;;  %1865 = vmatprep.mubr.f32.mxu1 %v4289_v7  ;;  %v2042_v53 = vld [vmem:[%s7203_s4 + $0x228] sm:$0xff]  ;;  %v3934_v54 = vpack.c.bf16 %v2029_v47, %v2023_v52  ;;  %v2132_v52 = vld [vmem:[%s7203_s4 + $0x4f8] sm:$0xff] }
 0x252   : > { %v3936_v56 = vpack.c.bf16 %v2042_v53, %v2036_v27  ;;  %v2138_v47 = vld [vmem:[%s7203_s4 + $0x528] sm:$0xff]  ;;  %v3966_v27 = vpack.c.bf16 %v2125_v51, %v2119_v50  ;;  %v2039_v50 = vld [vmem:[%s7203_s4 + $0x210] sm:$0xff] }
 0x253   : > { %3935 = vmatpush1.bf16.msra.mxu0 %v3934_v54  ;;  %v3968_v53 = vpack.c.bf16 %v2138_v47, %v2132_v52  ;;  %v2131_v54 = vld [vmem:[%s7203_s4 + $0x4f0] sm:$0xff]  ;;  %v2046_v51 = vld [vmem:[%s7203_s4 + $0x248] sm:$0xff]  ;;  %v2052_v52 = vld [vmem:[%s7203_s4 + $0x278] sm:$0xff] }
 0x254   : > { %3937 = vmatprep.subr.bf16.mxu0 %v3936_v56  ;;  %v2137_v56 = vld [vmem:[%s7203_s4 + $0x520] sm:$0xff] }
 0x2c1   : > { %v5934_v59 = vpop.f32.mrb[8].mxu0 }
 0x2c2   : > { %v1688_v61 = vpop.f32.mrb[9].mxu0 }
 0x2c5   : > { %v5936_v62 = vpop.f32.mrb[10].mxu0 }
 0x2c6   : > { %v3786_v63 = vpack.c.bf16 %v5936_v62, %v5934_v59  ;;  %v1694_v1 = vpop.f32.mrb[11].mxu0  ;;  %v1992_v59 = vld [vmem:[%s7203_s4 + $0x98] sm:$0xff] }
 0x2c7   : > { %v3784_v2 = vpack.c.bf16 %v1694_v1, %v1688_v61  ;;  %v2048_v61 = vld [vmem:[%s7203_s4 + $0x258] sm:$0xff]  ;;  %v2054_v1 = vld [vmem:[%s7203_s4 + $0x288] sm:$0xff] }
 0x2c9   : > { %3785 = vmatprep.subr.bf16.mxu1 %v3784_v2  ;;  %v3938_v2 = vpack.c.bf16 %v2041_v58, %v2035_v57  ;;  %v2144_v57 = vld [vmem:[%s7203_s4 + $0x558] sm:$0xff]  ;;  %v2150_v58 = vld [vmem:[%s7203_s4 + $0x588] sm:$0xff] }
 0x2cb   : > { %3939 = vmatpush1.bf16.msra.mxu0 %v3938_v2  ;;  %v2143_v2 = vld [vmem:[%s7203_s4 + $0x550] sm:$0xff] }
 0x323   : > { %v3288_v3 = vpop.f32.mrb[8].mxu1 }
 0x324   : > { %v1763_v4 = vpop.f32.mrb[9].mxu1  ;;  %v1776_v8 = vsel %vm1772_vm3, %v3288_v3, -inf }
 0x325   : > { %v1773_v6 = vsel %vm1772_vm3, %v1763_v4, -inf }
 0x326   : > { %1774 = vmax.xlane.f32.xlu0 %v1773_v6  ;;  %v2053_v6 = vld [vmem:[%s7203_s4 + $0x280] sm:$0xff] }
 0x32a   : > { %1777 = vmax.xlane.f32.xlu0 %v1776_v8  ;;  %v2060_v8 = vld [vmem:[%s7203_s4 + $0x2b8] sm:$0xff] }
 0x3b3   : > { %v1775_v9 = vpop.xlane.xlu0 %1774 }
 0x3b4   : > { %v1779_v10 = vsub.f32 %v1763_v4, %v1775_v9  ;;  %v2047_v4 = vld [vmem:[%s7203_s4 + $0x250] sm:$0xff]  ;;  %v2066_v9 = vld [vmem:[%s7203_s4 + $0x2e8] sm:$0xff] }
 0x3b6   : > { %v1781_v11 = vmul.f32 1.442695, %v1779_v10  ;;  %v3942_v10 = vpack.c.bf16 %v2053_v6, %v2047_v4 }
 0x3b7   : > { %v1778_v12 = vpop.xlane.xlu0 %1777 }
 0x3b8   : > { %4245 = vpow2.f32 %v1781_v11  ;;  %v1780_v13 = vsub.f32 %v3288_v3, %v1778_v12  ;;  %v3940_v3 = vpack.c.bf16 %v2054_v1, %v2048_v61  ;;  %v3944_v11 = vpack.c.bf16 %v2066_v9, %v2060_v8  ;;  %v2059_v12 = vld [vmem:[%s7203_s4 + $0x2b0] sm:$0xff]  ;;  %v1974_v9 = vld [vmem:[%s7203_s4 + $0x8] sm:$0xff] }
 0x3b9   : > { %v3970_v61 = vpack.c.bf16 %v2137_v56, %v2131_v54  ;;  %v3972_v1 = vpack.c.bf16 %v2150_v58, %v2144_v57  ;;  %v2051_v54 = vld [vmem:[%s7203_s4 + $0x270] sm:$0xff]  ;;  %v2058_v56 = vld [vmem:[%s7203_s4 + $0x2a8] sm:$0xff]  ;;  %v2064_v57 = vld [vmem:[%s7203_s4 + $0x2d8] sm:$0xff] }
 0x3ba   : > { %v1783_v14 = vmul.f32 1.442695, %v1780_v13  ;;  %3941 = vmatprep.subr.bf16.mxu0 %v3940_v3  ;;  %v2065_v13 = vld [vmem:[%s7203_s4 + $0x2e0] sm:$0xff] }
 0x3bb   : > { %3943 = vmatpush1.bf16.msra.mxu0 %v3942_v10  ;;  %v2149_v3 = vld [vmem:[%s7203_s4 + $0x580] sm:$0xff]  ;;  %v1980_v10 = vld [vmem:[%s7203_s4 + $0x38] sm:$0xff] }
 0x3bc   : > { %4247 = vpow2.f32 %v1783_v14  ;;  %v2072_v14 = vld [vmem:[%s7203_s4 + $0x318] sm:$0xff]  ;;  %3945 = vmatprep.subr.bf16.mxu0 %v3944_v11  ;;  %v3974_v4 = vpack.c.bf16 %v2149_v3, %v2143_v2  ;;  %v2063_v2 = vld [vmem:[%s7203_s4 + $0x2d0] sm:$0xff]  ;;  %v2070_v3 = vld [vmem:[%s7203_s4 + $0x308] sm:$0xff] }
 0x3c2   : > { %v5942_v16 = vpop.eup %4245 }
 0x3c3   : > { %v1785_v17 = vsel %vm1772_vm3, %v5942_v16, 0.0 }
 0x3c4   : > { %1786 = vadd.xlane.f32.xlu1 %v1785_v17  ;;  %v2078_v17 = vld [vmem:[%s7203_s4 + $0x348] sm:$0xff] }
 0x3c5   : > { %v3948_v21 = vpack.c.bf16 %v2078_v17, %v2072_v14 }
 0x3c6   : > { %v5946_v18 = vpop.eup %4247 }
 0x3c7   : > { %v1788_v19 = vsel %vm1772_vm3, %v5946_v18, 0.0 }
 0x3c8   : > { %1789 = vadd.xlane.f32.xlu1 %v1788_v19  ;;  %v3946_v19 = vpack.c.bf16 %v2065_v13, %v2059_v12  ;;  %v3788_v13 = vpack.c.bf16 %v1980_v10, %v1974_v9  ;;  %v2069_v9 = vld [vmem:[%s7203_s4 + $0x300] sm:$0xff]  ;;  %v2075_v10 = vld [vmem:[%s7203_s4 + $0x330] sm:$0xff] }
 0x3ca   : > { %3947 = vmatpush1.bf16.msra.mxu0 %v3946_v19  ;;  %v1973_v19 = vld [vmem:[%s7203_s4] sm:$0xff] }
 0x3cb   : > { %3949 = vmatprep.subr.bf16.mxu0 %v3948_v21  ;;  %v1986_v21 = vld [vmem:[%s7203_s4 + $0x68] sm:$0xff] }
 0x3ce   : > { %3951 = vmatpush1.bf16.msra.mxu0 %v3950_v28  ;;  %v3796_v28 = vpack.c.bf16 %v2004_v25, %v1998_v23  ;;  %v2112_v23 = vld [vmem:[%s7203_s4 + $0x458] sm:$0xff] }
 0x3cf   : > { %3953 = vmatprep.subr.bf16.mxu0 %v3952_v29  ;;  %v1997_v29 = vld [vmem:[%s7203_s4 + $0xc0] sm:$0xff] }
 0x3d0   : > { %v3798_v33 = vpack.c.bf16 %v2003_v30, %v1997_v29  ;;  %v2111_v29 = vld [vmem:[%s7203_s4 + $0x450] sm:$0xff]  ;;  %v2118_v30 = vld [vmem:[%s7203_s4 + $0x488] sm:$0xff] }
 0x3d2   : > { %3955 = vmatpush1.bf16.msra.mxu0 %v3954_v34  ;;  %v3800_v34 = vpack.c.bf16 %v2016_v32, %v2010_v31  ;;  %v2124_v31 = vld [vmem:[%s7203_s4 + $0x4b8] sm:$0xff] }
 0x3d3   : > { %3957 = vmatprep.subr.bf16.mxu0 %v3956_v35  ;;  %v2009_v35 = vld [vmem:[%s7203_s4 + $0x120] sm:$0xff] }
 0x3d4   : > { %v3802_v38 = vpack.c.bf16 %v2015_v24, %v2009_v35  ;;  %v2123_v35 = vld [vmem:[%s7203_s4 + $0x4b0] sm:$0xff]  ;;  %v2130_v24 = vld [vmem:[%s7203_s4 + $0x4e8] sm:$0xff] }
 0x3d6   : > { %3959 = vmatpush1.bf16.msra.mxu0 %v3958_v39  ;;  %v3804_v39 = vpack.c.bf16 %v2028_v37, %v2022_v36  ;;  %v2136_v36 = vld [vmem:[%s7203_s4 + $0x518] sm:$0xff] }
 0x3d7   : > { %3961 = vmatprep.subr.bf16.mxu0 %v3960_v40  ;;  %v2021_v40 = vld [vmem:[%s7203_s4 + $0x180] sm:$0xff] }
 0x3d8   : > { %v3806_v45 = vpack.c.bf16 %v2027_v41, %v2021_v40  ;;  %v2135_v40 = vld [vmem:[%s7203_s4 + $0x510] sm:$0xff]  ;;  %v2142_v41 = vld [vmem:[%s7203_s4 + $0x548] sm:$0xff] }
 0x3da   : > { %3963 = vmatpush1.bf16.msra.mxu0 %v3962_v46  ;;  %v3808_v46 = vpack.c.bf16 %v2040_v44, %v2034_v43  ;;  %v2148_v43 = vld [vmem:[%s7203_s4 + $0x578] sm:$0xff] }
 0x3db   : > { %3965 = vmatprep.subr.bf16.mxu0 %v3964_v49  ;;  %v2033_v49 = vld [vmem:[%s7203_s4 + $0x1e0] sm:$0xff] }
 0x3dc   : > { %v3810_v47 = vpack.c.bf16 %v2039_v50, %v2033_v49  ;;  %v2147_v49 = vld [vmem:[%s7203_s4 + $0x570] sm:$0xff] }
 0x3de   : > { %3967 = vmatpush1.bf16.msra.mxu0 %v3966_v27  ;;  %v3812_v27 = vpack.c.bf16 %v2052_v52, %v2046_v51  ;;  %v2154_v51 = vld [vmem:[%s7203_s4 + $0x5a8] sm:$0xff]  ;;  %v2160_v52 = vld [vmem:[%s7203_s4 + $0x5d8] sm:$0xff] }
 0x3df   : > { %3969 = vmatprep.subr.bf16.mxu0 %v3968_v53  ;;  %v2045_v53 = vld [vmem:[%s7203_s4 + $0x240] sm:$0xff] }
 0x3e0   : > { %v3814_v58 = vpack.c.bf16 %v2051_v54, %v2045_v53  ;;  %v2162_v53 = vld [vmem:[%s7203_s4 + $0x5e8] sm:$0xff]  ;;  %v2153_v54 = vld [vmem:[%s7203_s4 + $0x5a0] sm:$0xff] }
 0x3e2   : > { %3971 = vmatpush1.bf16.msra.mxu0 %v3970_v61  ;;  %v3816_v61 = vpack.c.bf16 %v2064_v57, %v2058_v56  ;;  %v2159_v56 = vld [vmem:[%s7203_s4 + $0x5d0] sm:$0xff] }
 0x3e3   : > { %3973 = vmatprep.subr.bf16.mxu0 %v3972_v1  ;;  %v2057_v1 = vld [vmem:[%s7203_s4 + $0x2a0] sm:$0xff] }
 0x3e6   : > { %3975 = vmatpush1.bf16.msra.mxu0 %v3974_v4  ;;  %v2076_v4 = vld [vmem:[%s7203_s4 + $0x338] sm:$0xff] }
 0x451   : > { %v1787_v6 = vpop.xlane.xlu1 %1786 }
 0x452   : > { %4249 = vrcp.f32 %v1787_v6  ;;  %v3818_v6 = vpack.c.bf16 %v2063_v2, %v2057_v1  ;;  %v2161_v1 = vld [vmem:[%s7203_s4 + $0x5e0] sm:$0xff] }
 0x455   : > { %v1790_v8 = vpop.xlane.xlu1 %1789 }
 0x456   : > { %4251 = vrcp.f32 %v1790_v8  ;;  %v3820_v8 = vpack.c.bf16 %v2076_v4, %v2070_v3  ;;  %v2166_v3 = vld [vmem:[%s7203_s4 + $0x608] sm:$0xff]  ;;  %v2172_v4 = vld [vmem:[%s7203_s4 + $0x638] sm:$0xff] }
 0x45c   : > { %v4250_v11 = vpop.eup %4249 }
 0x45d   : > { %v1793_v12 = vmul.f32 %v4250_v11, %v5942_v16  ;;  %v1979_v16 = vld [vmem:[%s7203_s4 + $0x30] sm:$0xff]  ;;  %v2082_v11 = vld [vmem:[%s7203_s4 + $0x368] sm:$0xff] }
 0x45e   : > { %v3790_v62 = vpack.c.bf16 %v1979_v16, %v1973_v19  ;;  %v2087_v19 = vld [vmem:[%s7203_s4 + $0x390] sm:$0xff]  ;;  %v2094_v16 = vld [vmem:[%s7203_s4 + $0x3c8] sm:$0xff] }
 0x45f   : > { %3262 = vmatmul.mubr.msk.f32.vlgmr.msra.gmra.mrb[10].mxu1 %vm1772_vm3, %v1793_v12 }
 0x460   : > { %v4252_v14 = vpop.eup %4251  ;;  %3787 = vmatpush1.bf16.msra.mxu1 %v3786_v63  ;;  %1871 = vmatprep.mubr.f32.mxu1 %v4289_v7  ;;  %v3792_v63 = vpack.c.bf16 %v1992_v59, %v1986_v21  ;;  %v2100_v21 = vld [vmem:[%s7203_s4 + $0x3f8] sm:$0xff] }
 0x461   : > { %v1794_v17 = vmul.f32 %v4252_v14, %v5946_v18  ;;  %3789 = vmatprep.subr.bf16.mxu1 %v3788_v13  ;;  %v1985_v18 = vld [vmem:[%s7203_s4 + $0x60] sm:$0xff]  ;;  %v3822_v13 = vpack.c.bf16 %v2075_v10, %v2069_v9  ;;  %v2174_v9 = vld [vmem:[%s7203_s4 + $0x648] sm:$0xff] }
 0x462   : > { %v3794_v26 = vpack.c.bf16 %v1991_v22, %v1985_v18  ;;  %v2099_v18 = vld [vmem:[%s7203_s4 + $0x3f0] sm:$0xff]  ;;  %v2106_v22 = vld [vmem:[%s7203_s4 + $0x428] sm:$0xff] }
 0x463   : > { %3263 = vmatmul.mubr.msk.f32.gmra.mrb[12].mxu1 %vm1772_vm3, %v1794_v17 }
 0x464   : > { %1942 = vmatprep.mubr.f32.mxu1 %v4289_v7 }
 0x467   : > { %3264 = vmatmul.mubr.msk.f32.vlgmr.msra.gmra.mrb[14].mxu1 %vm1772_vm3, %v1793_v12  ;;  %v2088_v12 = vld [vmem:[%s7203_s4 + $0x398] sm:$0xff] }
 0x468   : > { %1948 = vmatprep.mubr.f32.mxu1 %v4289_v7  ;;  %3791 = vmatpush1.bf16.msra.mxu1 %v3790_v62  ;;  %v3824_v14 = vpack.c.bf16 %v2088_v12, %v2082_v11  ;;  %v3828_v62 = vpack.c.bf16 %v2100_v21, %v2094_v16  ;;  %v6358_v11 = vstv %s850_s12  ;;  %v2167_v16 = vld [vmem:[%s7203_s4 + $0x610] sm:$0xff]  ;;  %v2173_v21 = vld [vmem:[%s7203_s4 + $0x640] sm:$0xff]  ;;  %s3273_s12 = sshll.u32 %s7207_s19, 6 }
 0x469   : > { %3793 = vmatprep.subr.bf16.mxu1 %v3792_v63  ;;  %v2093_v63 = vld [vmem:[%s7203_s4 + $0x3c0] sm:$0xff]  ;;  %s238_s15 = scalar_lea.vmem %s7204_s5, %s3273_s12 }
 0x46a   : > { %v3830_v25 = vpack.c.bf16 %v2099_v18, %v2093_v63  ;;  %v2184_v63 = vld [vmem:[%s7203_s4 + $0x698] sm:$0xff] }
 0x46b   : > { %3265 = vmatmul.mubr.msk.f32.gmra.mrb[16].mxu1 %vm1772_vm3, %v1794_v17  ;;  %v2081_v17 = vld [vmem:[%s7203_s4 + $0x360] sm:$0xff]  ;;  %v2180_v18 = vld [vmem:[%s7203_s4 + $0x678] sm:$0xff] }
 0x46c   : > { %3795 = vmatpush1.bf16.msra.mxu1 %v3794_v26  ;;  %v3826_v59 = vpack.c.bf16 %v2087_v19, %v2081_v17  ;;  %v3832_v26 = vpack.c.bf16 %v2112_v23, %v2106_v22  ;;  %v2186_v22 = vld [vmem:[%s7203_s4 + $0x6a8] sm:$0xff] }
 0x46d   : > { %3797 = vmatprep.subr.bf16.mxu1 %v3796_v28  ;;  %v2105_v28 = vld [vmem:[%s7203_s4 + $0x420] sm:$0xff] }
 0x46e   : > { %v3834_v32 = vpack.c.bf16 %v2111_v29, %v2105_v28  ;;  %v3982_v29 = vpack.c.bf16 %v2173_v21, %v2167_v16  ;;  %v2222_v16 = vld [vmem:[%s7203_s4 + $0x7c8] sm:$0xff] }
 0x470   : > { %3799 = vmatpush1.bf16.msra.mxu1 %v3798_v33  ;;  %v3836_v33 = vpack.c.bf16 %v2124_v31, %v2118_v30  ;;  %v2177_v30 = vld [vmem:[%s7203_s4 + $0x660] sm:$0xff]  ;;  %v2183_v31 = vld [vmem:[%s7203_s4 + $0x690] sm:$0xff] }
 0x471   : > { %3801 = vmatprep.subr.bf16.mxu1 %v3800_v34  ;;  %v2117_v34 = vld [vmem:[%s7203_s4 + $0x480] sm:$0xff] }
 0x472   : > { %v3838_v37 = vpack.c.bf16 %v2123_v35, %v2117_v34  ;;  %v2185_v35 = vld [vmem:[%s7203_s4 + $0x6a0] sm:$0xff] }
 0x474   : > { %3803 = vmatpush1.bf16.msra.mxu1 %v3802_v38  ;;  %v3840_v38 = vpack.c.bf16 %v2136_v36, %v2130_v24  ;;  %v2190_v24 = vld [vmem:[%s7203_s4 + $0x6c8] sm:$0xff] }
 0x475   : > { %3805 = vmatprep.subr.bf16.mxu1 %v3804_v39  ;;  %v2129_v39 = vld [vmem:[%s7203_s4 + $0x4e0] sm:$0xff] }
 0x476   : > { %v3842_v44 = vpack.c.bf16 %v2135_v40, %v2129_v39  ;;  %v2198_v39 = vld [vmem:[%s7203_s4 + $0x708] sm:$0xff] }
 0x478   : > { %3807 = vmatpush1.bf16.msra.mxu1 %v3806_v45  ;;  %v3844_v45 = vpack.c.bf16 %v2148_v43, %v2142_v41 }
 0x479   : > { %3809 = vmatprep.subr.bf16.mxu1 %v3808_v46  ;;  %v2141_v46 = vld [vmem:[%s7203_s4 + $0x540] sm:$0xff] }
 0x47a   : > { %v3846_v50 = vpack.c.bf16 %v2147_v49, %v2141_v46  ;;  %v2189_v46 = vld [vmem:[%s7203_s4 + $0x6c0] sm:$0xff] }
 0x47c   : > { %3811 = vmatpush1.bf16.msra.mxu1 %v3810_v47  ;;  %v2156_v47 = vld [vmem:[%s7203_s4 + $0x5b8] sm:$0xff] }
 0x47d   : > { %3813 = vmatprep.subr.bf16.mxu1 %v3812_v27  ;;  %v3848_v27 = vpack.c.bf16 %v2160_v52, %v2154_v51  ;;  %v3976_v57 = vpack.c.bf16 %v2162_v53, %v2156_v47  ;;  %v2191_v52 = vld [vmem:[%s7203_s4 + $0x6d0] sm:$0xff]  ;;  %v2197_v47 = vld [vmem:[%s7203_s4 + $0x700] sm:$0xff] }
 0x47f   : > { %3977 = vmatprep.subr.bf16.mxu0 %v3976_v57  ;;  %v2210_v57 = vld [vmem:[%s7203_s4 + $0x768] sm:$0xff] }
 0x480   : > { %3815 = vmatpush1.bf16.msra.mxu1 %v3814_v58  ;;  %v3850_v58 = vpack.c.bf16 %v2159_v56, %v2153_v54  ;;  %v2208_v54 = vld [vmem:[%s7203_s4 + $0x758] sm:$0xff] }
 0x481   : > { %3817 = vmatprep.subr.bf16.mxu1 %v3816_v61  ;;  %v2155_v61 = vld [vmem:[%s7203_s4 + $0x5b0] sm:$0xff]  ;;  %v2204_v56 = vld [vmem:[%s7203_s4 + $0x738] sm:$0xff] }
 0x482   : > { %v3978_v2 = vpack.c.bf16 %v2161_v1, %v2155_v61 }
 0x484   : > { %3819 = vmatpush1.bf16.msra.mxu1 %v3818_v6  ;;  %v2168_v6 = vld [vmem:[%s7203_s4 + $0x618] sm:$0xff]  ;;  %3979 = vmatpush1.bf16.msra.mxu0 %v3978_v2 }
 0x485   : > { %3821 = vmatprep.subr.bf16.mxu1 %v3820_v8  ;;  %v3852_v8 = vpack.c.bf16 %v2172_v4, %v2166_v3  ;;  %v3980_v10 = vpack.c.bf16 %v2174_v9, %v2168_v6  ;;  %v3990_v3 = vpack.c.bf16 %v2197_v47, %v2191_v52  ;;  %v2201_v4 = vld [vmem:[%s7203_s4 + $0x720] sm:$0xff]  ;;  %v3992_v9 = vpack.c.bf16 %v2210_v57, %v2204_v56  ;;  %v2250_v52 = vld [vmem:[%s7203_s4 + $0x8a8] sm:$0xff]  ;;  %v2256_v47 = vld [vmem:[%s7203_s4 + $0x8d8] sm:$0xff] }
 0x486   : > { %v2249_v57 = vld [vmem:[%s7203_s4 + $0x8a0] sm:$0xff] }
 0x487   : > { %3981 = vmatprep.subr.bf16.mxu0 %v3980_v10  ;;  %v2203_v10 = vld [vmem:[%s7203_s4 + $0x730] sm:$0xff] }
 0x488   : > { %3823 = vmatpush1.bf16.msra.mxu1 %v3822_v13  ;;  %v2165_v13 = vld [vmem:[%s7203_s4 + $0x600] sm:$0xff] }
 0x489   : > { %3825 = vmatprep.subr.bf16.mxu1 %v3824_v14  ;;  %v2171_v14 = vld [vmem:[%s7203_s4 + $0x630] sm:$0xff] }
 0x48a   : > { %v3854_v28 = vpack.c.bf16 %v2171_v14, %v2165_v13  ;;  %v2214_v13 = vld [vmem:[%s7203_s4 + $0x788] sm:$0xff] }
 0x48c   : > { %3827 = vmatpush1.bf16.msra.mxu1 %v3826_v59  ;;  %v2178_v59 = vld [vmem:[%s7203_s4 + $0x668] sm:$0xff] }
 0x48d   : > { %3829 = vmatprep.subr.bf16.mxu1 %v3828_v62  ;;  %v3856_v34 = vpack.c.bf16 %v2184_v63, %v2178_v59  ;;  %v2213_v63 = vld [vmem:[%s7203_s4 + $0x780] sm:$0xff] }
 0x490   : > { %3831 = vmatpush1.bf16.msra.mxu1 %v3830_v25 }
 0x491   : > { %3833 = vmatprep.subr.bf16.mxu1 %v3832_v26 }
 0x494   : > { %3835 = vmatpush1.bf16.msra.mxu1 %v3834_v32 }
 0x495   : > { %3837 = vmatprep.subr.bf16.mxu1 %v3836_v33 }
 0x498   : > { %3839 = vmatpush1.bf16.msra.mxu1 %v3838_v37  ;;  %v2196_v37 = vld [vmem:[%s7203_s4 + $0x6f8] sm:$0xff] }
 0x499   : > { %3841 = vmatprep.subr.bf16.mxu1 %v3840_v38  ;;  %v2192_v38 = vld [vmem:[%s7203_s4 + $0x6d8] sm:$0xff] }
 0x49a   : > { %v3988_v51 = vpack.c.bf16 %v2198_v39, %v2192_v38  ;;  %v2244_v38 = vld [vmem:[%s7203_s4 + $0x878] sm:$0xff] }
 0x49b   : > { %v2240_v39 = vld [vmem:[%s7203_s4 + $0x858] sm:$0xff] }
 0x49c   : > { %3843 = vmatpush1.bf16.msra.mxu1 %v3842_v44  ;;  %v3858_v44 = vpack.c.bf16 %v2183_v31, %v2177_v30  ;;  %v2228_v30 = vld [vmem:[%s7203_s4 + $0x7f8] sm:$0xff]  ;;  %v2234_v31 = vld [vmem:[%s7203_s4 + $0x828] sm:$0xff] }
 0x49d   : > { %3845 = vmatprep.subr.bf16.mxu1 %v3844_v45 }
 0x4a0   : > { %3847 = vmatpush1.bf16.msra.mxu1 %v3846_v50 }
 0x4a1   : > { %3849 = vmatprep.subr.bf16.mxu1 %v3848_v27  ;;  %v2202_v27 = vld [vmem:[%s7203_s4 + $0x728] sm:$0xff] }
 0x4a4   : > { %3851 = vmatpush1.bf16.msra.mxu1 %v3850_v58 }
 0x4a5   : > { %3853 = vmatprep.subr.bf16.mxu1 %v3852_v8 }
 0x532   : > { %v1867_v12 = vpop.f32.mrb[10].mxu1 }
 0x533   : > { %v1956_v17 = vmul.f32 %v6358_v11, %v1867_v12  ;;  %v1869_v19 = vpop.f32.mrb[11].mxu1  ;;  %v2209_v12 = vld [vmem:[%s7203_s4 + $0x760] sm:$0xff] }
 0x534   : > { %v1957_v62 = vmul.f32 %v6358_v11, %v1869_v19  ;;  %v2216_v19 = vld [vmem:[%s7203_s4 + $0x798] sm:$0xff] }
 0x535   : > { %v6387_v23 = vadd.f32 %v1956_v17, %v5161_v0  ;;  %v3984_v0 = vpack.c.bf16 %v2186_v22, %v2180_v18  ;;  %v2220_v17 = vld [vmem:[%s7203_s4 + $0x7b8] sm:$0xff]  ;;  %v2219_v18 = vld [vmem:[%s7203_s4 + $0x7b0] sm:$0xff] }
 0x536   : > { %v6390_v25 = vadd.f32 %v1957_v62, %v5169_v5  ;;  %v1873_v26 = vpop.f32.mrb[12].mxu1  ;;  %v2179_v5 = vld [vmem:[%s7203_s4 + $0x670] sm:$0xff]  ;;  %v3994_v62 = vpack.c.bf16 %v2209_v12, %v2203_v10  ;;  %v3868_v22 = vpack.c.bf16 %v2220_v17, %v2214_v13  ;;  %v2261_v13 = vld [vmem:[%s7203_s4 + $0x900] sm:$0xff] }
 0x537   : > { %v1960_v32 = vmul.f32 %v6358_v11, %v1873_v26  ;;  %v1875_v33 = vpop.f32.mrb[13].mxu1  ;;  %v3986_v45 = vpack.c.bf16 %v2185_v35, %v2179_v5  ;;  %v2221_v26 = vld [vmem:[%s7203_s4 + $0x7c0] sm:$0xff]  ;;  %v4000_v35 = vpack.c.bf16 %v2234_v31, %v2228_v30  ;;  %v2275_v31 = vld [vmem:[%s7203_s4 + $0x970] sm:$0xff] }
 0x538   : > { %v1961_v36 = vmul.f32 %v6358_v11, %v1875_v33  ;;  %2421 = vmatprep.mubr.f32.mxu1 %v6390_v25  ;;  %2575 = vmatprep.mubr.f32.mxu0 %v6390_v25 }
 0x539   : > { %v6421_v40 = vadd.f32 %v1960_v32, %v5193_v15  ;;  %2422 = vmatmul.mubr.f32.vlgmr.msra.gmra.mrb[18].mxu1 %v6387_v23  ;;  %2576 = vmatmul.mubr.f32.vlgmr.msra.gmra.mrb[12].mxu0 %v6387_v23  ;;  %v2195_v15 = vld [vmem:[%s7203_s4 + $0x6f0] sm:$0xff]  ;;  %v3870_v32 = vpack.c.bf16 %v2219_v18, %v2213_v63  ;;  %v2280_v63 = vld [vmem:[%s7203_s4 + $0x998] sm:$0xff] }
 0x53a   : > { %v6426_v41 = vadd.f32 %v1961_v36, %v5201_v20  ;;  %3855 = vmatpush1.bf16.msra.mxu1 %v3854_v28  ;;  %3983 = vmatpush1.bf16.msra.mxu0 %v3982_v29  ;;  %v1944_v43 = vpop.f32.mrb[14].mxu1  ;;  %v3860_v20 = vpack.c.bf16 %v2196_v37, %v2190_v24  ;;  %v3862_v2 = vpack.c.bf16 %v2195_v15, %v2189_v46  ;;  %v2226_v28 = vld [vmem:[%s7203_s4 + $0x7e8] sm:$0xff]  ;;  %v2232_v29 = vld [vmem:[%s7203_s4 + $0x818] sm:$0xff]  ;;  %v2227_v24 = vld [vmem:[%s7203_s4 + $0x7f0] sm:$0xff] }
 0x53b   : > { %v1958_v49 = vmul.f32 %v6358_v11, %v1944_v43  ;;  %v1946_v50 = vpop.f32.mrb[15].mxu1  ;;  %3857 = vmatprep.subr.bf16.mxu1 %v3856_v34  ;;  %3985 = vmatprep.subr.bf16.mxu0 %v3984_v0  ;;  %v2225_v34 = vld [vmem:[%s7203_s4 + $0x7e0] sm:$0xff]  ;;  %v2231_v0 = vld [vmem:[%s7203_s4 + $0x810] sm:$0xff]  ;;  %v3872_v5 = vpack.c.bf16 %v2232_v29, %v2226_v28  ;;  %v2238_v37 = vld [vmem:[%s7203_s4 + $0x848] sm:$0xff] }
 0x53c   : > { %v1959_v53 = vmul.f32 %v6358_v11, %v1946_v50  ;;  %2427 = vmatprep.mubr.f32.mxu1 %v6426_v41  ;;  %2581 = vmatprep.mubr.f32.mxu0 %v6426_v41  ;;  %v2233_v36 = vld [vmem:[%s7203_s4 + $0x820] sm:$0xff]  ;;  %v2246_v43 = vld [vmem:[%s7203_s4 + $0x888] sm:$0xff]  ;;  %v2243_v15 = vld [vmem:[%s7203_s4 + $0x870] sm:$0xff] }
 0x53d   : > { %v6457_v58 = vadd.f32 %v1958_v49, %v5249_v42  ;;  %2428 = vmatmul.mubr.f32.gmra.mrb[20].mxu1 %v6421_v40  ;;  %2582 = vmatmul.mubr.f32.gmra.mrb[14].mxu0 %v6421_v40  ;;  %v2207_v42 = vld [vmem:[%s7203_s4 + $0x750] sm:$0xff]  ;;  %v2237_v46 = vld [vmem:[%s7203_s4 + $0x840] sm:$0xff]  ;;  %v3876_v49 = vpack.c.bf16 %v2244_v38, %v2238_v37  ;;  %v4004_v50 = vpack.c.bf16 %v2246_v43, %v2240_v39  ;;  %v2276_v18 = vld [vmem:[%s7203_s4 + $0x978] sm:$0xff] }
 0x53e   : > { %v6462_v61 = vadd.f32 %v1959_v53, %v5257_v48  ;;  %3859 = vmatpush1.bf16.msra.mxu1 %v3858_v44  ;;  %3987 = vmatpush1.bf16.msra.mxu0 %v3986_v45  ;;  %v1950_v1 = vpop.f32.mrb[16].mxu1  ;;  %v3864_v48 = vpack.c.bf16 %v2208_v54, %v2202_v27  ;;  %v3866_v59 = vpack.c.bf16 %v2207_v42, %v2201_v4  ;;  %v2252_v27 = vld [vmem:[%s7203_s4 + $0x8b8] sm:$0xff]  ;;  %v2258_v53 = vld [vmem:[%s7203_s4 + $0x8e8] sm:$0xff]  ;;  %v2251_v4 = vld [vmem:[%s7203_s4 + $0x8b0] sm:$0xff] }
 0x53f   : > { %v1962_v6 = vmul.f32 %v6358_v11, %v1950_v1  ;;  %v1952_v8 = vpop.f32.mrb[17].mxu1  ;;  %3861 = vmatprep.subr.bf16.mxu1 %v3860_v20  ;;  %3989 = vmatprep.subr.bf16.mxu0 %v3988_v51  ;;  %v3874_v44 = vpack.c.bf16 %v2231_v0, %v2225_v34  ;;  %v4002_v45 = vpack.c.bf16 %v2233_v36, %v2227_v24  ;;  %v2239_v20 = vld [vmem:[%s7203_s4 + $0x850] sm:$0xff]  ;;  %v2245_v51 = vld [vmem:[%s7203_s4 + $0x880] sm:$0xff]  ;;  %v2292_v34 = vld [vmem:[%s7203_s4 + $0x9f8] sm:$0xff] }
 0x540   : > { %v1963_v14 = vmul.f32 %v6358_v11, %v1952_v8  ;;  %2498 = vmatprep.mubr.f32.mxu1 %v6462_v61  ;;  %2652 = vmatprep.mubr.f32.mxu0 %v6462_v61  ;;  %v3878_v54 = vpack.c.bf16 %v2243_v15, %v2237_v46  ;;  %v4006_v56 = vpack.c.bf16 %v2245_v51, %v2239_v20  ;;  %v2255_v1 = vld [vmem:[%s7203_s4 + $0x8d0] sm:$0xff]  ;;  %v2257_v42 = vld [vmem:[%s7203_s4 + $0x8e0] sm:$0xff]  ;;  %v2268_v8 = vld [vmem:[%s7203_s4 + $0x938] sm:$0xff] }
 0x541   : > { %v6493_v21 = vadd.f32 %v1962_v6, %v5279_v55  ;;  %v3996_v55 = vpack.c.bf16 %v2222_v16, %v2216_v19  ;;  %v2262_v6 = vld [vmem:[%s7203_s4 + $0x908] sm:$0xff]  ;;  %v3882_v10 = vpack.c.bf16 %v2255_v1, %v2249_v57  ;;  %v4010_v12 = vpack.c.bf16 %v2257_v42, %v2251_v4  ;;  %v2263_v16 = vld [vmem:[%s7203_s4 + $0x910] sm:$0xff]  ;;  %v2288_v0 = vld [vmem:[%s7203_s4 + $0x9d8] sm:$0xff] }
 0x542   : > { %v6496_v11 = vadd.f32 %v1963_v14, %v5287_v60  ;;  %3863 = vmatpush1.bf16.msra.mxu1 %v3862_v2  ;;  %3991 = vmatpush1.bf16.msra.mxu0 %v3990_v3  ;;  %v2215_v60 = vld [vmem:[%s7203_s4 + $0x790] sm:$0xff]  ;;  %v3880_v2 = vpack.c.bf16 %v2256_v47, %v2250_v52  ;;  %v4008_v3 = vpack.c.bf16 %v2258_v53, %v2252_v27  ;;  %v2285_v36 = vld [vmem:[%s7203_s4 + $0x9c0] sm:$0xff]  ;;  %v2304_v46 = vld [vmem:[%s7203_s4 + $0xa58] sm:$0xff] }
 0x543   : > { %3865 = vmatprep.subr.bf16.mxu1 %v3864_v48  ;;  %3993 = vmatprep.subr.bf16.mxu0 %v3992_v9  ;;  %v3998_v33 = vpack.c.bf16 %v2221_v26, %v2215_v60  ;;  %v2264_v48 = vld [vmem:[%s7203_s4 + $0x918] sm:$0xff]  ;;  %v2270_v9 = vld [vmem:[%s7203_s4 + $0x948] sm:$0xff]  ;;  %v2267_v14 = vld [vmem:[%s7203_s4 + $0x930] sm:$0xff]  ;;  %v3884_v17 = vpack.c.bf16 %v2268_v8, %v2262_v6 }
 0x544   : > { %v4012_v19 = vpack.c.bf16 %v2270_v9, %v2264_v48  ;;  %v2273_v26 = vld [vmem:[%s7203_s4 + $0x960] sm:$0xff]  ;;  %v2279_v28 = vld [vmem:[%s7203_s4 + $0x990] sm:$0xff]  ;;  %v2300_v15 = vld [vmem:[%s7203_s4 + $0xa38] sm:$0xff] }
 0x545   : > { %v2291_v37 = vld [vmem:[%s7203_s4 + $0x9f0] sm:$0xff]  ;;  %v2297_v51 = vld [vmem:[%s7203_s4 + $0xa20] sm:$0xff]  ;;  %v2316_v57 = vld [vmem:[%s7203_s4 + $0xab8] sm:$0xff] }
 0x546   : > { %3867 = vmatpush1.bf16.msra.mxu1 %v3866_v59  ;;  %3995 = vmatpush1.bf16.msra.mxu0 %v3994_v62  ;;  %v2269_v59 = vld [vmem:[%s7203_s4 + $0x940] sm:$0xff]  ;;  %v2274_v62 = vld [vmem:[%s7203_s4 + $0x968] sm:$0xff]  ;;  %v2287_v43 = vld [vmem:[%s7203_s4 + $0x9d0] sm:$0xff] }
 0x547   : > { %3869 = vmatprep.subr.bf16.mxu1 %v3868_v22  ;;  %3997 = vmatprep.subr.bf16.mxu0 %v3996_v55  ;;  %v2282_v22 = vld [vmem:[%s7203_s4 + $0x9a8] sm:$0xff]  ;;  %v3886_v55 = vpack.c.bf16 %v2267_v14, %v2261_v13  ;;  %v4014_v60 = vpack.c.bf16 %v2269_v59, %v2263_v16  ;;  %v3888_v29 = vpack.c.bf16 %v2280_v63, %v2274_v62  ;;  %v2303_v52 = vld [vmem:[%s7203_s4 + $0xa50] sm:$0xff]  ;;  %v2312_v1 = vld [vmem:[%s7203_s4 + $0xa98] sm:$0xff] }
 0x548   : > { %v4016_v30 = vpack.c.bf16 %v2282_v22, %v2276_v18  ;;  %v2299_v53 = vld [vmem:[%s7203_s4 + $0xa30] sm:$0xff]  ;;  %v2309_v42 = vld [vmem:[%s7203_s4 + $0xa80] sm:$0xff]  ;;  %v2328_v13 = vld [vmem:[%s7203_s4 + $0xb18] sm:$0xff] }
 0x549   : > { %v2315_v6 = vld [vmem:[%s7203_s4 + $0xab0] sm:$0xff]  ;;  %v2324_v14 = vld [vmem:[%s7203_s4 + $0xaf8] sm:$0xff]  ;;  %v2321_v59 = vld [vmem:[%s7203_s4 + $0xae0] sm:$0xff] }
 0x54a   : > { %3871 = vmatpush1.bf16.msra.mxu1 %v3870_v32  ;;  %3999 = vmatpush1.bf16.msra.mxu0 %v3998_v33  ;;  %v2281_v32 = vld [vmem:[%s7203_s4 + $0x9a0] sm:$0xff]  ;;  %v2286_v33 = vld [vmem:[%s7203_s4 + $0x9c8] sm:$0xff]  ;;  %v2311_v9 = vld [vmem:[%s7203_s4 + $0xa90] sm:$0xff] }
 0x54b   : > { %3873 = vmatprep.subr.bf16.mxu1 %v3872_v5  ;;  %4001 = vmatprep.subr.bf16.mxu0 %v4000_v35  ;;  %v2294_v5 = vld [vmem:[%s7203_s4 + $0xa08] sm:$0xff]  ;;  %v3890_v35 = vpack.c.bf16 %v2279_v28, %v2273_v26  ;;  %v4018_v24 = vpack.c.bf16 %v2281_v32, %v2275_v31  ;;  %v3892_v38 = vpack.c.bf16 %v2292_v34, %v2286_v33  ;;  %v2327_v62 = vld [vmem:[%s7203_s4 + $0xb10] sm:$0xff]  ;;  %v2340_v26 = vld [vmem:[%s7203_s4 + $0xb78] sm:$0xff] }
 0x54c   : > { %v4020_v39 = vpack.c.bf16 %v2294_v5, %v2288_v0  ;;  %v2323_v22 = vld [vmem:[%s7203_s4 + $0xaf0] sm:$0xff]  ;;  %v2336_v28 = vld [vmem:[%s7203_s4 + $0xb58] sm:$0xff]  ;;  %v2333_v32 = vld [vmem:[%s7203_s4 + $0xb40] sm:$0xff] }
 0x54d   : > { %v2339_v33 = vld [vmem:[%s7203_s4 + $0xb70] sm:$0xff] }
 0x54e   : > { %3875 = vmatpush1.bf16.msra.mxu1 %v3874_v44  ;;  %4003 = vmatpush1.bf16.msra.mxu0 %v4002_v45  ;;  %v2293_v44 = vld [vmem:[%s7203_s4 + $0xa00] sm:$0xff]  ;;  %v2298_v45 = vld [vmem:[%s7203_s4 + $0xa28] sm:$0xff]  ;;  %v2335_v5 = vld [vmem:[%s7203_s4 + $0xb50] sm:$0xff] }
 0x54f   : > { %3877 = vmatprep.subr.bf16.mxu1 %v3876_v49  ;;  %4005 = vmatprep.subr.bf16.mxu0 %v4004_v50  ;;  %v2306_v49 = vld [vmem:[%s7203_s4 + $0xa68] sm:$0xff]  ;;  %v3894_v50 = vpack.c.bf16 %v2291_v37, %v2285_v36  ;;  %v4022_v20 = vpack.c.bf16 %v2293_v44, %v2287_v43  ;;  %v3896_v47 = vpack.c.bf16 %v2304_v46, %v2298_v45  ;;  %v2352_v36 = vld [vmem:[%s7203_s4 + $0xbd8] sm:$0xff]  ;;  %v2345_v44 = vld [vmem:[%s7203_s4 + $0xba0] sm:$0xff] }
 0x550   : > { %v4024_v27 = vpack.c.bf16 %v2306_v49, %v2300_v15  ;;  %v2348_v37 = vld [vmem:[%s7203_s4 + $0xbb8] sm:$0xff]  ;;  %v2351_v15 = vld [vmem:[%s7203_s4 + $0xbd0] sm:$0xff] }
 0x551   : > { %v2347_v49 = vld [vmem:[%s7203_s4 + $0xbb0] sm:$0xff] }
 0x552   : > { %3879 = vmatpush1.bf16.msra.mxu1 %v3878_v54  ;;  %4007 = vmatpush1.bf16.msra.mxu0 %v4006_v56  ;;  %v2305_v54 = vld [vmem:[%s7203_s4 + $0xa60] sm:$0xff]  ;;  %v2310_v56 = vld [vmem:[%s7203_s4 + $0xa88] sm:$0xff] }
 0x553   : > { %3881 = vmatprep.subr.bf16.mxu1 %v3880_v2  ;;  %4009 = vmatprep.subr.bf16.mxu0 %v4008_v3  ;;  %v2318_v2 = vld [vmem:[%s7203_s4 + $0xac8] sm:$0xff]  ;;  %v3898_v3 = vpack.c.bf16 %v2303_v52, %v2297_v51  ;;  %v4026_v4 = vpack.c.bf16 %v2305_v54, %v2299_v53  ;;  %v3900_v8 = vpack.c.bf16 %v2316_v57, %v2310_v56  ;;  %v1984_v51 = vld [vmem:[%s7203_s4 + $0x58] sm:$0xff]  ;;  %v1977_v53 = vld [vmem:[%s7203_s4 + $0x20] sm:$0xff] }
 0x554   : > { %v4028_v48 = vpack.c.bf16 %v2318_v2, %v2312_v1  ;;  %v3914_v52 = vpack.c.bf16 %v2351_v15, %v2345_v44  ;;  %v1983_v54 = vld [vmem:[%s7203_s4 + $0x50] sm:$0xff]  ;;  %v1990_v56 = vld [vmem:[%s7203_s4 + $0x88] sm:$0xff]  ;;  %v1996_v57 = vld [vmem:[%s7203_s4 + $0xb8] sm:$0xff] }
 0x555   : > { %v4046_v1 = vpack.c.bf16 %v1983_v54, %v1977_v53  ;;  %v4048_v2 = vpack.c.bf16 %v1996_v57, %v1990_v56  ;;  %v2074_v44 = vld [vmem:[%s7203_s4 + $0x328] sm:$0xff]  ;;  %v2091_v53 = vld [vmem:[%s7203_s4 + $0x3b0] sm:$0xff]  ;;  %v2104_v56 = vld [vmem:[%s7203_s4 + $0x418] sm:$0xff] }
 0x556   : > { %3883 = vmatpush1.bf16.msra.mxu1 %v3882_v10  ;;  %4011 = vmatpush1.bf16.msra.mxu0 %v4010_v12  ;;  %v2317_v10 = vld [vmem:[%s7203_s4 + $0xac0] sm:$0xff]  ;;  %v2322_v12 = vld [vmem:[%s7203_s4 + $0xae8] sm:$0xff] }
 0x557   : > { %3885 = vmatprep.subr.bf16.mxu1 %v3884_v17  ;;  %4013 = vmatprep.subr.bf16.mxu0 %v4012_v19  ;;  %v2330_v17 = vld [vmem:[%s7203_s4 + $0xb28] sm:$0xff]  ;;  %v3902_v19 = vpack.c.bf16 %v2315_v6, %v2309_v42  ;;  %v4030_v16 = vpack.c.bf16 %v2317_v10, %v2311_v9  ;;  %v3904_v63 = vpack.c.bf16 %v2328_v13, %v2322_v12  ;;  %v2008_v6 = vld [vmem:[%s7203_s4 + $0x118] sm:$0xff]  ;;  %v2001_v9 = vld [vmem:[%s7203_s4 + $0xe0] sm:$0xff] }
 0x558   : > { %v4032_v18 = vpack.c.bf16 %v2330_v17, %v2324_v14  ;;  %v2002_v42 = vld [vmem:[%s7203_s4 + $0xe8] sm:$0xff]  ;;  %v2007_v10 = vld [vmem:[%s7203_s4 + $0x110] sm:$0xff]  ;;  %v2020_v13 = vld [vmem:[%s7203_s4 + $0x178] sm:$0xff] }
 0x559   : > { %v2014_v12 = vld [vmem:[%s7203_s4 + $0x148] sm:$0xff]  ;;  %v4054_v14 = vpack.c.bf16 %v2007_v10, %v2001_v9  ;;  %v2115_v9 = vld [vmem:[%s7203_s4 + $0x470] sm:$0xff] }
 0x55a   : > { %3887 = vmatpush1.bf16.msra.mxu1 %v3886_v55  ;;  %4015 = vmatpush1.bf16.msra.mxu0 %v4014_v60  ;;  %v2329_v55 = vld [vmem:[%s7203_s4 + $0xb20] sm:$0xff]  ;;  %v2334_v60 = vld [vmem:[%s7203_s4 + $0xb48] sm:$0xff]  ;;  %v4056_v17 = vpack.c.bf16 %v2020_v13, %v2014_v12  ;;  %v2128_v12 = vld [vmem:[%s7203_s4 + $0x4d8] sm:$0xff] }
 0x55b   : > { %3889 = vmatprep.subr.bf16.mxu1 %v3888_v29  ;;  %4017 = vmatprep.subr.bf16.mxu0 %v4016_v30  ;;  %v2342_v29 = vld [vmem:[%s7203_s4 + $0xb88] sm:$0xff]  ;;  %v3906_v30 = vpack.c.bf16 %v2327_v62, %v2321_v59  ;;  %v4034_v31 = vpack.c.bf16 %v2329_v55, %v2323_v22  ;;  %v3908_v34 = vpack.c.bf16 %v2340_v26, %v2334_v60  ;;  %v2032_v62 = vld [vmem:[%s7203_s4 + $0x1d8] sm:$0xff]  ;;  %v2025_v22 = vld [vmem:[%s7203_s4 + $0x1a0] sm:$0xff] }
 0x55c   : > { %v4036_v0 = vpack.c.bf16 %v2342_v29, %v2336_v28  ;;  %v2026_v59 = vld [vmem:[%s7203_s4 + $0x1a8] sm:$0xff]  ;;  %v2031_v55 = vld [vmem:[%s7203_s4 + $0x1d0] sm:$0xff]  ;;  %v2044_v26 = vld [vmem:[%s7203_s4 + $0x238] sm:$0xff] }
 0x55d   : > { %v2038_v60 = vld [vmem:[%s7203_s4 + $0x208] sm:$0xff]  ;;  %v4062_v28 = vpack.c.bf16 %v2031_v55, %v2025_v22  ;;  %v2139_v22 = vld [vmem:[%s7203_s4 + $0x530] sm:$0xff] }
 0x55e   : > { %3891 = vmatpush1.bf16.msra.mxu1 %v3890_v35  ;;  %4019 = vmatpush1.bf16.msra.mxu0 %v4018_v24  ;;  %v2341_v35 = vld [vmem:[%s7203_s4 + $0xb80] sm:$0xff]  ;;  %v2346_v24 = vld [vmem:[%s7203_s4 + $0xba8] sm:$0xff]  ;;  %v4064_v29 = vpack.c.bf16 %v2044_v26, %v2038_v60  ;;  %v2152_v60 = vld [vmem:[%s7203_s4 + $0x598] sm:$0xff] }
 0x55f   : > { %3893 = vmatprep.subr.bf16.mxu1 %v3892_v38  ;;  %4021 = vmatprep.subr.bf16.mxu0 %v4020_v39  ;;  %v2354_v38 = vld [vmem:[%s7203_s4 + $0xbe8] sm:$0xff]  ;;  %v3910_v39 = vpack.c.bf16 %v2339_v33, %v2333_v32  ;;  %v4038_v43 = vpack.c.bf16 %v2341_v35, %v2335_v5  ;;  %v3912_v45 = vpack.c.bf16 %v2352_v36, %v2346_v24  ;;  %v2056_v33 = vld [vmem:[%s7203_s4 + $0x298] sm:$0xff]  ;;  %v2049_v5 = vld [vmem:[%s7203_s4 + $0x260] sm:$0xff] }
 0x560   : > { %v4040_v46 = vpack.c.bf16 %v2354_v38, %v2348_v37  ;;  %v2050_v32 = vld [vmem:[%s7203_s4 + $0x268] sm:$0xff]  ;;  %v2055_v35 = vld [vmem:[%s7203_s4 + $0x290] sm:$0xff]  ;;  %v2068_v36 = vld [vmem:[%s7203_s4 + $0x2f8] sm:$0xff] }
 0x561   : > { %v2062_v24 = vld [vmem:[%s7203_s4 + $0x2c8] sm:$0xff]  ;;  %v4070_v37 = vpack.c.bf16 %v2055_v35, %v2049_v5  ;;  %v2163_v5 = vld [vmem:[%s7203_s4 + $0x5f0] sm:$0xff] }
 0x562   : > { %3895 = vmatpush1.bf16.msra.mxu1 %v3894_v50  ;;  %4023 = vmatpush1.bf16.msra.mxu0 %v4022_v20  ;;  %v2353_v50 = vld [vmem:[%s7203_s4 + $0xbe0] sm:$0xff]  ;;  %v1978_v20 = vld [vmem:[%s7203_s4 + $0x28] sm:$0xff]  ;;  %v4072_v38 = vpack.c.bf16 %v2068_v36, %v2062_v24  ;;  %v2176_v24 = vld [vmem:[%s7203_s4 + $0x658] sm:$0xff] }
 0x563   : > { %3897 = vmatprep.subr.bf16.mxu1 %v3896_v47  ;;  %4025 = vmatprep.subr.bf16.mxu0 %v4024_v27  ;;  %v4042_v47 = vpack.c.bf16 %v2353_v50, %v2347_v49  ;;  %v4044_v27 = vpack.c.bf16 %v1984_v51, %v1978_v20  ;;  %v2073_v49 = vld [vmem:[%s7203_s4 + $0x320] sm:$0xff]  ;;  %v2079_v50 = vld [vmem:[%s7203_s4 + $0x350] sm:$0xff]  ;;  %v2086_v20 = vld [vmem:[%s7203_s4 + $0x388] sm:$0xff] }
 0x564   : > { %v2092_v51 = vld [vmem:[%s7203_s4 + $0x3b8] sm:$0xff]  ;;  %v2098_v54 = vld [vmem:[%s7203_s4 + $0x3e8] sm:$0xff] }
 0x565   : > { %v2122_v10 = vld [vmem:[%s7203_s4 + $0x4a8] sm:$0xff] }
 0x566   : > { %3899 = vmatpush1.bf16.msra.mxu1 %v3898_v3  ;;  %4027 = vmatpush1.bf16.msra.mxu0 %v4026_v4  ;;  %v1989_v3 = vld [vmem:[%s7203_s4 + $0x80] sm:$0xff]  ;;  %v1995_v4 = vld [vmem:[%s7203_s4 + $0xb0] sm:$0xff]  ;;  %v2146_v55 = vld [vmem:[%s7203_s4 + $0x568] sm:$0xff] }
 0x567   : > { %3901 = vmatprep.subr.bf16.mxu1 %v3900_v8  ;;  %4029 = vmatprep.subr.bf16.mxu0 %v4028_v48  ;;  %v4050_v8 = vpack.c.bf16 %v1995_v4, %v1989_v3  ;;  %v4052_v48 = vpack.c.bf16 %v2008_v6, %v2002_v42  ;;  %v2103_v3 = vld [vmem:[%s7203_s4 + $0x410] sm:$0xff]  ;;  %v2110_v4 = vld [vmem:[%s7203_s4 + $0x448] sm:$0xff]  ;;  %v2116_v42 = vld [vmem:[%s7203_s4 + $0x478] sm:$0xff] }
 0x568   : > { %v2170_v35 = vld [vmem:[%s7203_s4 + $0x628] sm:$0xff] }
 0x56a   : > { %3903 = vmatpush1.bf16.msra.mxu1 %v3902_v19  ;;  %4031 = vmatpush1.bf16.msra.mxu0 %v4030_v16  ;;  %v2013_v19 = vld [vmem:[%s7203_s4 + $0x140] sm:$0xff]  ;;  %v2019_v16 = vld [vmem:[%s7203_s4 + $0x170] sm:$0xff] }
 0x56b   : > { %3905 = vmatprep.subr.bf16.mxu1 %v3904_v63  ;;  %4033 = vmatprep.subr.bf16.mxu0 %v4032_v18  ;;  %v4058_v63 = vpack.c.bf16 %v2019_v16, %v2013_v19  ;;  %v4060_v18 = vpack.c.bf16 %v2032_v62, %v2026_v59  ;;  %v2127_v19 = vld [vmem:[%s7203_s4 + $0x4d0] sm:$0xff]  ;;  %v2134_v16 = vld [vmem:[%s7203_s4 + $0x508] sm:$0xff]  ;;  %v2140_v59 = vld [vmem:[%s7203_s4 + $0x538] sm:$0xff] }
 0x56e   : > { %3907 = vmatpush1.bf16.msra.mxu1 %v3906_v30  ;;  %4035 = vmatpush1.bf16.msra.mxu0 %v4034_v31  ;;  %v2037_v30 = vld [vmem:[%s7203_s4 + $0x200] sm:$0xff]  ;;  %v2043_v31 = vld [vmem:[%s7203_s4 + $0x230] sm:$0xff] }
 0x56f   : > { %3909 = vmatprep.subr.bf16.mxu1 %v3908_v34  ;;  %4037 = vmatprep.subr.bf16.mxu0 %v4036_v0  ;;  %v4066_v34 = vpack.c.bf16 %v2043_v31, %v2037_v30  ;;  %v4068_v0 = vpack.c.bf16 %v2056_v33, %v2050_v32  ;;  %v2151_v30 = vld [vmem:[%s7203_s4 + $0x590] sm:$0xff]  ;;  %v2158_v31 = vld [vmem:[%s7203_s4 + $0x5c8] sm:$0xff]  ;;  %v2164_v32 = vld [vmem:[%s7203_s4 + $0x5f8] sm:$0xff] }
 0x572   : > { %3911 = vmatpush1.bf16.msra.mxu1 %v3910_v39  ;;  %4039 = vmatpush1.bf16.msra.mxu0 %v4038_v43  ;;  %v2061_v39 = vld [vmem:[%s7203_s4 + $0x2c0] sm:$0xff]  ;;  %v2067_v43 = vld [vmem:[%s7203_s4 + $0x2f0] sm:$0xff] }
 0x573   : > { %3913 = vmatprep.subr.bf16.mxu1 %v3912_v45  ;;  %4041 = vmatprep.subr.bf16.mxu0 %v4040_v46  ;;  %v2080_v45 = vld [vmem:[%s7203_s4 + $0x358] sm:$0xff]  ;;  %v4074_v46 = vpack.c.bf16 %v2067_v43, %v2061_v39  ;;  %v2175_v39 = vld [vmem:[%s7203_s4 + $0x650] sm:$0xff]  ;;  %v2182_v43 = vld [vmem:[%s7203_s4 + $0x688] sm:$0xff] }
 0x574   : > { %v4076_v15 = vpack.c.bf16 %v2080_v45, %v2074_v44  ;;  %v2188_v44 = vld [vmem:[%s7203_s4 + $0x6b8] sm:$0xff] }
 0x576   : > { %3915 = vmatpush1.bf16.msra.mxu1 %v3914_v52  ;;  %4043 = vmatpush1.bf16.msra.mxu0 %v4042_v47  ;;  %v4078_v52 = vpack.c.bf16 %v2079_v50, %v2073_v49  ;;  %v4080_v47 = vpack.c.bf16 %v2092_v51, %v2086_v20  ;;  %v2187_v49 = vld [vmem:[%s7203_s4 + $0x6b0] sm:$0xff]  ;;  %v2194_v50 = vld [vmem:[%s7203_s4 + $0x6e8] sm:$0xff]  ;;  %v2200_v20 = vld [vmem:[%s7203_s4 + $0x718] sm:$0xff] }
 0x577   : > { %4045 = vmatprep.subr.bf16.mxu1 %v4044_v27  ;;  %v2085_v27 = vld [vmem:[%s7203_s4 + $0x380] sm:$0xff] }
 0x578   : > { %v4082_v57 = vpack.c.bf16 %v2091_v53, %v2085_v27  ;;  %v2199_v27 = vld [vmem:[%s7203_s4 + $0x710] sm:$0xff]  ;;  %v2206_v53 = vld [vmem:[%s7203_s4 + $0x748] sm:$0xff] }
 0x579   : > { %2499 = vmatmul.mubr.f32.vlgmr.msra.gmra.mrb[18].mxu1 %v6457_v58  ;;  %2653 = vmatmul.mubr.f32.vlgmr.msra.gmra.mrb[12].mxu0 %v6457_v58 }
 0x57a   : > { %2504 = vmatprep.mubr.f32.mxu1 %v6496_v11  ;;  %2658 = vmatprep.mubr.f32.mxu0 %v6496_v11 }
 0x57b   : > { %4047 = vmatpush1.bf16.msra.mxu1 %v4046_v1  ;;  %v4084_v1 = vpack.c.bf16 %v2104_v56, %v2098_v54  ;;  %v2212_v54 = vld [vmem:[%s7203_s4 + $0x778] sm:$0xff] }
 0x57c   : > { %4049 = vmatprep.subr.bf16.mxu1 %v4048_v2  ;;  %v2097_v2 = vld [vmem:[%s7203_s4 + $0x3e0] sm:$0xff] }
 0x57d   : > { %2505 = vmatmul.mubr.f32.gmra.mrb[20].mxu1 %v6493_v21  ;;  %2659 = vmatmul.mubr.f32.gmra.mrb[14].mxu0 %v6493_v21  ;;  %v4086_v6 = vpack.c.bf16 %v2103_v3, %v2097_v2  ;;  %v2211_v2 = vld [vmem:[%s7203_s4 + $0x770] sm:$0xff]  ;;  %v2218_v3 = vld [vmem:[%s7203_s4 + $0x7a8] sm:$0xff] }
 0x57e   : > { %2729 = vmatprep.mubr.f32.mxu1 %v6390_v25 }
 0x57f   : > { %4051 = vmatpush1.bf16.msra.mxu1 %v4050_v8  ;;  %v4088_v8 = vpack.c.bf16 %v2116_v42, %v2110_v4  ;;  %v2224_v4 = vld [vmem:[%s7203_s4 + $0x7d8] sm:$0xff] }
 0x580   : > { %4053 = vmatprep.subr.bf16.mxu1 %v4052_v48  ;;  %v2109_v48 = vld [vmem:[%s7203_s4 + $0x440] sm:$0xff] }
 0x581   : > { %v4090_v13 = vpack.c.bf16 %v2115_v9, %v2109_v48  ;;  %v2223_v48 = vld [vmem:[%s7203_s4 + $0x7d0] sm:$0xff]  ;;  %v2230_v9 = vld [vmem:[%s7203_s4 + $0x808] sm:$0xff] }
 0x583   : > { %4055 = vmatpush1.bf16.msra.mxu1 %v4054_v14  ;;  %v4092_v14 = vpack.c.bf16 %v2128_v12, %v2122_v10  ;;  %v2236_v10 = vld [vmem:[%s7203_s4 + $0x838] sm:$0xff] }
 0x584   : > { %4057 = vmatprep.subr.bf16.mxu1 %v4056_v17  ;;  %v2121_v17 = vld [vmem:[%s7203_s4 + $0x4a0] sm:$0xff] }
 0x585   : > { %v4094_v62 = vpack.c.bf16 %v2127_v19, %v2121_v17  ;;  %v2235_v17 = vld [vmem:[%s7203_s4 + $0x830] sm:$0xff]  ;;  %v2242_v19 = vld [vmem:[%s7203_s4 + $0x868] sm:$0xff] }
 0x587   : > { %4059 = vmatpush1.bf16.msra.mxu1 %v4058_v63  ;;  %v4096_v63 = vpack.c.bf16 %v2140_v59, %v2134_v16  ;;  %v2248_v16 = vld [vmem:[%s7203_s4 + $0x898] sm:$0xff] }
 0x588   : > { %4061 = vmatprep.subr.bf16.mxu1 %v4060_v18  ;;  %v2133_v18 = vld [vmem:[%s7203_s4 + $0x500] sm:$0xff] }
 0x589   : > { %v4098_v26 = vpack.c.bf16 %v2139_v22, %v2133_v18  ;;  %v2247_v18 = vld [vmem:[%s7203_s4 + $0x890] sm:$0xff]  ;;  %v2254_v22 = vld [vmem:[%s7203_s4 + $0x8c8] sm:$0xff] }
 0x58b   : > { %4063 = vmatpush1.bf16.msra.mxu1 %v4062_v28  ;;  %v4100_v28 = vpack.c.bf16 %v2152_v60, %v2146_v55  ;;  %v2260_v55 = vld [vmem:[%s7203_s4 + $0x8f8] sm:$0xff] }
 0x58c   : > { %4065 = vmatprep.subr.bf16.mxu1 %v4064_v29  ;;  %v2145_v29 = vld [vmem:[%s7203_s4 + $0x560] sm:$0xff] }
 0x58d   : > { %v4102_v33 = vpack.c.bf16 %v2151_v30, %v2145_v29  ;;  %v2259_v29 = vld [vmem:[%s7203_s4 + $0x8f0] sm:$0xff]  ;;  %v2266_v30 = vld [vmem:[%s7203_s4 + $0x928] sm:$0xff] }
 0x58f   : > { %4067 = vmatpush1.bf16.msra.mxu1 %v4066_v34  ;;  %v4104_v34 = vpack.c.bf16 %v2164_v32, %v2158_v31  ;;  %v2272_v31 = vld [vmem:[%s7203_s4 + $0x958] sm:$0xff] }
 0x590   : > { %4069 = vmatprep.subr.bf16.mxu1 %v4068_v0  ;;  %v2157_v0 = vld [vmem:[%s7203_s4 + $0x5c0] sm:$0xff] }
 0x591   : > { %v4106_v36 = vpack.c.bf16 %v2163_v5, %v2157_v0  ;;  %v2271_v0 = vld [vmem:[%s7203_s4 + $0x950] sm:$0xff]  ;;  %v2278_v5 = vld [vmem:[%s7203_s4 + $0x988] sm:$0xff] }
 0x593   : > { %4071 = vmatpush1.bf16.msra.mxu1 %v4070_v37  ;;  %v4108_v37 = vpack.c.bf16 %v2176_v24, %v2170_v35  ;;  %v2284_v35 = vld [vmem:[%s7203_s4 + $0x9b8] sm:$0xff] }
 0x594   : > { %4073 = vmatprep.subr.bf16.mxu1 %v4072_v38  ;;  %v2169_v38 = vld [vmem:[%s7203_s4 + $0x620] sm:$0xff] }
 0x595   : > { %v4110_v45 = vpack.c.bf16 %v2175_v39, %v2169_v38  ;;  %v2283_v38 = vld [vmem:[%s7203_s4 + $0x9b0] sm:$0xff]  ;;  %v2290_v39 = vld [vmem:[%s7203_s4 + $0x9e8] sm:$0xff] }
 0x597   : > { %4075 = vmatpush1.bf16.msra.mxu1 %v4074_v46  ;;  %v4112_v46 = vpack.c.bf16 %v2188_v44, %v2182_v43  ;;  %v2296_v43 = vld [vmem:[%s7203_s4 + $0xa18] sm:$0xff] }
 0x598   : > { %4077 = vmatprep.subr.bf16.mxu1 %v4076_v15  ;;  %v2181_v15 = vld [vmem:[%s7203_s4 + $0x680] sm:$0xff] }
 0x599   : > { %v4114_v51 = vpack.c.bf16 %v2187_v49, %v2181_v15  ;;  %v2295_v15 = vld [vmem:[%s7203_s4 + $0xa10] sm:$0xff]  ;;  %v2302_v49 = vld [vmem:[%s7203_s4 + $0xa48] sm:$0xff] }
 0x59b   : > { %4079 = vmatpush1.bf16.msra.mxu1 %v4078_v52  ;;  %v4116_v52 = vpack.c.bf16 %v2200_v20, %v2194_v50  ;;  %v2308_v50 = vld [vmem:[%s7203_s4 + $0xa78] sm:$0xff] }
 0x59c   : > { %4081 = vmatprep.subr.bf16.mxu1 %v4080_v47  ;;  %v2193_v47 = vld [vmem:[%s7203_s4 + $0x6e0] sm:$0xff] }
 0x59d   : > { %v4118_v56 = vpack.c.bf16 %v2199_v27, %v2193_v47  ;;  %v2307_v47 = vld [vmem:[%s7203_s4 + $0xa70] sm:$0xff]  ;;  %v2314_v27 = vld [vmem:[%s7203_s4 + $0xaa8] sm:$0xff] }
 0x59f   : > { %4083 = vmatpush1.bf16.msra.mxu1 %v4082_v57  ;;  %v4120_v57 = vpack.c.bf16 %v2212_v54, %v2206_v53  ;;  %v2320_v53 = vld [vmem:[%s7203_s4 + $0xad8] sm:$0xff] }
 0x5a0   : > { %4085 = vmatprep.subr.bf16.mxu1 %v4084_v1  ;;  %v2205_v1 = vld [vmem:[%s7203_s4 + $0x740] sm:$0xff] }
 0x5a1   : > { %v4122_v42 = vpack.c.bf16 %v2211_v2, %v2205_v1  ;;  %v2319_v1 = vld [vmem:[%s7203_s4 + $0xad0] sm:$0xff]  ;;  %v2326_v2 = vld [vmem:[%s7203_s4 + $0xb08] sm:$0xff] }
 0x5a3   : > { %4087 = vmatpush1.bf16.msra.mxu1 %v4086_v6  ;;  %v4124_v6 = vpack.c.bf16 %v2224_v4, %v2218_v3  ;;  %v2332_v3 = vld [vmem:[%s7203_s4 + $0xb38] sm:$0xff] }
 0x5a4   : > { %4089 = vmatprep.subr.bf16.mxu1 %v4088_v8  ;;  %v2217_v8 = vld [vmem:[%s7203_s4 + $0x7a0] sm:$0xff] }
 0x5a5   : > { %v4126_v12 = vpack.c.bf16 %v2223_v48, %v2217_v8  ;;  %v2331_v8 = vld [vmem:[%s7203_s4 + $0xb30] sm:$0xff]  ;;  %v2338_v48 = vld [vmem:[%s7203_s4 + $0xb68] sm:$0xff] }
 0x5a7   : > { %4091 = vmatpush1.bf16.msra.mxu1 %v4090_v13  ;;  %v4128_v13 = vpack.c.bf16 %v2236_v10, %v2230_v9  ;;  %v2344_v9 = vld [vmem:[%s7203_s4 + $0xb98] sm:$0xff] }
 0x5a8   : > { %4093 = vmatprep.subr.bf16.mxu1 %v4092_v14  ;;  %v2229_v14 = vld [vmem:[%s7203_s4 + $0x800] sm:$0xff] }
 0x5a9   : > { %v4130_v59 = vpack.c.bf16 %v2235_v17, %v2229_v14  ;;  %v2343_v14 = vld [vmem:[%s7203_s4 + $0xb90] sm:$0xff]  ;;  %v2350_v17 = vld [vmem:[%s7203_s4 + $0xbc8] sm:$0xff] }
 0x5ab   : > { %4095 = vmatpush1.bf16.msra.mxu1 %v4094_v62  ;;  %v4132_v62 = vpack.c.bf16 %v2248_v16, %v2242_v19  ;;  %v2356_v19 = vld [vmem:[%s7203_s4 + $0xbf8] sm:$0xff] }
 0x5ac   : > { %4097 = vmatprep.subr.bf16.mxu1 %v4096_v63  ;;  %v2241_v63 = vld [vmem:[%s7203_s4 + $0x860] sm:$0xff] }
 0x5ad   : > { %v4134_v60 = vpack.c.bf16 %v2247_v18, %v2241_v63  ;;  %v2355_v63 = vld [vmem:[%s7203_s4 + $0xbf0] sm:$0xff] }
 0x5af   : > { %4099 = vmatpush1.bf16.msra.mxu1 %v4098_v26  ;;  %v4136_v26 = vpack.c.bf16 %v2260_v55, %v2254_v22 }
 0x5b0   : > { %4101 = vmatprep.subr.bf16.mxu1 %v4100_v28  ;;  %v2253_v28 = vld [vmem:[%s7203_s4 + $0x8c0] sm:$0xff] }
 0x5b1   : > { %v4138_v32 = vpack.c.bf16 %v2259_v29, %v2253_v28 }
 0x5b3   : > { %4103 = vmatpush1.bf16.msra.mxu1 %v4102_v33  ;;  %v4140_v33 = vpack.c.bf16 %v2272_v31, %v2266_v30 }
 0x5b4   : > { %4105 = vmatprep.subr.bf16.mxu1 %v4104_v34  ;;  %v2265_v34 = vld [vmem:[%s7203_s4 + $0x920] sm:$0xff] }
 0x5b5   : > { %v4142_v24 = vpack.c.bf16 %v2271_v0, %v2265_v34 }
 0x5b7   : > { %4107 = vmatpush1.bf16.msra.mxu1 %v4106_v36  ;;  %v4144_v36 = vpack.c.bf16 %v2284_v35, %v2278_v5 }
 0x5b8   : > { %4109 = vmatprep.subr.bf16.mxu1 %v4108_v37  ;;  %v2277_v37 = vld [vmem:[%s7203_s4 + $0x980] sm:$0xff] }
 0x5b9   : > { %v4146_v44 = vpack.c.bf16 %v2283_v38, %v2277_v37 }
 0x5ba   : > { %2730 = vmatmul.mubr.f32.vlgmr.msra.gmra.mrb[22].mxu1 %v6387_v23 }
 0x5bb   : > { %2735 = vmatprep.mubr.f32.mxu1 %v6426_v41  ;;  %4111 = vmatpush1.bf16.msra.mxu1 %v4110_v45  ;;  %v4148_v45 = vpack.c.bf16 %v2296_v43, %v2290_v39 }
 0x5bc   : > { %4113 = vmatprep.subr.bf16.mxu1 %v4112_v46  ;;  %v2289_v46 = vld [vmem:[%s7203_s4 + $0x9e0] sm:$0xff] }
 0x5bd   : > { %v4150_v20 = vpack.c.bf16 %v2295_v15, %v2289_v46 }
 0x5be   : > { %2736 = vmatmul.mubr.f32.gmra.mrb[24].mxu1 %v6421_v40 }
 0x5bf   : > { %4115 = vmatpush1.bf16.msra.mxu1 %v4114_v51  ;;  %2806 = vmatprep.mubr.f32.mxu1 %v6462_v61  ;;  %v4152_v51 = vpack.c.bf16 %v2308_v50, %v2302_v49 }
 0x5c0   : > { %4117 = vmatprep.subr.bf16.mxu1 %v4116_v52  ;;  %v2301_v52 = vld [vmem:[%s7203_s4 + $0xa40] sm:$0xff] }
 0x5c1   : > { %v4154_v54 = vpack.c.bf16 %v2307_v47, %v2301_v52 }
 0x5c3   : > { %4119 = vmatpush1.bf16.msra.mxu1 %v4118_v56  ;;  %v4156_v56 = vpack.c.bf16 %v2320_v53, %v2314_v27 }
 0x5c4   : > { %4121 = vmatprep.subr.bf16.mxu1 %v4120_v57  ;;  %v2313_v57 = vld [vmem:[%s7203_s4 + $0xaa0] sm:$0xff] }
 0x5c5   : > { %v4158_v4 = vpack.c.bf16 %v2319_v1, %v2313_v57 }
 0x5c7   : > { %4123 = vmatpush1.bf16.msra.mxu1 %v4122_v42  ;;  %v4160_v42 = vpack.c.bf16 %v2332_v3, %v2326_v2  ;;  %v3076_v3 = vstv %s3266_s11 }
 0x5c8   : > { %4125 = vmatprep.subr.bf16.mxu1 %v4124_v6  ;;  %v2325_v6 = vld [vmem:[%s7203_s4 + $0xb00] sm:$0xff] }
 0x5c9   : > { %v4162_v10 = vpack.c.bf16 %v2331_v8, %v2325_v6 }
 0x5cb   : > { %4127 = vmatpush1.bf16.msra.mxu1 %v4126_v12  ;;  %v4164_v12 = vpack.c.bf16 %v2344_v9, %v2338_v48 }
 0x5cc   : > { %4129 = vmatprep.subr.bf16.mxu1 %v4128_v13  ;;  %v2337_v13 = vld [vmem:[%s7203_s4 + $0xb60] sm:$0xff] }
 0x5cd   : > { %v4166_v16 = vpack.c.bf16 %v2343_v14, %v2337_v13 }
 0x5cf   : > { %4131 = vmatpush1.bf16.msra.mxu1 %v4130_v59  ;;  %v4168_v59 = vpack.c.bf16 %v2356_v19, %v2350_v17 }
 0x5d0   : > { %4133 = vmatprep.subr.bf16.mxu1 %v4132_v62  ;;  %v2349_v62 = vld [vmem:[%s7203_s4 + $0xbc0] sm:$0xff] }
 0x5d1   : > { %v4170_v18 = vpack.c.bf16 %v2355_v63, %v2349_v62 }
 0x5d3   : > { %4135 = vmatpush1.bf16.msra.mxu1 %v4134_v60 }
 0x5d4   : > { %4137 = vmatprep.subr.bf16.mxu1 %v4136_v26 }
 0x5d7   : > { %4139 = vmatpush1.bf16.msra.mxu1 %v4138_v32 }
 0x5d8   : > { %4141 = vmatprep.subr.bf16.mxu1 %v4140_v33 }
 0x5db   : > { %4143 = vmatpush1.bf16.msra.mxu1 %v4142_v24 }
 0x5dc   : > { %4145 = vmatprep.subr.bf16.mxu1 %v4144_v36 }
 0x5df   : > { %4147 = vmatpush1.bf16.msra.mxu1 %v4146_v44 }
 0x5e0   : > { %4149 = vmatprep.subr.bf16.mxu1 %v4148_v45 }
 0x5e3   : > { %4151 = vmatpush1.bf16.msra.mxu1 %v4150_v20 }
 0x5e4   : > { %4153 = vmatprep.subr.bf16.mxu1 %v4152_v51 }
 0x5e7   : > { %4155 = vmatpush1.bf16.msra.mxu1 %v4154_v54 }
 0x5e8   : > { %4157 = vmatprep.subr.bf16.mxu1 %v4156_v56 }
 0x5eb   : > { %4159 = vmatpush1.bf16.msra.mxu1 %v4158_v4 }
 0x5ec   : > { %4161 = vmatprep.subr.bf16.mxu1 %v4160_v42 }
 0x5ef   : > { %4163 = vmatpush1.bf16.msra.mxu1 %v4162_v10 }
 0x5f0   : > { %4165 = vmatprep.subr.bf16.mxu1 %v4164_v12 }
 0x5f3   : > { %4167 = vmatpush1.bf16.msra.mxu1 %v4166_v16 }
 0x5f4   : > { %4169 = vmatprep.subr.bf16.mxu1 %v4168_v59 }
 0x5f7   : > { %4171 = vmatpush1.bf16.msra.mxu1 %v4170_v18 }
 0x5fa   : > { %2807 = vmatmul.mubr.f32.vlgmr.msra.gmra.mrb[22].mxu1 %v6457_v58 }
 0x5fb   : > { %2812 = vmatprep.mubr.f32.mxu1 %v6496_v11 }
 0x5fe   : > { %2813 = vmatmul.mubr.f32.gmra.mrb[24].mxu1 %v6493_v21 }
 0x64c   : > { %v2500_v22 = vpop.f32.mrb[18].mxu1  ;;  %v2654_v55 = vpop.f32.mrb[12].mxu0 }
 0x64d   : > { %v2502_v60 = vpop.f32.mrb[19].mxu1  ;;  %v2656_v26 = vpop.f32.mrb[13].mxu0  ;;  %3293 = vmatprep.mubr.f32.mxu0 %v2500_v22 }
 0x650   : > { %v2506_v28 = vpop.f32.mrb[20].mxu1  ;;  %v2660_v29 = vpop.f32.mrb[14].mxu0 }
 0x651   : > { %v4178_v30 = vpack.c.bf16 %v2660_v29, %v2654_v55  ;;  %v2508_v31 = vpop.f32.mrb[21].mxu1  ;;  %v2662_v32 = vpop.f32.mrb[15].mxu0 }
 0x652   : > { %v4172_v33 = vpack.c.bf16 %v2508_v31, %v2502_v60  ;;  %v4176_v34 = vpack.c.bf16 %v2662_v32, %v2656_v26 }
 0x654   : > { %4173 = vmatprep.subr.bf16.mxu0 %v4172_v33 }
 0x655   : > { %4175 = vmatpush3.bf16.xpose.msra.mxu0 %v4172_v33 }
 0x656   : > { %4177 = vmatprep.subr.bf16.mxu0 %v4176_v34 }
 0x65c   : > { %3294 = vmatmul.mubr.f32.vlgmr.msra.gmra.mrb[16].mxu0 %v2506_v28 }
 0x65d   : > { %4179 = vmatpush1.bf16.msra.mxu0 %v4178_v30  ;;  %2986 = vmatprep.mubr.f32.mxu0 %v4289_v7 }
 0x6cd   : > { %v2808_v0 = vpop.f32.mrb[22].mxu1 }
 0x6ce   : > { %v2810_v5 = vpop.f32.mrb[23].mxu1 }
 0x6d1   : > { %v2814_v35 = vpop.f32.mrb[24].mxu1 }
 0x6d2   : > { %v4182_v24 = vpack.c.bf16 %v2814_v35, %v2808_v0  ;;  %v2816_v36 = vpop.f32.mrb[25].mxu1 }
 0x6d3   : > { %v4180_v37 = vpack.c.bf16 %v2816_v36, %v2810_v5 }
 0x6d5   : > { %4181 = vmatprep.subr.bf16.mxu0 %v4180_v37 }
 0x72f   : > { %v3295_v38 = vpop.f32.mrb[16].mxu0 }
 0x730   : > { %v2885_v39 = vpop.f32.mrb[17].mxu0  ;;  %v2897_v43 = vsel %vm1772_vm3, %v3295_v38, -inf }
 0x731   : > { %2898 = vmax.xlane.f32.xlu1 %v2897_v43  ;;  %v2894_v44 = vsel %vm1772_vm3, %v2885_v39, -inf }
 0x732   : > { %2895 = vmax.xlane.f32.xlu0 %v2894_v44 }
 0x7be   : > { %v2899_v45 = vpop.xlane.xlu1 %2898 }
 0x7bf   : > { %v2901_v46 = vsub.f32 %v3295_v38, %v2899_v45  ;;  %v2896_v15 = vpop.xlane.xlu0 %2895 }
 0x7c0   : > { %v2900_v49 = vsub.f32 %v2885_v39, %v2896_v15 }
 0x7c1   : > { %v2904_v50 = vmul.f32 1.442695, %v2901_v46 }
 0x7c2   : > { %v2902_v20 = vmul.f32 1.442695, %v2900_v49 }
 0x7c3   : > { %4253 = vpow2.f32 %v2904_v50 }
 0x7c4   : > { %4255 = vpow2.f32 %v2902_v20 }
 0x7cd   : > { %v4254_v51 = vpop.eup %4253 }
 0x7ce   : > { %v4256_v52 = vpop.eup %4255  ;;  %v2909_v47 = vsel %vm1772_vm3, %v4254_v51, 0.0 }
 0x7cf   : > { %2910 = vadd.xlane.f32.xlu1 %v2909_v47  ;;  %v2906_v27 = vsel %vm1772_vm3, %v4256_v52, 0.0 }
 0x7d0   : > { %2907 = vadd.xlane.f32.xlu0 %v2906_v27 }
 0x85c   : > { %v2911_v53 = vpop.xlane.xlu1 %2910 }
 0x85d   : > { %v2908_v54 = vpop.xlane.xlu0 %2907 }
 0x85e   : > { %4257 = vrcp.f32 %v2908_v54 }
 0x85f   : > { %4259 = vrcp.f32 %v2911_v53 }
 0x868   : > { %v4258_v56 = vpop.eup %4257 }
 0x869   : > { %v2914_v57 = vmul.f32 %v4258_v56, %v4256_v52  ;;  %v4260_v1 = vpop.eup %4259 }
 0x86a   : > { %v2915_v2 = vmul.f32 %v4260_v1, %v4254_v51 }
 0x86b   : > { %3267 = vmatmul.mubr.msk.f32.vlgmr.msra.gmra.mrb[18].mxu0 %vm1772_vm3, %v2914_v57 }
 0x86c   : > { %4183 = vmatpush1.bf16.msra.mxu0 %v4182_v24  ;;  %2992 = vmatprep.mubr.f32.mxu0 %v4289_v7 }
 0x86f   : > { %3268 = vmatmul.mubr.msk.f32.gmra.mrb[20].mxu0 %vm1772_vm3, %v2915_v2 }
 0x870   : > { %3063 = vmatprep.mubr.f32.mxu0 %v4289_v7 }
 0x873   : > { %3269 = vmatmul.mubr.msk.f32.vlgmr.msra.gmra.mrb[22].mxu0 %vm1772_vm3, %v2914_v57 }
 0x874   : > { %3069 = vmatprep.mubr.f32.mxu0 %v4289_v7 }
 0x877   : > { %3270 = vmatmul.mubr.msk.f32.gmra.mrb[24].mxu0 %vm1772_vm3, %v2915_v2 }
 0x93e   : > { %v2988_v4 = vpop.f32.mrb[18].mxu0 }
 0x93f   : > { %v3077_v42 = vmul.f32 %v3076_v3, %v2988_v4  ;;  %v2990_v6 = vpop.f32.mrb[19].mxu0 }
 0x940   : > { %v3078_v8 = vmul.f32 %v3076_v3, %v2990_v6 }
 0x941   : > { %v3085_v48 = vadd.f32 %v3077_v42, %v6387_v23 }
 0x942   : > { %v3086_v9 = vadd.f32 %v3078_v8, %v6390_v25  ;;  %v2994_v10 = vpop.f32.mrb[20].mxu0 }
 0x943   : > { %3093 = vst [vmem:[%s238_s15] sm:$0xff] %v3085_v48  ;;  %v3081_v7 = vmul.f32 %v3076_v3, %v2994_v10  ;;  %v2996_v12 = vpop.f32.mrb[21].mxu0 }
 0x944   : > { %3094 = vst [vmem:[%s238_s15 + $0x8] sm:$0xff] %v3086_v9  ;;  %v3082_v13 = vmul.f32 %v3076_v3, %v2996_v12 }
 0x945   : > { %v3089_v14 = vadd.f32 %v3081_v7, %v6421_v40 }
 0x946   : > { %v3090_v17 = vadd.f32 %v3082_v13, %v6426_v41  ;;  %v3065_v19 = vpop.f32.mrb[22].mxu0 }
 0x947   : > { %3097 = vst [vmem:[%s238_s15 + $0x20] sm:$0xff] %v3089_v14  ;;  %v3079_v16 = vmul.f32 %v3076_v3, %v3065_v19  ;;  %v3067_v59 = vpop.f32.mrb[23].mxu0 }
 0x948   : > { %3098 = vst [vmem:[%s238_s15 + $0x28] sm:$0xff] %v3090_v17  ;;  %v3080_v62 = vmul.f32 %v3076_v3, %v3067_v59 }
 0x949   : > { %v3087_v23 = vadd.f32 %v3079_v16, %v6457_v58 }
 0x94a   : > { %v3088_v25 = vadd.f32 %v3080_v62, %v6462_v61  ;;  %v3071_v63 = vpop.f32.mrb[24].mxu0 }
 0x94b   : > { %3095 = vst [vmem:[%s238_s15 + $0x10] sm:$0xff] %v3087_v23  ;;  %v3083_v18 = vmul.f32 %v3076_v3, %v3071_v63  ;;  %v3073_v22 = vpop.f32.mrb[25].mxu0 }
 0x94c   : > { %3096 = vst [vmem:[%s238_s15 + $0x18] sm:$0xff] %v3088_v25  ;;  %v3084_v55 = vmul.f32 %v3076_v3, %v3073_v22 }
 0x94d   : > { %v3091_v40 = vadd.f32 %v3083_v18, %v6493_v21 }
 0x94e   : > { %v3092_v41 = vadd.f32 %v3084_v55, %v6496_v11 }
 0x94f   : > { %3099 = vst [vmem:[%s238_s15 + $0x30] sm:$0xff] %v3091_v40 }
 0x950   : > { %3100 = vst [vmem:[%s238_s15 + $0x38] sm:$0xff] %v3092_v41 }
 0x951 PF: > { %s16_s18 = sadd.s32 1, %s4286_s18  }
 0x952   : > { %p13_p1 = scmp.ge.s32.totalorder %s16_s18, 4  }
 0x954   :  { %15 = sbr.rel (!%p13_p1) target bundleno = 1 (0x1), region = 77 }
 0x95b   :  { %3122 = vsyncpa [#allocation3], 1 }
 0x95c   :  { %3124 = vsyncpa [#allocation3 + $0x1], 1 }

</bundles_post_ra>
